<compile_context>
chip_gen: v7x
topology: tpu7x:2x2x1
jax: 0.10.0
libtpu: 0.0.40
codegen_flags: <defaults>
</compile_context>

<pallas_src>
import functools

import jax
import jax.numpy as jnp
from jax import lax
from jax.experimental import pallas as pl
from jax.experimental.pallas import tpu as pltpu

D_MODEL = 128   # d_emb == d_hid, lane-dense (multiple of 128)
VOCAB = 128     # vocab padded to the lane width


def _san_forward_kernel(
        # ---- inputs -------------------------------------------------------
        wemb_ref,    # (B*Ss*Ls, D) bf16  flattened source word embeddings
        wsel_ref,    # (B*Ss, B*Ss*Ls) bf16  block-diag word mask (mean pool)
        msel_ref,    # (B, B*Ss) f32  block-diag sentence mask
        tgt_ref,     # (Nt*Lt*B,) int32 SMEM  targets in [sent][word][batch]
        emb_ref,     # (V, D) bf16  embedding table (VMEM resident)
        wa_ref,      # (D, D) bf16  attention projection
        wwe_ref, bwe_ref,   # w_encoder Linear  (D,D) bf16, (1,D) f32
        wse_ref, bse_ref,   # s_encoder Linear  (D,D) bf16, (1,D) f32
        ws_ref, bs_ref,     # s_decoder fused GRU  (3D,4D) bf16, (1,4D) f32
        ww_ref, bw_ref,     # w_decoder fused GRU  (2D,4D) bf16, (1,4D) f32
        wc_ref, bc_ref,     # classifier  (D,V) bf16, (1,V) f32
        # ---- output -------------------------------------------------------
        loss_ref,    # (1, 128) f32  accumulated NLL broadcast over lanes
        *, n_tgt_sent, tgt_len):
    f32, bf16 = jnp.float32, jnp.bfloat16
    B = msel_ref.shape[0]
    V, D = emb_ref.shape
    Nt, Lt = n_tgt_sent, tgt_len

    def mm(a, w_ref, b_ref=None):
        # bf16 MXU operands, f32 accumulation; elementwise math stays f32.
        out = jnp.dot(a.astype(bf16), w_ref[...], preferred_element_type=f32)
        return out if b_ref is None else out + b_ref[...]

    def gru_cell(lhs, h, w_ref, b_ref):
        # ONE fused MXU matmul; gate column blocks (r | z | n_x | n_h).
        # Exact PyTorch GRUCell math (n-gate hidden part gated by r).
        g = mm(lhs, w_ref, b_ref)                       # (B, 4D)
        r = jax.nn.sigmoid(g[:, 0:D])
        z = jax.nn.sigmoid(g[:, D:2 * D])
        n = jnp.tanh(g[:, 2 * D:3 * D] + r * g[:, 3 * D:4 * D])
        return (1.0 - z) * n + z * h

    # ------------------------------- encode ----------------------------------
    # w_encoder: masked mean pool over words + Linear + tanh; the pool is one
    # MXU dot against the host-built block-diagonal word mask.
    wsel = wsel_ref[...]
    wsum = jnp.dot(wsel, wemb_ref[...], preferred_element_type=f32)   # (B*Ss, D)
    wcnt = jnp.maximum(jnp.sum(wsel.astype(f32), axis=-1, keepdims=True), 1.0)
    hid_flat = jnp.tanh(mm(wsum * pl.reciprocal(wcnt, approx=True),
                           wwe_ref, bwe_ref))                          # (B*Ss, D)

    # s_encoder: masked mean pool over sentences + Linear + tanh.
    msel = msel_ref[...]                                               # (B, B*Ss)
    ssum = jnp.dot(msel, hid_flat, preferred_element_type=f32)         # (B, D)
    scnt = jnp.maximum(jnp.sum(msel, axis=-1, keepdims=True), 1.0)
    hid_doc = jnp.tanh(mm(ssum * pl.reciprocal(scnt, approx=True),
                          wse_ref, bse_ref))                           # (B, D)

    # --------------- initial decoder state + attention (idx_s == 0) ----------
    bos_sent = jnp.broadcast_to(emb_ref[4:5, :].astype(f32), (B, D))   # emb([[4]]*B)
    x0_word = jnp.broadcast_to(emb_ref[2:3, :].astype(f32), (B, D))    # emb([[2]]*B)

    # TODO(synk): `attn` is an injected submodule in the reference; stand-in =
    # prior-weighted dot-product attention over [hid_sent, zero sentinel].  The
    # uniform f_prev prior is a constant score shift and cancels in the softmax
    # (dropped analytically); padded sentences are masked in the scores.
    qp = mm(bos_sent, wa_ref)                                          # (B, D)
    scores = lax.dot_general(qp.astype(bf16), hid_flat.astype(bf16),
                             (((1,), (1,)), ((), ())),
                             preferred_element_type=f32)               # (B, B*Ss)
    scores = jnp.where(msel > 0.0, scores, -1e30)
    m_att = jnp.maximum(jnp.max(scores, axis=-1, keepdims=True), 0.0)  # sentinel=0
    e_att = jnp.exp(scores - m_att)
    denom = jnp.sum(e_att, axis=-1, keepdims=True) + jnp.exp(-m_att)   # + sentinel
    probs = e_att * pl.reciprocal(denom, approx=True)
    attn_sent = jnp.dot(probs, hid_flat, preferred_element_type=f32)   # (B, D)

    # iota constants hoisted out of both loops.
    lane = lax.broadcasted_iota(jnp.int32, (B, V), 1)
    rowc = lax.broadcasted_iota(jnp.int32, (B, 1), 0)
    onehot_pad = (lane == 0).astype(f32)                               # PAD row

    # --------------------------- sentence decode loop ------------------------
    def sentence_step(idx_s, carry):
        dec_out_sent, dec_hid_sent, total_loss = carry
        # s_decoder GRU: x = [dec_out_sent, attn_sent]; one fused matmul.
        h_sent = gru_cell(
            jnp.concatenate([dec_out_sent, attn_sent, dec_hid_sent], axis=-1),
            dec_hid_sent, ws_ref, bs_ref)
        base = idx_s * (Lt * B)

        def word_step(idx_w, wcar):
            h_w, x_w, mask_hold, pool_sum, mask_sum, loss_acc, cont = wcar
            # w_decoder GRU (one fused matmul) + classifier.
            h_new = gru_cell(jnp.concatenate([x_w, h_w], axis=-1),
                             h_w, ww_ref, bw_ref)
            logits = mm(h_new, wc_ref, bc_ref)                         # (B, V)
            m = jnp.max(logits, axis=-1, keepdims=True)                # (B, 1)
            lse = m + jnp.log(jnp.sum(jnp.exp(logits - m),
                                      axis=-1, keepdims=True))
            # NLLLoss(ignore_index=0, reduction='mean'): targets read as SMEM
            # scalars; one-hot / valid built from iota compares, no (B,V) logp.
            off = base + idx_w * B
            tcol = jnp.zeros((B, 1), jnp.int32)
            nvalid = jnp.zeros((), f32)
            for b in range(B):                        # B is small & static
                tb = tgt_ref[off + b]
                tcol = jnp.where(rowc == b, tb, tcol)
                nvalid = nvalid + (tb != 0).astype(f32)
            valid_col = (tcol != 0).astype(f32)                        # (B, 1)
            tgt_oh = ((lane == tcol) & (tcol != 0)).astype(f32)        # (B, V)
            picked_sum = jnp.sum(logits * tgt_oh)                      # scalar
            lse_sum = jnp.sum(lse * valid_col)                         # scalar
            # TODO(synk): max(nvalid, 1) differs from PyTorch NLLLoss (nan) only
            # when every target is ignore_index; never hit with this padding.
            step_loss = (lse_sum - picked_sum) / jnp.maximum(nvalid, 1.0)
            loss_acc = loss_acc + step_loss * cont     # loss added before break
            # greedy top-1 (first max; shift-invariant -> reuse logits & m).
            amax = jnp.min(jnp.where(logits >= m, lane, V),
                           axis=-1, keepdims=True)                     # (B,1) i32
            onehot_top = (lane == amax).astype(f32)
            gen_oh = mask_hold * onehot_top + (1.0 - mask_hold) * onehot_pad
            # TODO(synk): at production vocab sizes replace this one-hot @ E
            # matmul with an SMEM argmax scalar + row gather from emb_ref.
            gen_emb = mm(gen_oh, emb_ref)                              # (B, D)
            # masked mean-pool accumulation of the generated sentence.
            pool_sum = pool_sum + mask_hold * gen_emb
            mask_sum = mask_sum + mask_hold
            # EOS bookkeeping (matches PyTorch: generate_word = argmax*mask_hold;
            # break iff ALL rows emit EOS while still active).
            is_eos = mask_hold * (amax == 3).astype(f32)
            all_eos = (jnp.sum(is_eos) >= (B - 0.5)).astype(f32)
            cont = cont * (1.0 - all_eos)
            mask_hold = mask_hold * (1.0 - is_eos)
            return (h_new, gen_emb, mask_hold, pool_sum, mask_sum, loss_acc, cont)

        wc0 = (h_sent, x0_word, jnp.ones((B, 1), f32), jnp.zeros((B, D), f32),
               jnp.zeros((B, 1), f32), jnp.zeros((), f32), jnp.ones((), f32))
        (_, _, _, pool_sum, mask_sum, sent_loss, _) = lax.fori_loop(
            0, Lt, word_step, wc0, unroll=True if Lt <= 8 else 4)

        # dec_out_sent for the next sentence = w_encoder(generated sentence).
        pooled = pool_sum * pl.reciprocal(jnp.maximum(mask_sum, 1.0), approx=True)
        dec_out_next = jnp.tanh(mm(pooled, wwe_ref, bwe_ref))
        return (dec_out_next, h_sent, total_loss + sent_loss)

    carry0 = (bos_sent, hid_doc, jnp.zeros((), f32))
    _, _, total_loss = lax.fori_loop(0, Nt, sentence_step, carry0)
    loss_ref[...] = jnp.zeros(loss_ref.shape, loss_ref.dtype) + total_loss


# -------------------------------- parameters ----------------------------------

def init_params(key, vocab=VOCAB, d=D_MODEL):
    ks = jax.random.split(key, 9)
    s = 0.1
    nrm = lambda k, shape: jax.random.normal(k, shape, jnp.float32) * s
    z = lambda shape: jnp.zeros(shape, jnp.float32)
    bf = jnp.bfloat16

    def pack_gru(Wx, Wh, bx, bh):
        # PyTorch GRUCell, gate order (r|z|n):
        #   r = s(x Wx_r + h Wh_r + b_r); z = s(x Wx_z + h Wh_z + b_z)
        #   n = tanh(x Wx_n + b_xn + r * (h Wh_n + b_hn)); h' = (1-z) n + z h
        # Packed for ONE fused matmul [x, h] @ W with gate column blocks:
        #   [ r_x | z_x | n_x | 0   ]
        #   [ r_h | z_h | 0   | n_h ]
        din, h = Wx.shape[0], Wh.shape[0]
        W = jnp.zeros((din + h, 4 * h), jnp.float32)
        W = W.at[:din, 0:h].set(Wx[:, 0:h])
        W = W.at[din:, 0:h].set(Wh[:, 0:h])
        W = W.at[:din, h:2 * h].set(Wx[:, h:2 * h])
        W = W.at[din:, h:2 * h].set(Wh[:, h:2 * h])
        W = W.at[:din, 2 * h:3 * h].set(Wx[:, 2 * h:3 * h])
        W = W.at[din:, 3 * h:4 * h].set(Wh[:, 2 * h:3 * h])
        b = jnp.concatenate([bx[:, 0:h] + bh[:, 0:h],
                             bx[:, h:2 * h] + bh[:, h:2 * h],
                             bx[:, 2 * h:3 * h], bh[:, 2 * h:3 * h]], axis=-1)
        return W.astype(bf), b

    E = nrm(ks[0], (vocab, d))
    Ws, bs = pack_gru(nrm(ks[4], (2 * d, 3 * d)), nrm(ks[5], (d, 3 * d)),
                      z((1, 3 * d)), z((1, 3 * d)))                    # s_decoder
    Ww, bw = pack_gru(nrm(ks[6], (d, 3 * d)), nrm(ks[7], (d, 3 * d)),
                      z((1, 3 * d)), z((1, 3 * d)))                    # w_decoder
    # TODO(synk): `pp` (positional preprocessing) is unused (san_flag=False).
    return dict(
        E=E, E_bf=E.astype(bf),                                        # embeddings
        W_we=nrm(ks[1], (d, d)).astype(bf), b_we=z((1, d)),            # w_encoder
        W_se=nrm(ks[2], (d, d)).astype(bf), b_se=z((1, d)),            # s_encoder
        Wa=nrm(ks[3], (d, d)).astype(bf),                              # attn
        Ws=Ws, bs=bs, Ww=Ww, bw=bw,                                    # GRUs
        Wc=nrm(ks[8], (d, vocab)).astype(bf), bc=z((1, vocab)),        # classifier
    )


# ---------------------------------- forward ------------------------------------

def forward(params, srcs, src_mask_w, src_mask_s,
            tgt_seqs, tgt_mask_w, tgt_mask_s):
    # Deterministic eval-mode path of decode() (use_teacher_forcing = False).
    # TODO(synk): the stochastic teacher-forcing branch (random.random()) has
    # no deterministic Pallas equivalent and is not executed here.
    B, Ss, Ls = srcs.shape
    _, Nt, Lt = tgt_seqs.shape
    V, D = params["E"].shape
    f32 = jnp.float32

    # Host-side prep: one embedding gather plus two tiny block-diagonal mask
    # matrices that turn the masked mean-pools / attention into plain MXU dots.
    wemb = params["E_bf"][srcs.reshape(B * Ss * Ls)]                   # (B*Ss*Ls, D)
    mw = src_mask_w.reshape(B * Ss, Ls).astype(f32)
    wsel = (jnp.eye(B * Ss, dtype=f32)[:, :, None] * mw[None, :, :]
            ).reshape(B * Ss, B * Ss * Ls).astype(jnp.bfloat16)        # (B*Ss, B*Ss*Ls)
    ms = src_mask_s.astype(f32)
    msel = (jnp.eye(B, dtype=f32)[:, :, None] * ms[None, :, :]
            ).reshape(B, B * Ss)                                       # (B, B*Ss)
    tgt_flat = jnp.transpose(tgt_seqs, (1, 2, 0)).reshape(-1).astype(jnp.int32)

    kernel = functools.partial(_san_forward_kernel, n_tgt_sent=Nt, tgt_len=Lt)
    vm = pl.BlockSpec(memory_space=pltpu.MemorySpace.VMEM)
    sm = pl.BlockSpec(memory_space=pltpu.MemorySpace.SMEM)

    loss_vec = pl.pallas_call(
        kernel,
        out_shape=jax.ShapeDtypeStruct((1, 128), f32),
        in_specs=[vm, vm, vm, sm] + [vm] * 12,
        out_specs=pl.BlockSpec(memory_space=pltpu.MemorySpace.VMEM),
    )(wemb, wsel, msel, tgt_flat,
      params["E_bf"], params["Wa"],
      params["W_we"], params["b_we"], params["W_se"], params["b_se"],
      params["Ws"], params["bs"], params["Ww"], params["bw"],
      params["Wc"], params["bc"])
    return loss_vec[0, 0]


# ------------------------------------ main --------------------------------------

if __name__ == "__main__":
    key = jax.random.PRNGKey(0)
    kp, k1, k2 = jax.random.split(key, 3)
    params = init_params(kp)

    B, n_sent, seq_len = 2, 3, 6          # source: batch x sentences x words
    n_sent_t, seq_len_t = 2, 4            # target
    srcs = jax.random.randint(k1, (B, n_sent, seq_len), 1, VOCAB, jnp.int32)
    src_mask_w = jnp.ones((B, n_sent, seq_len), jnp.float32)
    src_mask_s = jnp.ones((B, n_sent), jnp.float32)
    tgt_seqs = jax.random.randint(k2, (B, n_sent_t, seq_len_t), 1, VOCAB, jnp.int32)
    tgt_mask_w = jnp.ones((B, n_sent_t, seq_len_t), jnp.float32)
    tgt_mask_s = jnp.ones((B, n_sent_t), jnp.float32)

    loss_fn = jax.jit(forward)
    loss = jax.block_until_ready(loss_fn(params, srcs, src_mask_w, src_mask_s,
                                         tgt_seqs, tgt_mask_w, tgt_mask_s))
    assert jnp.isfinite(loss), "loss is not finite"
    print("KERNEL_OK")
</pallas_src>

<mosaic_0001>
module attributes {stable_mosaic.version = 11 : i64} {
  func.func @_san_forward_kernel(%arg0: memref<36x128xbf16, #tpu.memory_space<vmem>>, %arg1: memref<6x36xbf16, #tpu.memory_space<vmem>>, %arg2: memref<2x6xf32, #tpu.memory_space<vmem>>, %arg3: memref<16xi32, #tpu.memory_space<smem>>, %arg4: memref<128x128xbf16, #tpu.memory_space<vmem>>, %arg5: memref<128x128xbf16, #tpu.memory_space<vmem>>, %arg6: memref<128x128xbf16, #tpu.memory_space<vmem>>, %arg7: memref<1x128xf32, #tpu.memory_space<vmem>>, %arg8: memref<128x128xbf16, #tpu.memory_space<vmem>>, %arg9: memref<1x128xf32, #tpu.memory_space<vmem>>, %arg10: memref<384x512xbf16, #tpu.memory_space<vmem>>, %arg11: memref<1x512xf32, #tpu.memory_space<vmem>>, %arg12: memref<256x512xbf16, #tpu.memory_space<vmem>>, %arg13: memref<1x512xf32, #tpu.memory_space<vmem>>, %arg14: memref<128x128xbf16, #tpu.memory_space<vmem>>, %arg15: memref<1x128xf32, #tpu.memory_space<vmem>>, %arg16: memref<1x128xf32, #tpu.memory_space<vmem>>) attributes {dimension_semantics = [], scalar_prefetch = 0 : i64, scratch_operands = 0 : i64, tpu.core_type = #tpu.core_type<tc>} {
    %c0 = arith.constant 0 : index
    %c0_0 = arith.constant 0 : index
    %0 = vector.load %arg1[%c0, %c0_0] : memref<6x36xbf16, #tpu.memory_space<vmem>>, vector<6x36xbf16>
    %c0_1 = arith.constant 0 : index
    %c0_2 = arith.constant 0 : index
    %1 = vector.load %arg0[%c0_1, %c0_2] : memref<36x128xbf16, #tpu.memory_space<vmem>>, vector<36x128xbf16>
    %cst = arith.constant dense<0.000000e+00> : vector<6x128xf32>
    %2 = tpu.matmul %0, %1, %cst {dimension_numbers = #tpu.dot_dimension_numbers<[1], [0], [0], [1], [0, 0, 1, 1], [], []>} : vector<6x36xbf16>, vector<36x128xbf16>, vector<6x128xf32> -> vector<6x128xf32>
    %3 = arith.extf %0 : vector<6x36xbf16> to vector<6x36xf32>
    %cst_3 = arith.constant dense<0.000000e+00> : vector<6xf32>
    %4 = vector.multi_reduction <add>, %3, %cst_3 [1] : vector<6x36xf32> to vector<6xf32>
    %5 = vector.shape_cast %4 : vector<6xf32> to vector<6x1xf32>
    %cst_4 = arith.constant 1.000000e+00 : f32
    %6 = vector.broadcast %cst_4 : f32 to vector<6x1xf32>
    %7 = arith.maximumf %5, %6 : vector<6x1xf32>
    %8 = tpu.reciprocal %7 {approx = true} : vector<6x1xf32> -> vector<6x1xf32>
    %9 = vector.broadcast %8 : vector<6x1xf32> to vector<6x128xf32>
    %10 = arith.mulf %2, %9 : vector<6x128xf32>
    %11 = arith.truncf %10 : vector<6x128xf32> to vector<6x128xbf16>
    %c0_5 = arith.constant 0 : index
    %c0_6 = arith.constant 0 : index
    %12 = vector.load %arg6[%c0_5, %c0_6] : memref<128x128xbf16, #tpu.memory_space<vmem>>, vector<128x128xbf16>
    %cst_7 = arith.constant dense<0.000000e+00> : vector<6x128xf32>
    %13 = tpu.matmul %11, %12, %cst_7 {dimension_numbers = #tpu.dot_dimension_numbers<[1], [0], [0], [1], [0, 0, 1, 1], [], []>} : vector<6x128xbf16>, vector<128x128xbf16>, vector<6x128xf32> -> vector<6x128xf32>
    %c0_8 = arith.constant 0 : index
    %c0_9 = arith.constant 0 : index
    %14 = vector.load %arg7[%c0_8, %c0_9] : memref<1x128xf32, #tpu.memory_space<vmem>>, vector<1x128xf32>
    %15 = vector.broadcast %14 : vector<1x128xf32> to vector<6x128xf32>
    %16 = arith.addf %13, %15 : vector<6x128xf32>
    %17 = math.tanh %16 : vector<6x128xf32>
    %c0_10 = arith.constant 0 : index
    %c0_11 = arith.constant 0 : index
    %18 = vector.load %arg2[%c0_10, %c0_11] : memref<2x6xf32, #tpu.memory_space<vmem>>, vector<2x6xf32>
    %cst_12 = arith.constant dense<0.000000e+00> : vector<2x128xf32>
    %19 = tpu.matmul %18, %17, %cst_12 {dimension_numbers = #tpu.dot_dimension_numbers<[1], [0], [0], [1], [0, 0, 1, 1], [], []>} : vector<2x6xf32>, vector<6x128xf32>, vector<2x128xf32> -> vector<2x128xf32>
    %cst_13 = arith.constant dense<0.000000e+00> : vector<2xf32>
    %20 = vector.multi_reduction <add>, %18, %cst_13 [1] : vector<2x6xf32> to vector<2xf32>
    %21 = vector.shape_cast %20 : vector<2xf32> to vector<2x1xf32>
    %cst_14 = arith.constant 1.000000e+00 : f32
    %22 = vector.broadcast %cst_14 : f32 to vector<2x1xf32>
    %23 = arith.maximumf %21, %22 : vector<2x1xf32>
    %24 = tpu.reciprocal %23 {approx = true} : vector<2x1xf32> -> vector<2x1xf32>
    %25 = vector.broadcast %24 : vector<2x1xf32> to vector<2x128xf32>
    %26 = arith.mulf %19, %25 : vector<2x128xf32>
    %27 = arith.truncf %26 : vector<2x128xf32> to vector<2x128xbf16>
    %c0_15 = arith.constant 0 : index
    %c0_16 = arith.constant 0 : index
    %28 = vector.load %arg8[%c0_15, %c0_16] : memref<128x128xbf16, #tpu.memory_space<vmem>>, vector<128x128xbf16>
    %cst_17 = arith.constant dense<0.000000e+00> : vector<2x128xf32>
    %29 = tpu.matmul %27, %28, %cst_17 {dimension_numbers = #tpu.dot_dimension_numbers<[1], [0], [0], [1], [0, 0, 1, 1], [], []>} : vector<2x128xbf16>, vector<128x128xbf16>, vector<2x128xf32> -> vector<2x128xf32>
    %c0_18 = arith.constant 0 : index
    %c0_19 = arith.constant 0 : index
    %30 = vector.load %arg9[%c0_18, %c0_19] : memref<1x128xf32, #tpu.memory_space<vmem>>, vector<1x128xf32>
    %31 = vector.broadcast %30 : vector<1x128xf32> to vector<2x128xf32>
    %32 = arith.addf %29, %31 : vector<2x128xf32>
    %33 = math.tanh %32 : vector<2x128xf32>
    %c4 = arith.constant 4 : index
    %c0_20 = arith.constant 0 : index
    %34 = vector.load %arg4[%c4, %c0_20] : memref<128x128xbf16, #tpu.memory_space<vmem>>, vector<1x128xbf16>
    %35 = arith.extf %34 : vector<1x128xbf16> to vector<1x128xf32>
    %36 = vector.shape_cast %35 : vector<1x128xf32> to vector<1x128xf32>
    %37 = vector.broadcast %36 : vector<1x128xf32> to vector<2x128xf32>
    %c2 = arith.constant 2 : index
    %c0_21 = arith.constant 0 : index
    %38 = vector.load %arg4[%c2, %c0_21] : memref<128x128xbf16, #tpu.memory_space<vmem>>, vector<1x128xbf16>
    %39 = arith.extf %38 : vector<1x128xbf16> to vector<1x128xf32>
    %40 = vector.shape_cast %39 : vector<1x128xf32> to vector<1x128xf32>
    %41 = vector.broadcast %40 : vector<1x128xf32> to vector<2x128xf32>
    %42 = arith.truncf %37 : vector<2x128xf32> to vector<2x128xbf16>
    %c0_22 = arith.constant 0 : index
    %c0_23 = arith.constant 0 : index
    %43 = vector.load %arg5[%c0_22, %c0_23] : memref<128x128xbf16, #tpu.memory_space<vmem>>, vector<128x128xbf16>
    %cst_24 = arith.constant dense<0.000000e+00> : vector<2x128xf32>
    %44 = tpu.matmul %42, %43, %cst_24 {dimension_numbers = #tpu.dot_dimension_numbers<[1], [0], [0], [1], [0, 0, 1, 1], [], []>} : vector<2x128xbf16>, vector<128x128xbf16>, vector<2x128xf32> -> vector<2x128xf32>
    %45 = arith.truncf %44 : vector<2x128xf32> to vector<2x128xbf16>
    %46 = arith.truncf %17 : vector<6x128xf32> to vector<6x128xbf16>
    %cst_25 = arith.constant dense<0.000000e+00> : vector<2x6xf32>
    %47 = tpu.matmul %45, %46, %cst_25 {dimension_numbers = #tpu.dot_dimension_numbers<[1], [1], [0], [0], [0, 0, 1, 0], [], []>} : vector<2x128xbf16>, vector<6x128xbf16>, vector<2x6xf32> -> vector<2x6xf32>
    %cst_26 = arith.constant 0.000000e+00 : f32
    %48 = vector.broadcast %cst_26 : f32 to vector<2x6xf32>
    %49 = arith.cmpf ogt, %18, %48 : vector<2x6xf32>
    %cst_27 = arith.constant -1.000000e+30 : f32
    %50 = vector.broadcast %cst_27 : f32 to vector<2x6xf32>
    %51 = arith.select %49, %47, %50 : vector<2x6xi1>, vector<2x6xf32>
    %cst_28 = arith.constant dense<0xFF800000> : vector<2xf32>
    %52 = vector.multi_reduction <maximumf>, %51, %cst_28 [1] : vector<2x6xf32> to vector<2xf32>
    %53 = vector.shape_cast %52 : vector<2xf32> to vector<2x1xf32>
    %cst_29 = arith.constant 0.000000e+00 : f32
    %54 = vector.broadcast %cst_29 : f32 to vector<2x1xf32>
    %55 = arith.maximumf %53, %54 : vector<2x1xf32>
    %56 = vector.broadcast %55 : vector<2x1xf32> to vector<2x6xf32>
    %57 = arith.subf %51, %56 : vector<2x6xf32>
    %58 = math.exp %57 : vector<2x6xf32>
    %cst_30 = arith.constant dense<0.000000e+00> : vector<2xf32>
    %59 = vector.multi_reduction <add>, %58, %cst_30 [1] : vector<2x6xf32> to vector<2xf32>
    %60 = vector.shape_cast %59 : vector<2xf32> to vector<2x1xf32>
    %cst_31 = arith.constant 0.000000e+00 : f32
    %61 = vector.broadcast %cst_31 : f32 to vector<2x1xf32>
    %62 = arith.subf %61, %55 : vector<2x1xf32>
    %63 = math.exp %62 : vector<2x1xf32>
    %64 = arith.addf %60, %63 : vector<2x1xf32>
    %65 = tpu.reciprocal %64 {approx = true} : vector<2x1xf32> -> vector<2x1xf32>
    %66 = vector.broadcast %65 : vector<2x1xf32> to vector<2x6xf32>
    %67 = arith.mulf %58, %66 : vector<2x6xf32>
    %cst_32 = arith.constant dense<0.000000e+00> : vector<2x128xf32>
    %68 = tpu.matmul %67, %17, %cst_32 {dimension_numbers = #tpu.dot_dimension_numbers<[1], [0], [0], [1], [0, 0, 1, 1], [], []>} : vector<2x6xf32>, vector<6x128xf32>, vector<2x128xf32> -> vector<2x128xf32>
    %69 = tpu.iota {dimensions = array<i32: 1>} : vector<2x128xi32>
    %70 = tpu.iota {dimensions = array<i32: 0>} : vector<2x1xi32>
    %c0_i32 = arith.constant 0 : i32
    %71 = vector.broadcast %c0_i32 : i32 to vector<2x128xi32>
    %72 = arith.cmpi eq, %69, %71 : vector<2x128xi32>
    %73 = arith.extui %72 : vector<2x128xi1> to vector<2x128xi32>
    %74 = arith.sitofp %73 : vector<2x128xi32> to vector<2x128xf32>
    %cst_33 = arith.constant 0.000000e+00 : f32
    %c0_i32_34 = arith.constant 0 : i32
    %c2_i32 = arith.constant 2 : i32
    %75 = arith.addi %c0_i32_34, %c2_i32 : i32
    %c1_i32 = arith.constant 1 : i32
    %76:3 = scf.for %arg17 = %c0_i32_34 to %75 step %c1_i32 iter_args(%arg18 = %37, %arg19 = %33, %arg20 = %cst_33) -> (vector<2x128xf32>, vector<2x128xf32>, f32)  : i32 {
      %81 = tpu.concatenate %arg18, %68, %arg19 in 1 : vector<2x128xf32>, vector<2x128xf32>, vector<2x128xf32> -> vector<2x384xf32>
      %82 = arith.truncf %81 : vector<2x384xf32> to vector<2x384xbf16>
      %c0_39 = arith.constant 0 : index
      %c0_40 = arith.constant 0 : index
      %83 = vector.load %arg10[%c0_39, %c0_40] : memref<384x512xbf16, #tpu.memory_space<vmem>>, vector<384x512xbf16>
      %cst_41 = arith.constant dense<0.000000e+00> : vector<2x512xf32>
      %84 = tpu.matmul %82, %83, %cst_41 {dimension_numbers = #tpu.dot_dimension_numbers<[1], [0], [0], [1], [0, 0, 1, 1], [], []>} : vector<2x384xbf16>, vector<384x512xbf16>, vector<2x512xf32> -> vector<2x512xf32>
      %c0_42 = arith.constant 0 : index
      %c0_43 = arith.constant 0 : index
      %85 = vector.load %arg11[%c0_42, %c0_43] : memref<1x512xf32, #tpu.memory_space<vmem>>, vector<1x512xf32>
      %86 = vector.broadcast %85 : vector<1x512xf32> to vector<2x512xf32>
      %87 = arith.addf %84, %86 : vector<2x512xf32>
      %88 = vector.extract_strided_slice %87 {offsets = [0, 0], sizes = [2, 128], strides = [1, 1]} : vector<2x512xf32> to vector<2x128xf32>
      %89 = arith.negf %88 : vector<2x128xf32>
      %90 = math.exp %89 : vector<2x128xf32>
      %cst_44 = arith.constant 1.000000e+00 : f32
      %91 = vector.broadcast %cst_44 : f32 to vector<2x128xf32>
      %92 = arith.addf %91, %90 : vector<2x128xf32>
      %93 = arith.divf %91, %92 : vector<2x128xf32>
      %94 = vector.extract_strided_slice %87 {offsets = [0, 128], sizes = [2, 128], strides = [1, 1]} : vector<2x512xf32> to vector<2x128xf32>
      %95 = arith.negf %94 : vector<2x128xf32>
      %96 = math.exp %95 : vector<2x128xf32>
      %cst_45 = arith.constant 1.000000e+00 : f32
      %97 = vector.broadcast %cst_45 : f32 to vector<2x128xf32>
      %98 = arith.addf %97, %96 : vector<2x128xf32>
      %99 = arith.divf %97, %98 : vector<2x128xf32>
      %100 = vector.extract_strided_slice %87 {offsets = [0, 256], sizes = [2, 128], strides = [1, 1]} : vector<2x512xf32> to vector<2x128xf32>
      %101 = vector.extract_strided_slice %87 {offsets = [0, 384], sizes = [2, 128], strides = [1, 1]} : vector<2x512xf32> to vector<2x128xf32>
      %102 = arith.mulf %93, %101 : vector<2x128xf32>
      %103 = arith.addf %100, %102 : vector<2x128xf32>
      %104 = math.tanh %103 : vector<2x128xf32>
      %cst_46 = arith.constant 1.000000e+00 : f32
      %105 = vector.broadcast %cst_46 : f32 to vector<2x128xf32>
      %106 = arith.subf %105, %99 : vector<2x128xf32>
      %107 = arith.mulf %106, %104 : vector<2x128xf32>
      %108 = arith.mulf %99, %arg19 : vector<2x128xf32>
      %109 = arith.addf %107, %108 : vector<2x128xf32>
      %c8_i32 = arith.constant 8 : i32
      %110 = arith.muli %arg17, %c8_i32 : i32
      %cst_47 = arith.constant 1.000000e+00 : f32
      %111 = vector.broadcast %cst_47 : f32 to vector<2x1xf32>
      %cst_48 = arith.constant 0.000000e+00 : f32
      %112 = vector.broadcast %cst_48 : f32 to vector<2x128xf32>
      %cst_49 = arith.constant 0.000000e+00 : f32
      %113 = vector.broadcast %cst_49 : f32 to vector<2x1xf32>
      %cst_50 = arith.constant 0.000000e+00 : f32
      %cst_51 = arith.constant 1.000000e+00 : f32
      %c0_i32_52 = arith.constant 0 : i32
      %114 = tpu.concatenate %41, %109 in 1 : vector<2x128xf32>, vector<2x128xf32> -> vector<2x256xf32>
      %115 = arith.truncf %114 : vector<2x256xf32> to vector<2x256xbf16>
      %c0_53 = arith.constant 0 : index
      %c0_54 = arith.constant 0 : index
      %116 = vector.load %arg12[%c0_53, %c0_54] : memref<256x512xbf16, #tpu.memory_space<vmem>>, vector<256x512xbf16>
      %cst_55 = arith.constant dense<0.000000e+00> : vector<2x512xf32>
      %117 = tpu.matmul %115, %116, %cst_55 {dimension_numbers = #tpu.dot_dimension_numbers<[1], [0], [0], [1], [0, 0, 1, 1], [], []>} : vector<2x256xbf16>, vector<256x512xbf16>, vector<2x512xf32> -> vector<2x512xf32>
      %c0_56 = arith.constant 0 : index
      %c0_57 = arith.constant 0 : index
      %118 = vector.load %arg13[%c0_56, %c0_57] : memref<1x512xf32, #tpu.memory_space<vmem>>, vector<1x512xf32>
      %119 = vector.broadcast %118 : vector<1x512xf32> to vector<2x512xf32>
      %120 = arith.addf %117, %119 : vector<2x512xf32>
      %121 = vector.extract_strided_slice %120 {offsets = [0, 0], sizes = [2, 128], strides = [1, 1]} : vector<2x512xf32> to vector<2x128xf32>
      %122 = arith.negf %121 : vector<2x128xf32>
      %123 = math.exp %122 : vector<2x128xf32>
      %cst_58 = arith.constant 1.000000e+00 : f32
      %124 = vector.broadcast %cst_58 : f32 to vector<2x128xf32>
      %125 = arith.addf %124, %123 : vector<2x128xf32>
      %126 = arith.divf %124, %125 : vector<2x128xf32>
      %127 = vector.extract_strided_slice %120 {offsets = [0, 128], sizes = [2, 128], strides = [1, 1]} : vector<2x512xf32> to vector<2x128xf32>
      %128 = arith.negf %127 : vector<2x128xf32>
      %129 = math.exp %128 : vector<2x128xf32>
      %cst_59 = arith.constant 1.000000e+00 : f32
      %130 = vector.broadcast %cst_59 : f32 to vector<2x128xf32>
      %131 = arith.addf %130, %129 : vector<2x128xf32>
      %132 = arith.divf %130, %131 : vector<2x128xf32>
      %133 = vector.extract_strided_slice %120 {offsets = [0, 256], sizes = [2, 128], strides = [1, 1]} : vector<2x512xf32> to vector<2x128xf32>
      %134 = vector.extract_strided_slice %120 {offsets = [0, 384], sizes = [2, 128], strides = [1, 1]} : vector<2x512xf32> to vector<2x128xf32>
      %135 = arith.mulf %126, %134 : vector<2x128xf32>
      %136 = arith.addf %133, %135 : vector<2x128xf32>
      %137 = math.tanh %136 : vector<2x128xf32>
      %cst_60 = arith.constant 1.000000e+00 : f32
      %138 = vector.broadcast %cst_60 : f32 to vector<2x128xf32>
      %139 = arith.subf %138, %132 : vector<2x128xf32>
      %140 = arith.mulf %139, %137 : vector<2x128xf32>
      %141 = arith.mulf %132, %109 : vector<2x128xf32>
      %142 = arith.addf %140, %141 : vector<2x128xf32>
      %143 = arith.truncf %142 : vector<2x128xf32> to vector<2x128xbf16>
      %c0_61 = arith.constant 0 : index
      %c0_62 = arith.constant 0 : index
      %144 = vector.load %arg14[%c0_61, %c0_62] : memref<128x128xbf16, #tpu.memory_space<vmem>>, vector<128x128xbf16>
      %cst_63 = arith.constant dense<0.000000e+00> : vector<2x128xf32>
      %145 = tpu.matmul %143, %144, %cst_63 {dimension_numbers = #tpu.dot_dimension_numbers<[1], [0], [0], [1], [0, 0, 1, 1], [], []>} : vector<2x128xbf16>, vector<128x128xbf16>, vector<2x128xf32> -> vector<2x128xf32>
      %c0_64 = arith.constant 0 : index
      %c0_65 = arith.constant 0 : index
      %146 = vector.load %arg15[%c0_64, %c0_65] : memref<1x128xf32, #tpu.memory_space<vmem>>, vector<1x128xf32>
      %147 = vector.broadcast %146 : vector<1x128xf32> to vector<2x128xf32>
      %148 = arith.addf %145, %147 : vector<2x128xf32>
      %cst_66 = arith.constant dense<0xFF800000> : vector<2xf32>
      %149 = vector.multi_reduction <maximumf>, %148, %cst_66 [1] : vector<2x128xf32> to vector<2xf32>
      %150 = vector.shape_cast %149 : vector<2xf32> to vector<2x1xf32>
      %151 = vector.broadcast %150 : vector<2x1xf32> to vector<2x128xf32>
      %152 = arith.subf %148, %151 : vector<2x128xf32>
      %153 = math.exp %152 : vector<2x128xf32>
      %cst_67 = arith.constant dense<0.000000e+00> : vector<2xf32>
      %154 = vector.multi_reduction <add>, %153, %cst_67 [1] : vector<2x128xf32> to vector<2xf32>
      %155 = vector.shape_cast %154 : vector<2xf32> to vector<2x1xf32>
      %156 = math.log %155 : vector<2x1xf32>
      %157 = arith.addf %150, %156 : vector<2x1xf32>
      %c2_i32_68 = arith.constant 2 : i32
      %158 = arith.muli %c0_i32_52, %c2_i32_68 : i32
      %159 = arith.addi %110, %158 : i32
      %c0_i32_69 = arith.constant 0 : i32
      %160 = vector.broadcast %c0_i32_69 : i32 to vector<2x1xi32>
      %c0_i32_70 = arith.constant 0 : i32
      %161 = arith.addi %159, %c0_i32_70 : i32
      %162 = arith.index_cast %161 : i32 to index
      %163 = memref.load %arg3[%162] : memref<16xi32, #tpu.memory_space<smem>>
      %c0_i32_71 = arith.constant 0 : i32
      %164 = vector.broadcast %c0_i32_71 : i32 to vector<2x1xi32>
      %165 = arith.cmpi eq, %70, %164 : vector<2x1xi32>
      %166 = vector.broadcast %163 : i32 to vector<2x1xi32>
      %167 = arith.select %165, %166, %160 : vector<2x1xi1>, vector<2x1xi32>
      %c0_i32_72 = arith.constant 0 : i32
      %168 = arith.cmpi ne, %163, %c0_i32_72 : i32
      %169 = arith.extui %168 : i1 to i32
      %170 = arith.sitofp %169 : i32 to f32
      %cst_73 = arith.constant 0.000000e+00 : f32
      %171 = arith.addf %cst_73, %170 : f32
      %c1_i32_74 = arith.constant 1 : i32
      %172 = arith.addi %159, %c1_i32_74 : i32
      %173 = arith.index_cast %172 : i32 to index
      %174 = memref.load %arg3[%173] : memref<16xi32, #tpu.memory_space<smem>>
      %c1_i32_75 = arith.constant 1 : i32
      %175 = vector.broadcast %c1_i32_75 : i32 to vector<2x1xi32>
      %176 = arith.cmpi eq, %70, %175 : vector<2x1xi32>
      %177 = vector.broadcast %174 : i32 to vector<2x1xi32>
      %178 = arith.select %176, %177, %167 : vector<2x1xi1>, vector<2x1xi32>
      %c0_i32_76 = arith.constant 0 : i32
      %179 = arith.cmpi ne, %174, %c0_i32_76 : i32
      %180 = arith.extui %179 : i1 to i32
      %181 = arith.sitofp %180 : i32 to f32
      %182 = arith.addf %171, %181 : f32
      %c0_i32_77 = arith.constant 0 : i32
      %183 = vector.broadcast %c0_i32_77 : i32 to vector<2x1xi32>
      %184 = arith.cmpi ne, %178, %183 : vector<2x1xi32>
      %185 = arith.extui %184 : vector<2x1xi1> to vector<2x1xi32>
      %186 = arith.sitofp %185 : vector<2x1xi32> to vector<2x1xf32>
      %187 = vector.broadcast %178 : vector<2x1xi32> to vector<2x128xi32>
      %188 = arith.cmpi eq, %69, %187 : vector<2x128xi32>
      %c0_i32_78 = arith.constant 0 : i32
      %189 = vector.broadcast %c0_i32_78 : i32 to vector<2x1xi32>
      %190 = arith.cmpi ne, %178, %189 : vector<2x1xi32>
      %191 = vector.broadcast %190 : vector<2x1xi1> to vector<2x128xi1>
      %192 = arith.andi %188, %191 : vector<2x128xi1>
      %193 = arith.extui %192 : vector<2x128xi1> to vector<2x128xi32>
      %194 = arith.sitofp %193 : vector<2x128xi32> to vector<2x128xf32>
      %195 = arith.mulf %148, %194 : vector<2x128xf32>
      %196 = vector.shape_cast %195 : vector<2x128xf32> to vector<1x2x128xf32>
      %cst_79 = arith.constant dense<0.000000e+00> : vector<1xf32>
      %197 = vector.multi_reduction <add>, %196, %cst_79 [1, 2] : vector<1x2x128xf32> to vector<1xf32>
      %198 = vector.shape_cast %197 : vector<1xf32> to vector<1x1x1xf32>
      %199 = vector.extract %198[0, 0, 0] : f32 from vector<1x1x1xf32>
      %200 = arith.mulf %157, %186 : vector<2x1xf32>
      %201 = vector.shape_cast %200 : vector<2x1xf32> to vector<1x2x1xf32>
      %cst_80 = arith.constant dense<0.000000e+00> : vector<1xf32>
      %202 = vector.multi_reduction <add>, %201, %cst_80 [1, 2] : vector<1x2x1xf32> to vector<1xf32>
      %203 = vector.shape_cast %202 : vector<1xf32> to vector<1x1x1xf32>
      %204 = vector.extract %203[0, 0, 0] : f32 from vector<1x1x1xf32>
      %205 = arith.subf %204, %199 : f32
      %cst_81 = arith.constant 1.000000e+00 : f32
      %206 = arith.maximumf %182, %cst_81 : f32
      %207 = arith.divf %205, %206 : f32
      %208 = arith.mulf %207, %cst_51 : f32
      %209 = arith.addf %cst_50, %208 : f32
      %210 = vector.broadcast %150 : vector<2x1xf32> to vector<2x128xf32>
      %211 = arith.cmpf oge, %148, %210 : vector<2x128xf32>
      %c128_i32 = arith.constant 128 : i32
      %212 = vector.broadcast %c128_i32 : i32 to vector<2x128xi32>
      %213 = arith.select %211, %69, %212 : vector<2x128xi1>, vector<2x128xi32>
      %cst_82 = arith.constant dense<2147483647> : vector<2xi32>
      %214 = vector.multi_reduction <minsi>, %213, %cst_82 [1] : vector<2x128xi32> to vector<2xi32>
      %215 = vector.shape_cast %214 : vector<2xi32> to vector<2x1xi32>
      %216 = vector.broadcast %215 : vector<2x1xi32> to vector<2x128xi32>
      %217 = arith.cmpi eq, %69, %216 : vector<2x128xi32>
      %218 = arith.extui %217 : vector<2x128xi1> to vector<2x128xi32>
      %219 = arith.sitofp %218 : vector<2x128xi32> to vector<2x128xf32>
      %220 = vector.broadcast %111 : vector<2x1xf32> to vector<2x128xf32>
      %221 = arith.mulf %220, %219 : vector<2x128xf32>
      %cst_83 = arith.constant 1.000000e+00 : f32
      %222 = vector.broadcast %cst_83 : f32 to vector<2x1xf32>
      %223 = arith.subf %222, %111 : vector<2x1xf32>
      %224 = vector.broadcast %223 : vector<2x1xf32> to vector<2x128xf32>
      %225 = arith.mulf %224, %74 : vector<2x128xf32>
      %226 = arith.addf %221, %225 : vector<2x128xf32>
      %227 = arith.truncf %226 : vector<2x128xf32> to vector<2x128xbf16>
      %c0_84 = arith.constant 0 : index
      %c0_85 = arith.constant 0 : index
      %228 = vector.load %arg4[%c0_84, %c0_85] : memref<128x128xbf16, #tpu.memory_space<vmem>>, vector<128x128xbf16>
      %cst_86 = arith.constant dense<0.000000e+00> : vector<2x128xf32>
      %229 = tpu.matmul %227, %228, %cst_86 {dimension_numbers = #tpu.dot_dimension_numbers<[1], [0], [0], [1], [0, 0, 1, 1], [], []>} : vector<2x128xbf16>, vector<128x128xbf16>, vector<2x128xf32> -> vector<2x128xf32>
      %230 = vector.broadcast %111 : vector<2x1xf32> to vector<2x128xf32>
      %231 = arith.mulf %230, %229 : vector<2x128xf32>
      %232 = arith.addf %112, %231 : vector<2x128xf32>
      %233 = arith.addf %113, %111 : vector<2x1xf32>
      %c3_i32 = arith.constant 3 : i32
      %234 = vector.broadcast %c3_i32 : i32 to vector<2x1xi32>
      %235 = arith.cmpi eq, %215, %234 : vector<2x1xi32>
      %236 = arith.extui %235 : vector<2x1xi1> to vector<2x1xi32>
      %237 = arith.sitofp %236 : vector<2x1xi32> to vector<2x1xf32>
      %238 = arith.mulf %111, %237 : vector<2x1xf32>
      %239 = vector.shape_cast %238 : vector<2x1xf32> to vector<1x2x1xf32>
      %cst_87 = arith.constant dense<0.000000e+00> : vector<1xf32>
      %240 = vector.multi_reduction <add>, %239, %cst_87 [1, 2] : vector<1x2x1xf32> to vector<1xf32>
      %241 = vector.shape_cast %240 : vector<1xf32> to vector<1x1x1xf32>
      %242 = vector.extract %241[0, 0, 0] : f32 from vector<1x1x1xf32>
      %cst_88 = arith.constant 1.500000e+00 : f32
      %243 = arith.cmpf oge, %242, %cst_88 : f32
      %244 = arith.extui %243 : i1 to i32
      %245 = arith.sitofp %244 : i32 to f32
      %cst_89 = arith.constant 1.000000e+00 : f32
      %246 = arith.subf %cst_89, %245 : f32
      %247 = arith.mulf %cst_51, %246 : f32
      %cst_90 = arith.constant 1.000000e+00 : f32
      %248 = vector.broadcast %cst_90 : f32 to vector<2x1xf32>
      %249 = arith.subf %248, %238 : vector<2x1xf32>
      %250 = arith.mulf %111, %249 : vector<2x1xf32>
      %c1_i32_91 = arith.constant 1 : i32
      %251 = tpu.concatenate %229, %142 in 1 : vector<2x128xf32>, vector<2x128xf32> -> vector<2x256xf32>
      %252 = arith.truncf %251 : vector<2x256xf32> to vector<2x256xbf16>
      %c0_92 = arith.constant 0 : index
      %c0_93 = arith.constant 0 : index
      %253 = vector.load %arg12[%c0_92, %c0_93] : memref<256x512xbf16, #tpu.memory_space<vmem>>, vector<256x512xbf16>
      %cst_94 = arith.constant dense<0.000000e+00> : vector<2x512xf32>
      %254 = tpu.matmul %252, %253, %cst_94 {dimension_numbers = #tpu.dot_dimension_numbers<[1], [0], [0], [1], [0, 0, 1, 1], [], []>} : vector<2x256xbf16>, vector<256x512xbf16>, vector<2x512xf32> -> vector<2x512xf32>
      %c0_95 = arith.constant 0 : index
      %c0_96 = arith.constant 0 : index
      %255 = vector.load %arg13[%c0_95, %c0_96] : memref<1x512xf32, #tpu.memory_space<vmem>>, vector<1x512xf32>
      %256 = vector.broadcast %255 : vector<1x512xf32> to vector<2x512xf32>
      %257 = arith.addf %254, %256 : vector<2x512xf32>
      %258 = vector.extract_strided_slice %257 {offsets = [0, 0], sizes = [2, 128], strides = [1, 1]} : vector<2x512xf32> to vector<2x128xf32>
      %259 = arith.negf %258 : vector<2x128xf32>
      %260 = math.exp %259 : vector<2x128xf32>
      %cst_97 = arith.constant 1.000000e+00 : f32
      %261 = vector.broadcast %cst_97 : f32 to vector<2x128xf32>
      %262 = arith.addf %261, %260 : vector<2x128xf32>
      %263 = arith.divf %261, %262 : vector<2x128xf32>
      %264 = vector.extract_strided_slice %257 {offsets = [0, 128], sizes = [2, 128], strides = [1, 1]} : vector<2x512xf32> to vector<2x128xf32>
      %265 = arith.negf %264 : vector<2x128xf32>
      %266 = math.exp %265 : vector<2x128xf32>
      %cst_98 = arith.constant 1.000000e+00 : f32
      %267 = vector.broadcast %cst_98 : f32 to vector<2x128xf32>
      %268 = arith.addf %267, %266 : vector<2x128xf32>
      %269 = arith.divf %267, %268 : vector<2x128xf32>
      %270 = vector.extract_strided_slice %257 {offsets = [0, 256], sizes = [2, 128], strides = [1, 1]} : vector<2x512xf32> to vector<2x128xf32>
      %271 = vector.extract_strided_slice %257 {offsets = [0, 384], sizes = [2, 128], strides = [1, 1]} : vector<2x512xf32> to vector<2x128xf32>
      %272 = arith.mulf %263, %271 : vector<2x128xf32>
      %273 = arith.addf %270, %272 : vector<2x128xf32>
      %274 = math.tanh %273 : vector<2x128xf32>
      %cst_99 = arith.constant 1.000000e+00 : f32
      %275 = vector.broadcast %cst_99 : f32 to vector<2x128xf32>
      %276 = arith.subf %275, %269 : vector<2x128xf32>
      %277 = arith.mulf %276, %274 : vector<2x128xf32>
      %278 = arith.mulf %269, %142 : vector<2x128xf32>
      %279 = arith.addf %277, %278 : vector<2x128xf32>
      %280 = arith.truncf %279 : vector<2x128xf32> to vector<2x128xbf16>
      %c0_100 = arith.constant 0 : index
      %c0_101 = arith.constant 0 : index
      %281 = vector.load %arg14[%c0_100, %c0_101] : memref<128x128xbf16, #tpu.memory_space<vmem>>, vector<128x128xbf16>
      %cst_102 = arith.constant dense<0.000000e+00> : vector<2x128xf32>
      %282 = tpu.matmul %280, %281, %cst_102 {dimension_numbers = #tpu.dot_dimension_numbers<[1], [0], [0], [1], [0, 0, 1, 1], [], []>} : vector<2x128xbf16>, vector<128x128xbf16>, vector<2x128xf32> -> vector<2x128xf32>
      %c0_103 = arith.constant 0 : index
      %c0_104 = arith.constant 0 : index
      %283 = vector.load %arg15[%c0_103, %c0_104] : memref<1x128xf32, #tpu.memory_space<vmem>>, vector<1x128xf32>
      %284 = vector.broadcast %283 : vector<1x128xf32> to vector<2x128xf32>
      %285 = arith.addf %282, %284 : vector<2x128xf32>
      %cst_105 = arith.constant dense<0xFF800000> : vector<2xf32>
      %286 = vector.multi_reduction <maximumf>, %285, %cst_105 [1] : vector<2x128xf32> to vector<2xf32>
      %287 = vector.shape_cast %286 : vector<2xf32> to vector<2x1xf32>
      %288 = vector.broadcast %287 : vector<2x1xf32> to vector<2x128xf32>
      %289 = arith.subf %285, %288 : vector<2x128xf32>
      %290 = math.exp %289 : vector<2x128xf32>
      %cst_106 = arith.constant dense<0.000000e+00> : vector<2xf32>
      %291 = vector.multi_reduction <add>, %290, %cst_106 [1] : vector<2x128xf32> to vector<2xf32>
      %292 = vector.shape_cast %291 : vector<2xf32> to vector<2x1xf32>
      %293 = math.log %292 : vector<2x1xf32>
      %294 = arith.addf %287, %293 : vector<2x1xf32>
      %c2_i32_107 = arith.constant 2 : i32
      %295 = arith.muli %c1_i32_91, %c2_i32_107 : i32
      %296 = arith.addi %110, %295 : i32
      %c0_i32_108 = arith.constant 0 : i32
      %297 = vector.broadcast %c0_i32_108 : i32 to vector<2x1xi32>
      %c0_i32_109 = arith.constant 0 : i32
      %298 = arith.addi %296, %c0_i32_109 : i32
      %299 = arith.index_cast %298 : i32 to index
      %300 = memref.load %arg3[%299] : memref<16xi32, #tpu.memory_space<smem>>
      %c0_i32_110 = arith.constant 0 : i32
      %301 = vector.broadcast %c0_i32_110 : i32 to vector<2x1xi32>
      %302 = arith.cmpi eq, %70, %301 : vector<2x1xi32>
      %303 = vector.broadcast %300 : i32 to vector<2x1xi32>
      %304 = arith.select %302, %303, %297 : vector<2x1xi1>, vector<2x1xi32>
      %c0_i32_111 = arith.constant 0 : i32
      %305 = arith.cmpi ne, %300, %c0_i32_111 : i32
      %306 = arith.extui %305 : i1 to i32
      %307 = arith.sitofp %306 : i32 to f32
      %cst_112 = arith.constant 0.000000e+00 : f32
      %308 = arith.addf %cst_112, %307 : f32
      %c1_i32_113 = arith.constant 1 : i32
      %309 = arith.addi %296, %c1_i32_113 : i32
      %310 = arith.index_cast %309 : i32 to index
      %311 = memref.load %arg3[%310] : memref<16xi32, #tpu.memory_space<smem>>
      %c1_i32_114 = arith.constant 1 : i32
      %312 = vector.broadcast %c1_i32_114 : i32 to vector<2x1xi32>
      %313 = arith.cmpi eq, %70, %312 : vector<2x1xi32>
      %314 = vector.broadcast %311 : i32 to vector<2x1xi32>
      %315 = arith.select %313, %314, %304 : vector<2x1xi1>, vector<2x1xi32>
      %c0_i32_115 = arith.constant 0 : i32
      %316 = arith.cmpi ne, %311, %c0_i32_115 : i32
      %317 = arith.extui %316 : i1 to i32
      %318 = arith.sitofp %317 : i32 to f32
      %319 = arith.addf %308, %318 : f32
      %c0_i32_116 = arith.constant 0 : i32
      %320 = vector.broadcast %c0_i32_116 : i32 to vector<2x1xi32>
      %321 = arith.cmpi ne, %315, %320 : vector<2x1xi32>
      %322 = arith.extui %321 : vector<2x1xi1> to vector<2x1xi32>
      %323 = arith.sitofp %322 : vector<2x1xi32> to vector<2x1xf32>
      %324 = vector.broadcast %315 : vector<2x1xi32> to vector<2x128xi32>
      %325 = arith.cmpi eq, %69, %324 : vector<2x128xi32>
      %c0_i32_117 = arith.constant 0 : i32
      %326 = vector.broadcast %c0_i32_117 : i32 to vector<2x1xi32>
      %327 = arith.cmpi ne, %315, %326 : vector<2x1xi32>
      %328 = vector.broadcast %327 : vector<2x1xi1> to vector<2x128xi1>
      %329 = arith.andi %325, %328 : vector<2x128xi1>
      %330 = arith.extui %329 : vector<2x128xi1> to vector<2x128xi32>
      %331 = arith.sitofp %330 : vector<2x128xi32> to vector<2x128xf32>
      %332 = arith.mulf %285, %331 : vector<2x128xf32>
      %333 = vector.shape_cast %332 : vector<2x128xf32> to vector<1x2x128xf32>
      %cst_118 = arith.constant dense<0.000000e+00> : vector<1xf32>
      %334 = vector.multi_reduction <add>, %333, %cst_118 [1, 2] : vector<1x2x128xf32> to vector<1xf32>
      %335 = vector.shape_cast %334 : vector<1xf32> to vector<1x1x1xf32>
      %336 = vector.extract %335[0, 0, 0] : f32 from vector<1x1x1xf32>
      %337 = arith.mulf %294, %323 : vector<2x1xf32>
      %338 = vector.shape_cast %337 : vector<2x1xf32> to vector<1x2x1xf32>
      %cst_119 = arith.constant dense<0.000000e+00> : vector<1xf32>
      %339 = vector.multi_reduction <add>, %338, %cst_119 [1, 2] : vector<1x2x1xf32> to vector<1xf32>
      %340 = vector.shape_cast %339 : vector<1xf32> to vector<1x1x1xf32>
      %341 = vector.extract %340[0, 0, 0] : f32 from vector<1x1x1xf32>
      %342 = arith.subf %341, %336 : f32
      %cst_120 = arith.constant 1.000000e+00 : f32
      %343 = arith.maximumf %319, %cst_120 : f32
      %344 = arith.divf %342, %343 : f32
      %345 = arith.mulf %344, %247 : f32
      %346 = arith.addf %209, %345 : f32
      %347 = vector.broadcast %287 : vector<2x1xf32> to vector<2x128xf32>
      %348 = arith.cmpf oge, %285, %347 : vector<2x128xf32>
      %c128_i32_121 = arith.constant 128 : i32
      %349 = vector.broadcast %c128_i32_121 : i32 to vector<2x128xi32>
      %350 = arith.select %348, %69, %349 : vector<2x128xi1>, vector<2x128xi32>
      %cst_122 = arith.constant dense<2147483647> : vector<2xi32>
      %351 = vector.multi_reduction <minsi>, %350, %cst_122 [1] : vector<2x128xi32> to vector<2xi32>
      %352 = vector.shape_cast %351 : vector<2xi32> to vector<2x1xi32>
      %353 = vector.broadcast %352 : vector<2x1xi32> to vector<2x128xi32>
      %354 = arith.cmpi eq, %69, %353 : vector<2x128xi32>
      %355 = arith.extui %354 : vector<2x128xi1> to vector<2x128xi32>
      %356 = arith.sitofp %355 : vector<2x128xi32> to vector<2x128xf32>
      %357 = vector.broadcast %250 : vector<2x1xf32> to vector<2x128xf32>
      %358 = arith.mulf %357, %356 : vector<2x128xf32>
      %cst_123 = arith.constant 1.000000e+00 : f32
      %359 = vector.broadcast %cst_123 : f32 to vector<2x1xf32>
      %360 = arith.subf %359, %250 : vector<2x1xf32>
      %361 = vector.broadcast %360 : vector<2x1xf32> to vector<2x128xf32>
      %362 = arith.mulf %361, %74 : vector<2x128xf32>
      %363 = arith.addf %358, %362 : vector<2x128xf32>
      %364 = arith.truncf %363 : vector<2x128xf32> to vector<2x128xbf16>
      %c0_124 = arith.constant 0 : index
      %c0_125 = arith.constant 0 : index
      %365 = vector.load %arg4[%c0_124, %c0_125] : memref<128x128xbf16, #tpu.memory_space<vmem>>, vector<128x128xbf16>
      %cst_126 = arith.constant dense<0.000000e+00> : vector<2x128xf32>
      %366 = tpu.matmul %364, %365, %cst_126 {dimension_numbers = #tpu.dot_dimension_numbers<[1], [0], [0], [1], [0, 0, 1, 1], [], []>} : vector<2x128xbf16>, vector<128x128xbf16>, vector<2x128xf32> -> vector<2x128xf32>
      %367 = vector.broadcast %250 : vector<2x1xf32> to vector<2x128xf32>
      %368 = arith.mulf %367, %366 : vector<2x128xf32>
      %369 = arith.addf %232, %368 : vector<2x128xf32>
      %370 = arith.addf %233, %250 : vector<2x1xf32>
      %c3_i32_127 = arith.constant 3 : i32
      %371 = vector.broadcast %c3_i32_127 : i32 to vector<2x1xi32>
      %372 = arith.cmpi eq, %352, %371 : vector<2x1xi32>
      %373 = arith.extui %372 : vector<2x1xi1> to vector<2x1xi32>
      %374 = arith.sitofp %373 : vector<2x1xi32> to vector<2x1xf32>
      %375 = arith.mulf %250, %374 : vector<2x1xf32>
      %376 = vector.shape_cast %375 : vector<2x1xf32> to vector<1x2x1xf32>
      %cst_128 = arith.constant dense<0.000000e+00> : vector<1xf32>
      %377 = vector.multi_reduction <add>, %376, %cst_128 [1, 2] : vector<1x2x1xf32> to vector<1xf32>
      %378 = vector.shape_cast %377 : vector<1xf32> to vector<1x1x1xf32>
      %379 = vector.extract %378[0, 0, 0] : f32 from vector<1x1x1xf32>
      %cst_129 = arith.constant 1.500000e+00 : f32
      %380 = arith.cmpf oge, %379, %cst_129 : f32
      %381 = arith.extui %380 : i1 to i32
      %382 = arith.sitofp %381 : i32 to f32
      %cst_130 = arith.constant 1.000000e+00 : f32
      %383 = arith.subf %cst_130, %382 : f32
      %384 = arith.mulf %247, %383 : f32
      %cst_131 = arith.constant 1.000000e+00 : f32
      %385 = vector.broadcast %cst_131 : f32 to vector<2x1xf32>
      %386 = arith.subf %385, %375 : vector<2x1xf32>
      %387 = arith.mulf %250, %386 : vector<2x1xf32>
      %c2_i32_132 = arith.constant 2 : i32
      %388 = tpu.concatenate %366, %279 in 1 : vector<2x128xf32>, vector<2x128xf32> -> vector<2x256xf32>
      %389 = arith.truncf %388 : vector<2x256xf32> to vector<2x256xbf16>
      %c0_133 = arith.constant 0 : index
      %c0_134 = arith.constant 0 : index
      %390 = vector.load %arg12[%c0_133, %c0_134] : memref<256x512xbf16, #tpu.memory_space<vmem>>, vector<256x512xbf16>
      %cst_135 = arith.constant dense<0.000000e+00> : vector<2x512xf32>
      %391 = tpu.matmul %389, %390, %cst_135 {dimension_numbers = #tpu.dot_dimension_numbers<[1], [0], [0], [1], [0, 0, 1, 1], [], []>} : vector<2x256xbf16>, vector<256x512xbf16>, vector<2x512xf32> -> vector<2x512xf32>
      %c0_136 = arith.constant 0 : index
      %c0_137 = arith.constant 0 : index
      %392 = vector.load %arg13[%c0_136, %c0_137] : memref<1x512xf32, #tpu.memory_space<vmem>>, vector<1x512xf32>
      %393 = vector.broadcast %392 : vector<1x512xf32> to vector<2x512xf32>
      %394 = arith.addf %391, %393 : vector<2x512xf32>
      %395 = vector.extract_strided_slice %394 {offsets = [0, 0], sizes = [2, 128], strides = [1, 1]} : vector<2x512xf32> to vector<2x128xf32>
      %396 = arith.negf %395 : vector<2x128xf32>
      %397 = math.exp %396 : vector<2x128xf32>
      %cst_138 = arith.constant 1.000000e+00 : f32
      %398 = vector.broadcast %cst_138 : f32 to vector<2x128xf32>
      %399 = arith.addf %398, %397 : vector<2x128xf32>
      %400 = arith.divf %398, %399 : vector<2x128xf32>
      %401 = vector.extract_strided_slice %394 {offsets = [0, 128], sizes = [2, 128], strides = [1, 1]} : vector<2x512xf32> to vector<2x128xf32>
      %402 = arith.negf %401 : vector<2x128xf32>
      %403 = math.exp %402 : vector<2x128xf32>
      %cst_139 = arith.constant 1.000000e+00 : f32
      %404 = vector.broadcast %cst_139 : f32 to vector<2x128xf32>
      %405 = arith.addf %404, %403 : vector<2x128xf32>
      %406 = arith.divf %404, %405 : vector<2x128xf32>
      %407 = vector.extract_strided_slice %394 {offsets = [0, 256], sizes = [2, 128], strides = [1, 1]} : vector<2x512xf32> to vector<2x128xf32>
      %408 = vector.extract_strided_slice %394 {offsets = [0, 384], sizes = [2, 128], strides = [1, 1]} : vector<2x512xf32> to vector<2x128xf32>
      %409 = arith.mulf %400, %408 : vector<2x128xf32>
      %410 = arith.addf %407, %409 : vector<2x128xf32>
      %411 = math.tanh %410 : vector<2x128xf32>
      %cst_140 = arith.constant 1.000000e+00 : f32
      %412 = vector.broadcast %cst_140 : f32 to vector<2x128xf32>
      %413 = arith.subf %412, %406 : vector<2x128xf32>
      %414 = arith.mulf %413, %411 : vector<2x128xf32>
      %415 = arith.mulf %406, %279 : vector<2x128xf32>
      %416 = arith.addf %414, %415 : vector<2x128xf32>
      %417 = arith.truncf %416 : vector<2x128xf32> to vector<2x128xbf16>
      %c0_141 = arith.constant 0 : index
      %c0_142 = arith.constant 0 : index
      %418 = vector.load %arg14[%c0_141, %c0_142] : memref<128x128xbf16, #tpu.memory_space<vmem>>, vector<128x128xbf16>
      %cst_143 = arith.constant dense<0.000000e+00> : vector<2x128xf32>
      %419 = tpu.matmul %417, %418, %cst_143 {dimension_numbers = #tpu.dot_dimension_numbers<[1], [0], [0], [1], [0, 0, 1, 1], [], []>} : vector<2x128xbf16>, vector<128x128xbf16>, vector<2x128xf32> -> vector<2x128xf32>
      %c0_144 = arith.constant 0 : index
      %c0_145 = arith.constant 0 : index
      %420 = vector.load %arg15[%c0_144, %c0_145] : memref<1x128xf32, #tpu.memory_space<vmem>>, vector<1x128xf32>
      %421 = vector.broadcast %420 : vector<1x128xf32> to vector<2x128xf32>
      %422 = arith.addf %419, %421 : vector<2x128xf32>
      %cst_146 = arith.constant dense<0xFF800000> : vector<2xf32>
      %423 = vector.multi_reduction <maximumf>, %422, %cst_146 [1] : vector<2x128xf32> to vector<2xf32>
      %424 = vector.shape_cast %423 : vector<2xf32> to vector<2x1xf32>
      %425 = vector.broadcast %424 : vector<2x1xf32> to vector<2x128xf32>
      %426 = arith.subf %422, %425 : vector<2x128xf32>
      %427 = math.exp %426 : vector<2x128xf32>
      %cst_147 = arith.constant dense<0.000000e+00> : vector<2xf32>
      %428 = vector.multi_reduction <add>, %427, %cst_147 [1] : vector<2x128xf32> to vector<2xf32>
      %429 = vector.shape_cast %428 : vector<2xf32> to vector<2x1xf32>
      %430 = math.log %429 : vector<2x1xf32>
      %431 = arith.addf %424, %430 : vector<2x1xf32>
      %c2_i32_148 = arith.constant 2 : i32
      %432 = arith.muli %c2_i32_132, %c2_i32_148 : i32
      %433 = arith.addi %110, %432 : i32
      %c0_i32_149 = arith.constant 0 : i32
      %434 = vector.broadcast %c0_i32_149 : i32 to vector<2x1xi32>
      %c0_i32_150 = arith.constant 0 : i32
      %435 = arith.addi %433, %c0_i32_150 : i32
      %436 = arith.index_cast %435 : i32 to index
      %437 = memref.load %arg3[%436] : memref<16xi32, #tpu.memory_space<smem>>
      %c0_i32_151 = arith.constant 0 : i32
      %438 = vector.broadcast %c0_i32_151 : i32 to vector<2x1xi32>
      %439 = arith.cmpi eq, %70, %438 : vector<2x1xi32>
      %440 = vector.broadcast %437 : i32 to vector<2x1xi32>
      %441 = arith.select %439, %440, %434 : vector<2x1xi1>, vector<2x1xi32>
      %c0_i32_152 = arith.constant 0 : i32
      %442 = arith.cmpi ne, %437, %c0_i32_152 : i32
      %443 = arith.extui %442 : i1 to i32
      %444 = arith.sitofp %443 : i32 to f32
      %cst_153 = arith.constant 0.000000e+00 : f32
      %445 = arith.addf %cst_153, %444 : f32
      %c1_i32_154 = arith.constant 1 : i32
      %446 = arith.addi %433, %c1_i32_154 : i32
      %447 = arith.index_cast %446 : i32 to index
      %448 = memref.load %arg3[%447] : memref<16xi32, #tpu.memory_space<smem>>
      %c1_i32_155 = arith.constant 1 : i32
      %449 = vector.broadcast %c1_i32_155 : i32 to vector<2x1xi32>
      %450 = arith.cmpi eq, %70, %449 : vector<2x1xi32>
      %451 = vector.broadcast %448 : i32 to vector<2x1xi32>
      %452 = arith.select %450, %451, %441 : vector<2x1xi1>, vector<2x1xi32>
      %c0_i32_156 = arith.constant 0 : i32
      %453 = arith.cmpi ne, %448, %c0_i32_156 : i32
      %454 = arith.extui %453 : i1 to i32
      %455 = arith.sitofp %454 : i32 to f32
      %456 = arith.addf %445, %455 : f32
      %c0_i32_157 = arith.constant 0 : i32
      %457 = vector.broadcast %c0_i32_157 : i32 to vector<2x1xi32>
      %458 = arith.cmpi ne, %452, %457 : vector<2x1xi32>
      %459 = arith.extui %458 : vector<2x1xi1> to vector<2x1xi32>
      %460 = arith.sitofp %459 : vector<2x1xi32> to vector<2x1xf32>
      %461 = vector.broadcast %452 : vector<2x1xi32> to vector<2x128xi32>
      %462 = arith.cmpi eq, %69, %461 : vector<2x128xi32>
      %c0_i32_158 = arith.constant 0 : i32
      %463 = vector.broadcast %c0_i32_158 : i32 to vector<2x1xi32>
      %464 = arith.cmpi ne, %452, %463 : vector<2x1xi32>
      %465 = vector.broadcast %464 : vector<2x1xi1> to vector<2x128xi1>
      %466 = arith.andi %462, %465 : vector<2x128xi1>
      %467 = arith.extui %466 : vector<2x128xi1> to vector<2x128xi32>
      %468 = arith.sitofp %467 : vector<2x128xi32> to vector<2x128xf32>
      %469 = arith.mulf %422, %468 : vector<2x128xf32>
      %470 = vector.shape_cast %469 : vector<2x128xf32> to vector<1x2x128xf32>
      %cst_159 = arith.constant dense<0.000000e+00> : vector<1xf32>
      %471 = vector.multi_reduction <add>, %470, %cst_159 [1, 2] : vector<1x2x128xf32> to vector<1xf32>
      %472 = vector.shape_cast %471 : vector<1xf32> to vector<1x1x1xf32>
      %473 = vector.extract %472[0, 0, 0] : f32 from vector<1x1x1xf32>
      %474 = arith.mulf %431, %460 : vector<2x1xf32>
      %475 = vector.shape_cast %474 : vector<2x1xf32> to vector<1x2x1xf32>
      %cst_160 = arith.constant dense<0.000000e+00> : vector<1xf32>
      %476 = vector.multi_reduction <add>, %475, %cst_160 [1, 2] : vector<1x2x1xf32> to vector<1xf32>
      %477 = vector.shape_cast %476 : vector<1xf32> to vector<1x1x1xf32>
      %478 = vector.extract %477[0, 0, 0] : f32 from vector<1x1x1xf32>
      %479 = arith.subf %478, %473 : f32
      %cst_161 = arith.constant 1.000000e+00 : f32
      %480 = arith.maximumf %456, %cst_161 : f32
      %481 = arith.divf %479, %480 : f32
      %482 = arith.mulf %481, %384 : f32
      %483 = arith.addf %346, %482 : f32
      %484 = vector.broadcast %424 : vector<2x1xf32> to vector<2x128xf32>
      %485 = arith.cmpf oge, %422, %484 : vector<2x128xf32>
      %c128_i32_162 = arith.constant 128 : i32
      %486 = vector.broadcast %c128_i32_162 : i32 to vector<2x128xi32>
      %487 = arith.select %485, %69, %486 : vector<2x128xi1>, vector<2x128xi32>
      %cst_163 = arith.constant dense<2147483647> : vector<2xi32>
      %488 = vector.multi_reduction <minsi>, %487, %cst_163 [1] : vector<2x128xi32> to vector<2xi32>
      %489 = vector.shape_cast %488 : vector<2xi32> to vector<2x1xi32>
      %490 = vector.broadcast %489 : vector<2x1xi32> to vector<2x128xi32>
      %491 = arith.cmpi eq, %69, %490 : vector<2x128xi32>
      %492 = arith.extui %491 : vector<2x128xi1> to vector<2x128xi32>
      %493 = arith.sitofp %492 : vector<2x128xi32> to vector<2x128xf32>
      %494 = vector.broadcast %387 : vector<2x1xf32> to vector<2x128xf32>
      %495 = arith.mulf %494, %493 : vector<2x128xf32>
      %cst_164 = arith.constant 1.000000e+00 : f32
      %496 = vector.broadcast %cst_164 : f32 to vector<2x1xf32>
      %497 = arith.subf %496, %387 : vector<2x1xf32>
      %498 = vector.broadcast %497 : vector<2x1xf32> to vector<2x128xf32>
      %499 = arith.mulf %498, %74 : vector<2x128xf32>
      %500 = arith.addf %495, %499 : vector<2x128xf32>
      %501 = arith.truncf %500 : vector<2x128xf32> to vector<2x128xbf16>
      %c0_165 = arith.constant 0 : index
      %c0_166 = arith.constant 0 : index
      %502 = vector.load %arg4[%c0_165, %c0_166] : memref<128x128xbf16, #tpu.memory_space<vmem>>, vector<128x128xbf16>
      %cst_167 = arith.constant dense<0.000000e+00> : vector<2x128xf32>
      %503 = tpu.matmul %501, %502, %cst_167 {dimension_numbers = #tpu.dot_dimension_numbers<[1], [0], [0], [1], [0, 0, 1, 1], [], []>} : vector<2x128xbf16>, vector<128x128xbf16>, vector<2x128xf32> -> vector<2x128xf32>
      %504 = vector.broadcast %387 : vector<2x1xf32> to vector<2x128xf32>
      %505 = arith.mulf %504, %503 : vector<2x128xf32>
      %506 = arith.addf %369, %505 : vector<2x128xf32>
      %507 = arith.addf %370, %387 : vector<2x1xf32>
      %c3_i32_168 = arith.constant 3 : i32
      %508 = vector.broadcast %c3_i32_168 : i32 to vector<2x1xi32>
      %509 = arith.cmpi eq, %489, %508 : vector<2x1xi32>
      %510 = arith.extui %509 : vector<2x1xi1> to vector<2x1xi32>
      %511 = arith.sitofp %510 : vector<2x1xi32> to vector<2x1xf32>
      %512 = arith.mulf %387, %511 : vector<2x1xf32>
      %513 = vector.shape_cast %512 : vector<2x1xf32> to vector<1x2x1xf32>
      %cst_169 = arith.constant dense<0.000000e+00> : vector<1xf32>
      %514 = vector.multi_reduction <add>, %513, %cst_169 [1, 2] : vector<1x2x1xf32> to vector<1xf32>
      %515 = vector.shape_cast %514 : vector<1xf32> to vector<1x1x1xf32>
      %516 = vector.extract %515[0, 0, 0] : f32 from vector<1x1x1xf32>
      %cst_170 = arith.constant 1.500000e+00 : f32
      %517 = arith.cmpf oge, %516, %cst_170 : f32
      %518 = arith.extui %517 : i1 to i32
      %519 = arith.sitofp %518 : i32 to f32
      %cst_171 = arith.constant 1.000000e+00 : f32
      %520 = arith.subf %cst_171, %519 : f32
      %521 = arith.mulf %384, %520 : f32
      %cst_172 = arith.constant 1.000000e+00 : f32
      %522 = vector.broadcast %cst_172 : f32 to vector<2x1xf32>
      %523 = arith.subf %522, %512 : vector<2x1xf32>
      %524 = arith.mulf %387, %523 : vector<2x1xf32>
      %c3_i32_173 = arith.constant 3 : i32
      %525 = tpu.concatenate %503, %416 in 1 : vector<2x128xf32>, vector<2x128xf32> -> vector<2x256xf32>
      %526 = arith.truncf %525 : vector<2x256xf32> to vector<2x256xbf16>
      %c0_174 = arith.constant 0 : index
      %c0_175 = arith.constant 0 : index
      %527 = vector.load %arg12[%c0_174, %c0_175] : memref<256x512xbf16, #tpu.memory_space<vmem>>, vector<256x512xbf16>
      %cst_176 = arith.constant dense<0.000000e+00> : vector<2x512xf32>
      %528 = tpu.matmul %526, %527, %cst_176 {dimension_numbers = #tpu.dot_dimension_numbers<[1], [0], [0], [1], [0, 0, 1, 1], [], []>} : vector<2x256xbf16>, vector<256x512xbf16>, vector<2x512xf32> -> vector<2x512xf32>
      %c0_177 = arith.constant 0 : index
      %c0_178 = arith.constant 0 : index
      %529 = vector.load %arg13[%c0_177, %c0_178] : memref<1x512xf32, #tpu.memory_space<vmem>>, vector<1x512xf32>
      %530 = vector.broadcast %529 : vector<1x512xf32> to vector<2x512xf32>
      %531 = arith.addf %528, %530 : vector<2x512xf32>
      %532 = vector.extract_strided_slice %531 {offsets = [0, 0], sizes = [2, 128], strides = [1, 1]} : vector<2x512xf32> to vector<2x128xf32>
      %533 = arith.negf %532 : vector<2x128xf32>
      %534 = math.exp %533 : vector<2x128xf32>
      %cst_179 = arith.constant 1.000000e+00 : f32
      %535 = vector.broadcast %cst_179 : f32 to vector<2x128xf32>
      %536 = arith.addf %535, %534 : vector<2x128xf32>
      %537 = arith.divf %535, %536 : vector<2x128xf32>
      %538 = vector.extract_strided_slice %531 {offsets = [0, 128], sizes = [2, 128], strides = [1, 1]} : vector<2x512xf32> to vector<2x128xf32>
      %539 = arith.negf %538 : vector<2x128xf32>
      %540 = math.exp %539 : vector<2x128xf32>
      %cst_180 = arith.constant 1.000000e+00 : f32
      %541 = vector.broadcast %cst_180 : f32 to vector<2x128xf32>
      %542 = arith.addf %541, %540 : vector<2x128xf32>
      %543 = arith.divf %541, %542 : vector<2x128xf32>
      %544 = vector.extract_strided_slice %531 {offsets = [0, 256], sizes = [2, 128], strides = [1, 1]} : vector<2x512xf32> to vector<2x128xf32>
      %545 = vector.extract_strided_slice %531 {offsets = [0, 384], sizes = [2, 128], strides = [1, 1]} : vector<2x512xf32> to vector<2x128xf32>
      %546 = arith.mulf %537, %545 : vector<2x128xf32>
      %547 = arith.addf %544, %546 : vector<2x128xf32>
      %548 = math.tanh %547 : vector<2x128xf32>
      %cst_181 = arith.constant 1.000000e+00 : f32
      %549 = vector.broadcast %cst_181 : f32 to vector<2x128xf32>
      %550 = arith.subf %549, %543 : vector<2x128xf32>
      %551 = arith.mulf %550, %548 : vector<2x128xf32>
      %552 = arith.mulf %543, %416 : vector<2x128xf32>
      %553 = arith.addf %551, %552 : vector<2x128xf32>
      %554 = arith.truncf %553 : vector<2x128xf32> to vector<2x128xbf16>
      %c0_182 = arith.constant 0 : index
      %c0_183 = arith.constant 0 : index
      %555 = vector.load %arg14[%c0_182, %c0_183] : memref<128x128xbf16, #tpu.memory_space<vmem>>, vector<128x128xbf16>
      %cst_184 = arith.constant dense<0.000000e+00> : vector<2x128xf32>
      %556 = tpu.matmul %554, %555, %cst_184 {dimension_numbers = #tpu.dot_dimension_numbers<[1], [0], [0], [1], [0, 0, 1, 1], [], []>} : vector<2x128xbf16>, vector<128x128xbf16>, vector<2x128xf32> -> vector<2x128xf32>
      %c0_185 = arith.constant 0 : index
      %c0_186 = arith.constant 0 : index
      %557 = vector.load %arg15[%c0_185, %c0_186] : memref<1x128xf32, #tpu.memory_space<vmem>>, vector<1x128xf32>
      %558 = vector.broadcast %557 : vector<1x128xf32> to vector<2x128xf32>
      %559 = arith.addf %556, %558 : vector<2x128xf32>
      %cst_187 = arith.constant dense<0xFF800000> : vector<2xf32>
      %560 = vector.multi_reduction <maximumf>, %559, %cst_187 [1] : vector<2x128xf32> to vector<2xf32>
      %561 = vector.shape_cast %560 : vector<2xf32> to vector<2x1xf32>
      %562 = vector.broadcast %561 : vector<2x1xf32> to vector<2x128xf32>
      %563 = arith.subf %559, %562 : vector<2x128xf32>
      %564 = math.exp %563 : vector<2x128xf32>
      %cst_188 = arith.constant dense<0.000000e+00> : vector<2xf32>
      %565 = vector.multi_reduction <add>, %564, %cst_188 [1] : vector<2x128xf32> to vector<2xf32>
      %566 = vector.shape_cast %565 : vector<2xf32> to vector<2x1xf32>
      %567 = math.log %566 : vector<2x1xf32>
      %568 = arith.addf %561, %567 : vector<2x1xf32>
      %c2_i32_189 = arith.constant 2 : i32
      %569 = arith.muli %c3_i32_173, %c2_i32_189 : i32
      %570 = arith.addi %110, %569 : i32
      %c0_i32_190 = arith.constant 0 : i32
      %571 = vector.broadcast %c0_i32_190 : i32 to vector<2x1xi32>
      %c0_i32_191 = arith.constant 0 : i32
      %572 = arith.addi %570, %c0_i32_191 : i32
      %573 = arith.index_cast %572 : i32 to index
      %574 = memref.load %arg3[%573] : memref<16xi32, #tpu.memory_space<smem>>
      %c0_i32_192 = arith.constant 0 : i32
      %575 = vector.broadcast %c0_i32_192 : i32 to vector<2x1xi32>
      %576 = arith.cmpi eq, %70, %575 : vector<2x1xi32>
      %577 = vector.broadcast %574 : i32 to vector<2x1xi32>
      %578 = arith.select %576, %577, %571 : vector<2x1xi1>, vector<2x1xi32>
      %c0_i32_193 = arith.constant 0 : i32
      %579 = arith.cmpi ne, %574, %c0_i32_193 : i32
      %580 = arith.extui %579 : i1 to i32
      %581 = arith.sitofp %580 : i32 to f32
      %cst_194 = arith.constant 0.000000e+00 : f32
      %582 = arith.addf %cst_194, %581 : f32
      %c1_i32_195 = arith.constant 1 : i32
      %583 = arith.addi %570, %c1_i32_195 : i32
      %584 = arith.index_cast %583 : i32 to index
      %585 = memref.load %arg3[%584] : memref<16xi32, #tpu.memory_space<smem>>
      %c1_i32_196 = arith.constant 1 : i32
      %586 = vector.broadcast %c1_i32_196 : i32 to vector<2x1xi32>
      %587 = arith.cmpi eq, %70, %586 : vector<2x1xi32>
      %588 = vector.broadcast %585 : i32 to vector<2x1xi32>
      %589 = arith.select %587, %588, %578 : vector<2x1xi1>, vector<2x1xi32>
      %c0_i32_197 = arith.constant 0 : i32
      %590 = arith.cmpi ne, %585, %c0_i32_197 : i32
      %591 = arith.extui %590 : i1 to i32
      %592 = arith.sitofp %591 : i32 to f32
      %593 = arith.addf %582, %592 : f32
      %c0_i32_198 = arith.constant 0 : i32
      %594 = vector.broadcast %c0_i32_198 : i32 to vector<2x1xi32>
      %595 = arith.cmpi ne, %589, %594 : vector<2x1xi32>
      %596 = arith.extui %595 : vector<2x1xi1> to vector<2x1xi32>
      %597 = arith.sitofp %596 : vector<2x1xi32> to vector<2x1xf32>
      %598 = vector.broadcast %589 : vector<2x1xi32> to vector<2x128xi32>
      %599 = arith.cmpi eq, %69, %598 : vector<2x128xi32>
      %c0_i32_199 = arith.constant 0 : i32
      %600 = vector.broadcast %c0_i32_199 : i32 to vector<2x1xi32>
      %601 = arith.cmpi ne, %589, %600 : vector<2x1xi32>
      %602 = vector.broadcast %601 : vector<2x1xi1> to vector<2x128xi1>
      %603 = arith.andi %599, %602 : vector<2x128xi1>
      %604 = arith.extui %603 : vector<2x128xi1> to vector<2x128xi32>
      %605 = arith.sitofp %604 : vector<2x128xi32> to vector<2x128xf32>
      %606 = arith.mulf %559, %605 : vector<2x128xf32>
      %607 = vector.shape_cast %606 : vector<2x128xf32> to vector<1x2x128xf32>
      %cst_200 = arith.constant dense<0.000000e+00> : vector<1xf32>
      %608 = vector.multi_reduction <add>, %607, %cst_200 [1, 2] : vector<1x2x128xf32> to vector<1xf32>
      %609 = vector.shape_cast %608 : vector<1xf32> to vector<1x1x1xf32>
      %610 = vector.extract %609[0, 0, 0] : f32 from vector<1x1x1xf32>
      %611 = arith.mulf %568, %597 : vector<2x1xf32>
      %612 = vector.shape_cast %611 : vector<2x1xf32> to vector<1x2x1xf32>
      %cst_201 = arith.constant dense<0.000000e+00> : vector<1xf32>
      %613 = vector.multi_reduction <add>, %612, %cst_201 [1, 2] : vector<1x2x1xf32> to vector<1xf32>
      %614 = vector.shape_cast %613 : vector<1xf32> to vector<1x1x1xf32>
      %615 = vector.extract %614[0, 0, 0] : f32 from vector<1x1x1xf32>
      %616 = arith.subf %615, %610 : f32
      %cst_202 = arith.constant 1.000000e+00 : f32
      %617 = arith.maximumf %593, %cst_202 : f32
      %618 = arith.divf %616, %617 : f32
      %619 = arith.mulf %618, %521 : f32
      %620 = arith.addf %483, %619 : f32
      %621 = vector.broadcast %561 : vector<2x1xf32> to vector<2x128xf32>
      %622 = arith.cmpf oge, %559, %621 : vector<2x128xf32>
      %c128_i32_203 = arith.constant 128 : i32
      %623 = vector.broadcast %c128_i32_203 : i32 to vector<2x128xi32>
      %624 = arith.select %622, %69, %623 : vector<2x128xi1>, vector<2x128xi32>
      %cst_204 = arith.constant dense<2147483647> : vector<2xi32>
      %625 = vector.multi_reduction <minsi>, %624, %cst_204 [1] : vector<2x128xi32> to vector<2xi32>
      %626 = vector.shape_cast %625 : vector<2xi32> to vector<2x1xi32>
      %627 = vector.broadcast %626 : vector<2x1xi32> to vector<2x128xi32>
      %628 = arith.cmpi eq, %69, %627 : vector<2x128xi32>
      %629 = arith.extui %628 : vector<2x128xi1> to vector<2x128xi32>
      %630 = arith.sitofp %629 : vector<2x128xi32> to vector<2x128xf32>
      %631 = vector.broadcast %524 : vector<2x1xf32> to vector<2x128xf32>
      %632 = arith.mulf %631, %630 : vector<2x128xf32>
      %cst_205 = arith.constant 1.000000e+00 : f32
      %633 = vector.broadcast %cst_205 : f32 to vector<2x1xf32>
      %634 = arith.subf %633, %524 : vector<2x1xf32>
      %635 = vector.broadcast %634 : vector<2x1xf32> to vector<2x128xf32>
      %636 = arith.mulf %635, %74 : vector<2x128xf32>
      %637 = arith.addf %632, %636 : vector<2x128xf32>
      %638 = arith.truncf %637 : vector<2x128xf32> to vector<2x128xbf16>
      %c0_206 = arith.constant 0 : index
      %c0_207 = arith.constant 0 : index
      %639 = vector.load %arg4[%c0_206, %c0_207] : memref<128x128xbf16, #tpu.memory_space<vmem>>, vector<128x128xbf16>
      %cst_208 = arith.constant dense<0.000000e+00> : vector<2x128xf32>
      %640 = tpu.matmul %638, %639, %cst_208 {dimension_numbers = #tpu.dot_dimension_numbers<[1], [0], [0], [1], [0, 0, 1, 1], [], []>} : vector<2x128xbf16>, vector<128x128xbf16>, vector<2x128xf32> -> vector<2x128xf32>
      %641 = vector.broadcast %524 : vector<2x1xf32> to vector<2x128xf32>
      %642 = arith.mulf %641, %640 : vector<2x128xf32>
      %643 = arith.addf %506, %642 : vector<2x128xf32>
      %644 = arith.addf %507, %524 : vector<2x1xf32>
      %c3_i32_209 = arith.constant 3 : i32
      %645 = vector.broadcast %c3_i32_209 : i32 to vector<2x1xi32>
      %646 = arith.cmpi eq, %626, %645 : vector<2x1xi32>
      %647 = arith.extui %646 : vector<2x1xi1> to vector<2x1xi32>
      %648 = arith.sitofp %647 : vector<2x1xi32> to vector<2x1xf32>
      %649 = arith.mulf %524, %648 : vector<2x1xf32>
      %650 = vector.shape_cast %649 : vector<2x1xf32> to vector<1x2x1xf32>
      %cst_210 = arith.constant dense<0.000000e+00> : vector<1xf32>
      %651 = vector.multi_reduction <add>, %650, %cst_210 [1, 2] : vector<1x2x1xf32> to vector<1xf32>
      %652 = vector.shape_cast %651 : vector<1xf32> to vector<1x1x1xf32>
      %653 = vector.extract %652[0, 0, 0] : f32 from vector<1x1x1xf32>
      %cst_211 = arith.constant 1.500000e+00 : f32
      %654 = arith.cmpf oge, %653, %cst_211 : f32
      %655 = arith.extui %654 : i1 to i32
      %656 = arith.sitofp %655 : i32 to f32
      %cst_212 = arith.constant 1.000000e+00 : f32
      %657 = arith.subf %cst_212, %656 : f32
      %658 = arith.mulf %521, %657 : f32
      %cst_213 = arith.constant 1.000000e+00 : f32
      %659 = vector.broadcast %cst_213 : f32 to vector<2x1xf32>
      %660 = arith.subf %659, %649 : vector<2x1xf32>
      %661 = arith.mulf %524, %660 : vector<2x1xf32>
      %c4_i32 = arith.constant 4 : i32
      %cst_214 = arith.constant 1.000000e+00 : f32
      %662 = vector.broadcast %cst_214 : f32 to vector<2x1xf32>
      %663 = arith.maximumf %644, %662 : vector<2x1xf32>
      %664 = tpu.reciprocal %663 {approx = true} : vector<2x1xf32> -> vector<2x1xf32>
      %665 = vector.broadcast %664 : vector<2x1xf32> to vector<2x128xf32>
      %666 = arith.mulf %643, %665 : vector<2x128xf32>
      %667 = arith.truncf %666 : vector<2x128xf32> to vector<2x128xbf16>
      %c0_215 = arith.constant 0 : index
      %c0_216 = arith.constant 0 : index
      %668 = vector.load %arg6[%c0_215, %c0_216] : memref<128x128xbf16, #tpu.memory_space<vmem>>, vector<128x128xbf16>
      %cst_217 = arith.constant dense<0.000000e+00> : vector<2x128xf32>
      %669 = tpu.matmul %667, %668, %cst_217 {dimension_numbers = #tpu.dot_dimension_numbers<[1], [0], [0], [1], [0, 0, 1, 1], [], []>} : vector<2x128xbf16>, vector<128x128xbf16>, vector<2x128xf32> -> vector<2x128xf32>
      %c0_218 = arith.constant 0 : index
      %c0_219 = arith.constant 0 : index
      %670 = vector.load %arg7[%c0_218, %c0_219] : memref<1x128xf32, #tpu.memory_space<vmem>>, vector<1x128xf32>
      %671 = vector.broadcast %670 : vector<1x128xf32> to vector<2x128xf32>
      %672 = arith.addf %669, %671 : vector<2x128xf32>
      %673 = math.tanh %672 : vector<2x128xf32>
      %674 = arith.addf %arg20, %620 : f32
      scf.yield %673, %109, %674 : vector<2x128xf32>, vector<2x128xf32>, f32
    }
    %c2_i32_35 = arith.constant 2 : i32
    %cst_36 = arith.constant 0.000000e+00 : f32
    %77 = vector.broadcast %cst_36 : f32 to vector<1x128xf32>
    %78 = vector.broadcast %76#2 : f32 to vector<1x128xf32>
    %79 = arith.addf %77, %78 : vector<1x128xf32>
    %c0_37 = arith.constant 0 : index
    %c0_38 = arith.constant 0 : index
    %80 = vector.load %arg16[%c0_37, %c0_38] : memref<1x128xf32, #tpu.memory_space<vmem>>, vector<1x128xf32>
    tpu.vector_store %arg16[%c0_37, %c0_38], %79 {strides = array<i32>} : memref<1x128xf32, #tpu.memory_space<vmem>>, vector<1x128xf32>,
    return
  }
}

</mosaic_0001>

<bundles_post_ra>
// kernel: forward.1
= control target key start
LH: loop header
LB: loop body
LE: loop exit
PB: predicated region body
PF: predicated region fallthrough
CT: control target
= control target key end

     0   :  { %s5982_s0 = inlined_call_operand.vmem [shape: bf16[36,128], index: 0, kind: input, shape index: {}]   ;;  %s5983_s1 = inlined_call_operand.vmem [shape: bf16[6,36], index: 1, kind: input, shape index: {}]   ;;  %s5984_s2 = inlined_call_operand.vmem [shape: f32[2,6], index: 2, kind: input, shape index: {}]   ;;  %s5985_s3 = inlined_call_operand.vmem [shape: s32[16], index: 3, kind: input, shape index: {}]   ;;  %s5986_s4 = inlined_call_operand.vmem [shape: bf16[128,128], index: 4, kind: input, shape index: {}]   ;;  %s5987_s5 = inlined_call_operand.vmem [shape: bf16[128,128], index: 5, kind: input, shape index: {}]   ;;  %s5988_s6 = inlined_call_operand.vmem [shape: bf16[128,128], index: 6, kind: input, shape index: {}]   ;;  %s5989_s7 = inlined_call_operand.vmem [shape: f32[1,128], index: 7, kind: input, shape index: {}]   ;;  %s5990_s8 = inlined_call_operand.vmem [shape: bf16[128,128], index: 8, kind: input, shape index: {}]   ;;  %s5991_s9 = inlined_call_operand.vmem [shape: f32[1,128], index: 9, kind: input, shape index: {}]   ;;  %s5992_s10 = inlined_call_operand.hbm [shape: bf16[384,512], index: 10, kind: input, shape index: {}]   ;;  %s5993_s11 = inlined_call_operand.vmem [shape: f32[1,512], index: 11, kind: input, shape index: {}]   ;;  %s5994_s12 = inlined_call_operand.hbm [shape: bf16[256,512], index: 12, kind: input, shape index: {}]   ;;  %s5995_s13 = inlined_call_operand.vmem [shape: f32[1,512], index: 13, kind: input, shape index: {}]   ;;  %s5996_s14 = inlined_call_operand.vmem [shape: bf16[128,128], index: 14, kind: input, shape index: {}]   ;;  %s5997_s15 = inlined_call_operand.vmem [shape: f32[1,128], index: 15, kind: input, shape index: {}]   ;;  %s5998_s16 = inlined_call_operand.hbm [shape: f32[1,128], index: 16, kind: output, shape index: {}]  }
   0x1   :  { %6107 = sst [smem:[#allocation72_spill]] %s5982_s0 }
   0x2   :  { %6108 = sst [smem:[#allocation73_spill]] %s5986_s4 }
   0x3   :  { %6109 = sst [smem:[#allocation74_spill]] %s5988_s6 }
   0x4   :  { %6110 = sst [smem:[#allocation75_spill]] %s5993_s11 }
   0x5   :  { %6111 = sst [smem:[#allocation76_spill]] %s5995_s13 }
   0x6   :  { %6112 = sst [smem:[#allocation77_spill]] %s5996_s14 }
   0x7   :  { %6113 = sst [smem:[#allocation78_spill]] %s5997_s15 }
   0x8   :  { %21 = vsyncpa [#allocation5], 0 }
   0x9   :  { %22 = vsyncpa [#allocation3], 0 }
   0xa   :  { %23 = vsyncpa [#allocation8], 0 }
   0xb   :  { %24 = vsyncpa [#allocation4], 0  ;;  %s37_s23 = sshll.u32 %s5985_s3, 4  ;;  %s38_s23 = int_to_ptr.vmem [resolvable:$true] %s37_s23 }
   0xc   :  { %s4561_s24 = scalar_lea.vmem %s38_s23, 16  ;;  %p4566_p1 = scmp.lt.s32.totalorder %s38_s23, %s38_s23 }
   0xd   :  { %p4562_p0 = scmp.ne.s32.totalorder %s38_s23, %s4561_s24  ;;  %p4567_p2 = scmp.lt.s32.totalorder %s4561_s24, %s4561_s24 }
   0xf   :  { %p4568_p3 = por %p4567_p2, %p4566_p1 }
  0x11   :  { %p4569_p4 = pnand %p4568_p3, %p4562_p0 }
  0x13   :  { %4572 = shalt.err (!%p4569_p4)
}
  0x14   :  { %s4679_s25 = smov [#allocation2]   ;;  %s4680_s26 = smov [#allocation6]  }
  0x15   :  { %40 = dma.vmem_to_smem %s38_s23, 16, %s4679_s25, [#allocation5]  }
  0x16   :  { %s58_s27 = sshll.u32 %s4680_s26, 4  ;;  %s4573_s30 = scalar_lea.hbm %s5992_s10, 12288  ;;  %s59_s27 = int_to_ptr.vmem [resolvable:$true] %s58_s27 }
  0x17   :  { %p4574_p5 = scmp.ne.s32.totalorder %s5992_s10, %s4573_s30  ;;  %p4577_p6 = scmp.lt.u32.totalorder %s4573_s30, %s5992_s10 }
  0x19   :  { %p4579_p7 = pnand %p4577_p6, %p4574_p5 }
  0x1b   :  { %4582 = shalt.err (!%p4579_p7)
}
  0x1c   :  { %s4583_s19 = scalar_lea.vmem %s59_s27, 12288  ;;  %p4588_p9 = scmp.lt.s32.totalorder %s59_s27, %s59_s27 }
  0x1d   :  { %p4584_p8 = scmp.ne.s32.totalorder %s59_s27, %s4583_s19  ;;  %p4589_p10 = scmp.lt.s32.totalorder %s4583_s19, %s4583_s19 }
  0x1f   :  { %p4590_p11 = por %p4589_p10, %p4588_p9 }
  0x21   :  { %p4591_p12 = pnand %p4590_p11, %p4584_p8 }
  0x23   :  { %4594 = shalt.err (!%p4591_p12)
}
  0x24   :  { %s4681_s20 = smov 256   ;;  %s4682_s21 = smov 16  }
  0x25   :  { %64 = dma.hbm_to_vmem [thread:$0]  %s5992_s10, 12288, %s59_s27, [#allocation3], %s4681_s20, %s4681_s20, %s4682_s21  }
  0x26   :  { %s4683_s24 = smov [#allocation7]   ;;  %s4595_s29 = scalar_lea.hbm %s5994_s12, 8192 }
  0x27   :  { %s72_s25 = sshll.u32 %s4683_s24, 4  ;;  %p4596_p13 = scmp.ne.s32.totalorder %s5994_s12, %s4595_s29  ;;  %s73_s25 = int_to_ptr.vmem [resolvable:$true] %s72_s25 }
  0x28   :  { %p4599_p0 = scmp.lt.u32.totalorder %s4595_s29, %s5994_s12 }
  0x2a   :  { %p4601_p1 = pnand %p4599_p0, %p4596_p13 }
  0x2c   :  { %4604 = shalt.err (!%p4601_p1)
}
  0x2d   :  { %s4605_s18 = scalar_lea.vmem %s73_s25, 8192  ;;  %p4610_p3 = scmp.lt.s32.totalorder %s73_s25, %s73_s25 }
  0x2e   :  { %p4606_p2 = scmp.ne.s32.totalorder %s73_s25, %s4605_s18  ;;  %p4611_p4 = scmp.lt.s32.totalorder %s4605_s18, %s4605_s18 }
  0x30   :  { %p4612_p5 = por %p4611_p4, %p4610_p3 }
  0x32   :  { %p4613_p6 = pnand %p4612_p5, %p4606_p2 }
  0x34   :  { %4616 = shalt.err (!%p4613_p6)
}
  0x35   :  { %78 = dma.hbm_to_vmem [thread:$0]  %s5994_s12, 8192, %s73_s25, [#allocation8], %s4681_s20, %s4681_s20, %s4682_s21  }
  0x36   :  { %4655 = dma.done.wait [#allocation5], 16  }
  0x37   :  { %4656 = vsyncadd [#allocation5], 4294967280 }
  0x38   :  { %4657 = dma.done.wait [#allocation3], 12288  }
  0x39   :  { %4658 = vsyncadd [#allocation3], 4294955008 }
  0x3a   :  { %4659 = dma.done.wait [#allocation8], 8192  }
  0x3b   :  { %4660 = vsyncadd [#allocation8], 4294959104 }
  0x3c   :  { %94 = sfence }
  0x3d   :  { %s6114_s23 = sld [smem:[#allocation72_spill]]  ;;  %v4684_v1 = vmov 0.0   ;;  %vm4685_vm0 = vmmov 0   ;;  %v96_v4 = vld [vmem:[%s5983_s1] sm:$0x7]  ;;  %vm166_vm1 = vcmask 291840   ;;  %v487_v31 = vlaneseq }
  0x3e   :  { %3759 = vmatprep.subr.bf16.mxu0 %v4684_v1  ;;  %3769 = vmatprep.subr.bf16.mxu1 %v4684_v1  ;;  %vm121_vm2 = vcmask 1041408   ;;  %v165_v5 = vunpack.c.l.bf16 %v96_v4  ;;  %v4108_v6 = vld [vmem:[%s5988_s6] sm:$0xff]   ;;  %v4109_v8 = vld [vmem:[%s5988_s6 + $0x8] sm:$0xff]   ;;  %vm117_vm3 = vcmask 293888   ;;  %v4110_v10 = vld [vmem:[%s5988_s6 + $0x10] sm:$0xff]   ;;  %vm365_vm5 = vcmask 41984  }
  0x3f   :  { %3765 = vmatprep.mubr.msk.bf16.mxu0 %vm4685_vm0, %v4684_v1  ;;  %3785 = vmatprep.mubr.msk.bf16.mxu1 %vm4685_vm0, %v4684_v1  ;;  %v4111_v11 = vld [vmem:[%s5988_s6 + $0x18] sm:$0xff]   ;;  %v4112_v12 = vld [vmem:[%s5988_s6 + $0x20] sm:$0xff]   ;;  %v4113_v13 = vld [vmem:[%s5988_s6 + $0x28] sm:$0xff]   ;;  %v4888_v33 = vshrl.u32 %v487_v31, 7  ;;  %v4899_v37 = vand.u32 127, %v487_v31  ;;  %vm291_vm6 = vcmask 1045504  }
  0x40   :  { %v167_v7 = vsel %vm166_vm1, %v165_v5, 0.0  ;;  %3770 = vmatpush3.bf16.msra.mxu1 %v4108_v6  ;;  %v4114_v14 = vld [vmem:[%s5988_s6 + $0x30] sm:$0xff]   ;;  %v4115_v15 = vld [vmem:[%s5988_s6 + $0x38] sm:$0xff]   ;;  %v4116_v23 = vld [vmem:[%s5987_s5] sm:$0xff]   ;;  %vm287_vm7 = vcmask 48128  }
  0x41   :  { %168 = vadd.xlane.f32.xlu0 %v167_v7  ;;  %3771 = vmatprep.subr.bf16.mxu1 %v4684_v1  ;;  %v4117_v26 = vld [vmem:[%s5987_s5 + $0x8] sm:$0xff]   ;;  %v4118_v27 = vld [vmem:[%s5987_s5 + $0x10] sm:$0xff]   ;;  %v4119_v28 = vld [vmem:[%s5987_s5 + $0x18] sm:$0xff]   ;;  %6115 = vst [vmem:[#allocation14_spill] sm:$0xff] %v4888_v33  ;;  %v489_v39 = vsub.s32 4, %v4888_v33  ;;  %v4904_v41 = vsub.s32 2, %v4888_v33 }
  0x42   :  { %v4120_v29 = vld [vmem:[%s5987_s5 + $0x20] sm:$0xff]   ;;  %v4121_v30 = vld [vmem:[%s5987_s5 + $0x28] sm:$0xff]   ;;  %v4122_v32 = vld [vmem:[%s5987_s5 + $0x30] sm:$0xff]   ;;  %vm739_vm4 = vcmp.eq.s32.totalorder %v4899_v37, 0 }
  0x43   :  { %v4105_v0 = vld [vmem:[%s6114_s23] sm:$0xff]   ;;  %v4106_v2 = vld [vmem:[%s6114_s23 + $0x8] sm:$0xff]   ;;  %v4107_v3 = vld [vmem:[%s6114_s23 + $0x10] ss:$0 sps:$4 sm:$0x33]   ;;  %6116 = vst [vmem:[#allocation15_spill] sm:$0xff] %v4904_v41 }
  0x44   :  { %3760 = vmatpush3.bf16.msra.mxu0 %v4105_v0  ;;  %v123_v9 = vsel %vm121_vm2, %v4107_v3, 0  ;;  %3772 = vmatpush3.bf16.msra.mxu1 %v4109_v8  ;;  %v4123_v34 = vld [vmem:[%s5987_s5 + $0x38] sm:$0xff]   ;;  %v485_v35 = vld [vmem:[%s5986_s4] sm:$0x4]  ;;  %v491_v36 = vld [vmem:[%s5986_s4] sm:$0x2] }
  0x45   :  { %3761 = vmatprep.subr.bf16.mxu0 %v4684_v1  ;;  %3773 = vmatprep.subr.bf16.mxu1 %v4684_v1  ;;  %v486_v38 = vunpack.c.l.bf16 %v485_v35  ;;  %v492_v40 = vunpack.c.l.bf16 %v491_v36  ;;  %v4909_v42 = vld [vmem:[%s5984_s2] sm:$0x3]  ;;  %v4918_v45 = vsel %vm739_vm4, 1.0, %v4684_v1  ;;  %v4125_v56 = vld [vmem:[%s5990_s8 + $0x8] sm:$0xff]   ;;  %v4126_v57 = vld [vmem:[%s5990_s8 + $0x10] sm:$0xff]   ;;  %s4987_s5 = smov 0  }
  0x46   :  { %6118 = vst [vmem:[#allocation17_spill] sm:$0xff] %v4918_v45  ;;  %v366_v46 = vsel %vm365_vm5, %v4909_v42, 0.0  ;;  %v3398_v48 = vld [vmem:[%s5989_s7] ss:$0 sm:$0xff]  ;;  %v4127_v58 = vld [vmem:[%s5990_s8 + $0x18] sm:$0xff]   ;;  %v4129_v60 = vld [vmem:[%s5990_s8 + $0x28] sm:$0xff]  }
  0x47   :  { %v4912_v43 = vrot.slane %v486_v38, %v489_v39   ;;  %v4915_v44 = vrot.slane %v492_v40, %v4904_v41  ;;  %367 = vadd.xlane.f32.xlu0 %v366_v46  ;;  %v4124_v54 = vld [vmem:[%s5990_s8] sm:$0xff]   ;;  %v4130_v61 = vld [vmem:[%s5990_s8 + $0x30] sm:$0xff]   ;;  %v4131_v62 = vld [vmem:[%s5990_s8 + $0x38] sm:$0xff]   ;;  %vm644_vm8 = vcmp.gt.f32.partialorder %v4909_v42, 0.0 }
  0x48   :  { %3762 = vmatpush3.bf16.msra.mxu0 %v4106_v2  ;;  %3774 = vmatpush3.bf16.msra.mxu1 %v4110_v10  ;;  %v4128_v59 = vld [vmem:[%s5990_s8 + $0x20] sm:$0xff]  }
  0x49   :  { %3763 = vmatprep.subr.bf16.mxu0 %v4684_v1  ;;  %3775 = vmatprep.subr.bf16.mxu1 %v4684_v1  ;;  %6117 = vst [vmem:[#allocation16_spill] sm:$0xff] %v4915_v44  ;;  %v497_v47 = vpack.c.bf16 %v4912_v43, %v4912_v43 }
  0x4c   :  { %3764 = vmatpush3.bf16.msra.mxu0 %v123_v9  ;;  %3776 = vmatpush3.bf16.msra.mxu1 %v4111_v11 }
  0x4d   :  { %3789 = vmatprep.subr.mxu0 %v4684_v1  ;;  %3777 = vmatprep.subr.bf16.mxu1 %v4684_v1 }
  0x4f   :  { %3766 = vmatmul.mubr.msk.bf16.vlgmr.msra.gmra.mrb[0].mxu0 %vm117_vm3, %v96_v4 }
  0x50   :  { %3791 = vmatprep.mubr.msk.f32.mxu0 %vm4685_vm0, %v4684_v1  ;;  %3778 = vmatpush3.bf16.msra.mxu1 %v4112_v12 }
  0x51   :  { %3779 = vmatprep.subr.bf16.mxu1 %v4684_v1 }
  0x54   :  { %3780 = vmatpush3.bf16.msra.mxu1 %v4113_v13  ;;  %v3409_v13 = vld [vmem:[%s5991_s9] ss:$0 sm:$0xff]  ;;  %s4980_s9 = smov 0.0  }
  0x55   :  { %3781 = vmatprep.subr.bf16.mxu1 %v4684_v1 }
  0x58   :  { %3782 = vmatpush3.bf16.msra.mxu1 %v4114_v14 }
  0x59   :  { %3783 = vmatprep.subr.bf16.mxu1 %v4684_v1 }
  0x5c   :  { %3784 = vmatpush3.bf16.msra.mxu1 %v4115_v15 }
  0x5d   :  { %3814 = vmatprep.subr.bf16.mxu1 %v4684_v1 }
  0xce   :  { %v169_v16 = vpop.xlane.xlu0 %168 }
  0xcf   :  { %v170_v17 = vmax.f32 %v169_v16, 1.0 }
  0xd1   :  { %4132 = vrcp.f32 %v170_v17 }
  0xd4   :  { %v368_v4 = vpop.xlane.xlu0 %367 }
  0xd5   :  { %v369_v5 = vmax.f32 %v368_v4, 1.0 }
  0xdb   :  { %v4133_v18 = vpop.eup %4132 }
 0x122   :  { %v159_v19 = vpop.f32.mrb[0].mxu0 }
 0x123   :  { %v172_v20 = vmul.f32 %v4133_v18, %v159_v19  ;;  %v3767_v21 = vpop.f32.mrb[1].mxu0 }
 0x124   :  { %v162_v22 = vpop.f32.mrb[2].mxu0 }
 0x125   :  { %v173_v24 = vpack.c.bf16 %v172_v20, %v172_v20  ;;  %v3768_v25 = vpop.f32.mrb[3].mxu0 }
 0x127   :  { %3786 = vmatmul.mubr.bf16.vlgmr.msra.gmra.mrb[0].mxu1 %v173_v24 }
 0x128   :  { %3815 = vmatpush3.bf16.msra.mxu1 %v4116_v23  ;;  %3830 = vmatprep.mubr.msk.bf16.mxu1 %vm4685_vm0, %v4684_v1 }
 0x129   :  { %3816 = vmatprep.subr.bf16.mxu1 %v4684_v1 }
 0x12c   :  { %3817 = vmatpush3.bf16.msra.mxu1 %v4117_v26 }
 0x12d   :  { %3818 = vmatprep.subr.bf16.mxu1 %v4684_v1 }
 0x130   :  { %3819 = vmatpush3.bf16.msra.mxu1 %v4118_v27 }
 0x131   :  { %3820 = vmatprep.subr.bf16.mxu1 %v4684_v1 }
 0x134   :  { %3821 = vmatpush3.bf16.msra.mxu1 %v4119_v28 }
 0x135   :  { %3822 = vmatprep.subr.bf16.mxu1 %v4684_v1 }
 0x138   :  { %3823 = vmatpush3.bf16.msra.mxu1 %v4120_v29 }
 0x139   :  { %3824 = vmatprep.subr.bf16.mxu1 %v4684_v1 }
 0x13c   :  { %3825 = vmatpush3.bf16.msra.mxu1 %v4121_v30 }
 0x13d   :  { %3826 = vmatprep.subr.bf16.mxu1 %v4684_v1 }
 0x140   :  { %3827 = vmatpush3.bf16.msra.mxu1 %v4122_v32 }
 0x141   :  { %3828 = vmatprep.subr.bf16.mxu1 %v4684_v1 }
 0x144   :  { %3829 = vmatpush3.bf16.msra.mxu1 %v4123_v34 }
 0x147   :  { %3831 = vmatmul.mubr.bf16.vlgmr.msra.gmra.mrb[4].mxu1 %v497_v47 }
 0x1fa   :  { %v279_v49 = vpop.f32.mrb[0].mxu1 }
 0x1fb   :  { %v280_v50 = vadd.f32 %v3398_v48, %v279_v49  ;;  %v3787_v51 = vpop.f32.mrb[1].mxu1 }
 0x1fc   :  { %v282_v52 = vpop.f32.mrb[2].mxu1 }
 0x1fd   :  { %4134 = vtanh.f32 %v280_v50  ;;  %v3788_v53 = vpop.f32.mrb[3].mxu1 }
 0x1fe   :  { %4136 = vrcp.f32 %v369_v5 }
 0x207   :  { %v4135_v55 = vpop.eup %4134 }
 0x208   :  { %3790 = vmatpush3.msk.msra.mxu0 %vm291_vm6, %v4135_v55  ;;  %v4137_v6 = vpop.eup %4136  ;;  %v603_v11 = vpack.c.bf16 %v4135_v55, %v4135_v55 }
 0x209   :  { %3792 = vmatmul.mubr.msk.f32.vlgmr.msra.gmra.mrb[4].mxu0 %vm287_vm7, %v4909_v42  ;;  %3794 = vmatprep.subr.bf16.mxu0 %v4684_v1 }
 0x20a   :  { %3795 = vmatpush3.bf16.msra.mxu0 %v4124_v54  ;;  %3810 = vmatprep.mubr.msk.bf16.mxu0 %vm4685_vm0, %v4684_v1 }
 0x20b   :  { %3796 = vmatprep.subr.bf16.mxu0 %v4684_v1 }
 0x20e   :  { %3797 = vmatpush3.bf16.msra.mxu0 %v4125_v56 }
 0x20f   :  { %3798 = vmatprep.subr.bf16.mxu0 %v4684_v1 }
 0x212   :  { %3799 = vmatpush3.bf16.msra.mxu0 %v4126_v57 }
 0x213   :  { %3800 = vmatprep.subr.bf16.mxu0 %v4684_v1 }
 0x216   :  { %3801 = vmatpush3.bf16.msra.mxu0 %v4127_v58 }
 0x217   :  { %3802 = vmatprep.subr.bf16.mxu0 %v4684_v1 }
 0x21a   :  { %3803 = vmatpush3.bf16.msra.mxu0 %v4128_v59  ;;  %v596_v63 = vpop.f32.mrb[4].mxu1 }
 0x21b   :  { %3804 = vmatprep.subr.bf16.mxu0 %v4684_v1  ;;  %v3832_v0 = vpop.f32.mrb[5].mxu1  ;;  %v602_v12 = vpack.c.bf16 %v596_v63, %v596_v63 }
 0x21c   :  { %v599_v2 = vpop.f32.mrb[6].mxu1 }
 0x21d   :  { %v3833_v3 = vpop.f32.mrb[7].mxu1 }
 0x21e   :  { %3805 = vmatpush3.bf16.msra.mxu0 %v4129_v60 }
 0x21f   :  { %3806 = vmatprep.subr.bf16.mxu0 %v4684_v1 }
 0x222   :  { %3807 = vmatpush3.bf16.msra.mxu0 %v4130_v61 }
 0x223   :  { %3808 = vmatprep.subr.bf16.mxu0 %v4684_v1 }
 0x226   :  { %3809 = vmatpush3.bf16.msra.mxu0 %v4131_v62 }
 0x227   :  { %3834 = vmatprep.subr.bf16.mxu0 %v4684_v1 }
 0x2dc   :  { %v361_v7 = vpop.f32.mrb[4].mxu0 }
 0x2dd   :  { %v371_v8 = vmul.f32 %v4137_v6, %v361_v7  ;;  %v3793_v9 = vpop.f32.mrb[5].mxu0 }
 0x2df   :  { %v372_v10 = vpack.c.bf16 %v371_v8, %v371_v8 }
 0x2e1   :  { %3811 = vmatmul.mubr.bf16.vlgmr.msra.gmra.mrb[8].mxu0 %v372_v10 }
 0x2e2   :  { %3835 = vmatpush3.bf16.xpose.msra.mxu0 %v603_v11  ;;  %3836 = vmatprep.mubr.msk.bf16.mxu0 %vm4685_vm0, %v4684_v1 }
 0x2e3   :  { %3840 = vmatprep.subr.mxu0 %v4684_v1 }
 0x2e9   :  { %3837 = vmatmul.mubr.bf16.vlgmr.msra.gmra.mrb[12].mxu0 %v602_v12 }
 0x2ea   :  { %3841 = vmatpush3.msk.msra.mxu0 %vm291_vm6, %v4135_v55  ;;  %3842 = vmatprep.mubr.msk.f32.mxu0 %vm4685_vm0, %v4684_v1 }
 0x3b4   :  { %v478_v14 = vpop.f32.mrb[8].mxu0 }
 0x3b5   :  { %v479_v15 = vadd.f32 %v3409_v13, %v478_v14  ;;  %v3812_v16 = vpop.f32.mrb[9].mxu0 }
 0x3b6   :  { %v481_v17 = vpop.f32.mrb[10].mxu0 }
 0x3b7   :  { %4138 = vtanh.f32 %v479_v15  ;;  %v3813_v18 = vpop.f32.mrb[11].mxu0 }
 0x3bc   :  { %v638_v19 = vpop.f32.mrb[12].mxu0 }
 0x3bd   :  { %v645_v20 = vsel %vm644_vm8, %v638_v19, -1e+30  ;;  %v3838_v21 = vpop.f32.mrb[13].mxu0 }
 0x3be   :  { %v646_v22 = vsel %vm365_vm5, %v645_v20, -inf  ;;  %v641_v23 = vpop.f32.mrb[14].mxu0 }
 0x3bf   :  { %647 = vmax.xlane.f32.xlu1 %v646_v22  ;;  %v3839_v1 = vpop.f32.mrb[15].mxu0 }
 0x3c1   :  { %v4139_v24 = vpop.eup %4138  }
 0x44c   :  { %v648_v25 = vpop.xlane.xlu1 %647 }
 0x44d   :  { %v649_v26 = vmax.f32 %v648_v25, 0.0 }
 0x44f   :  { %v650_v27 = vsub.f32 %v645_v20, %v649_v26  ;;  %v656_v31 = vsub.f32 0.0, %v649_v26 }
 0x451   :  { %v651_v28 = vmul.f32 1.442695, %v650_v27  ;;  %v657_v32 = vmul.f32 1.442695, %v656_v31 }
 0x453   :  { %4140 = vpow2.f32 %v651_v28 }
 0x454   :  { %4142 = vpow2.f32 %v657_v32 }
 0x45d   :  { %v4141_v29 = vpop.eup %4140 }
 0x45e   :  { %v653_v30 = vsel %vm365_vm5, %v4141_v29, 0.0  ;;  %v4143_v34 = vpop.eup %4142 }
 0x45f   :  { %654 = vadd.xlane.f32.xlu1 %v653_v30 }
 0x4ec   :  { %v655_v35 = vpop.xlane.xlu1 %654 }
 0x4ed   :  { %v659_v36 = vadd.f32 %v4143_v34, %v655_v35 }
 0x4ef   :  { %4144 = vrcp.f32 %v659_v36 }
 0x4f9   :  { %v4145_v38 = vpop.eup %4144 }
 0x4fa   :  { %v661_v39 = vmul.f32 %v4145_v38, %v4141_v29 }
 0x4fc   :  { %3843 = vmatmul.mubr.msk.f32.vlgmr.msra.gmra.mrb[6].mxu0 %vm287_vm7, %v661_v39 }
 0x5cf   :  { %v4978_v40 = vpop.f32.mrb[6].mxu0 }
 0x5d0   :  { %6119 = vst [vmem:[#allocation18_spill] sm:$0xff] %v4978_v40  ;;  %v3844_v42 = vpop.f32.mrb[7].mxu0 }
 0x5d1 LB: > { %v6120_v33 = vld [vmem:[#allocation14_spill] sm:$0xff]  ;;  %v6121_v41 = vld [vmem:[#allocation15_spill] sm:$0xff]  ;;  %s6156_s11 = sld [smem:[#allocation75_spill]]  ;;  %v6158_v44 = vld [vmem:[#allocation16_spill] sm:$0xff]  ;;  %s6159_s14 = sld [smem:[#allocation77_spill]]  ;;  %vm4688_vm9 = vmmov 0   ;;  %v4669_v24 = vphi %v4139_v24, %v6267_v24   ;;  %s4665_s9 = sphi %s4980_s9, %s6266_s9   ;;  %s4677_s5 = sphi %s4987_s5, %s747_s5   ;;  %v4673_v43 = vphi %v4912_v43, %v4487_v43  }
 0x5d2   : > { %v4146_v46 = vld [vmem:[#allocation6 + $0x4] ss:$16 sps:$4 sm:$0xff]   ;;  %v4148_v48 = vld [vmem:[#allocation6 + $0xc] ss:$16 sps:$4 sm:$0xff]   ;;  %v4150_v49 = vld [vmem:[#allocation6] ss:$16 sps:$4 sm:$0xff]  }
 0x5d3   : > { %1352 = vmatprep.subr.bf16.mxu0 %v4146_v46  ;;  %v4151_v50 = vld [vmem:[#allocation6 + $0x8] ss:$16 sps:$4 sm:$0xff]   ;;  %1434 = vmatprep.subr.bf16.mxu1 %v4148_v48  ;;  %v4152_v51 = vld [vmem:[#allocation6 + $0x24] ss:$16 sps:$4 sm:$0xff]   ;;  %v4154_v52 = vld [vmem:[#allocation6 + $0x2c] ss:$16 sps:$4 sm:$0xff]  }
 0x5d4   : > { %1353 = vmatpush1.bf16.msra.mxu0 %v4150_v49  ;;  %1435 = vmatpush1.bf16.msra.mxu1 %v4151_v50  ;;  %v4156_v53 = vld [vmem:[#allocation6 + $0x20] ss:$16 sps:$4 sm:$0xff]   ;;  %v4157_v54 = vld [vmem:[#allocation6 + $0x28] ss:$16 sps:$4 sm:$0xff]   ;;  %v4158_v55 = vld [vmem:[#allocation6 + $0x44] ss:$16 sps:$4 sm:$0xff]  }
 0x5d5   : > { %1354 = vmatprep.subr.bf16.mxu0 %v4152_v51  ;;  %1436 = vmatprep.subr.bf16.mxu1 %v4154_v52  ;;  %v4160_v56 = vld [vmem:[#allocation6 + $0x4c] ss:$16 sps:$4 sm:$0xff]   ;;  %v4162_v57 = vld [vmem:[#allocation6 + $0x40] ss:$16 sps:$4 sm:$0xff]   ;;  %v4163_v58 = vld [vmem:[#allocation6 + $0x48] ss:$16 sps:$4 sm:$0xff]  }
 0x5d6   : > { %v4164_v59 = vld [vmem:[#allocation6 + $0x64] ss:$16 sps:$4 sm:$0xff]   ;;  %v4166_v60 = vld [vmem:[#allocation6 + $0x6c] ss:$16 sps:$4 sm:$0xff]   ;;  %v4168_v61 = vld [vmem:[#allocation6 + $0x60] ss:$16 sps:$4 sm:$0xff]  }
 0x5d7   : > { %v6122_v40 = vld [vmem:[#allocation18_spill] sm:$0xff]  ;;  %v4172_v0 = vld [vmem:[#allocation6 + $0x8c] ss:$16 sps:$4 sm:$0xff]   ;;  %s6167_s13 = sld [smem:[#allocation76_spill]]  ;;  %s6172_s15 = sld [smem:[#allocation78_spill]] }
 0x5d8   : > { %v752_v47 = vpack.c.bf16 %v6122_v40, %v6122_v40  ;;  %1355 = vmatpush1.bf16.msra.mxu0 %v4156_v53  ;;  %1437 = vmatpush1.bf16.msra.mxu1 %v4157_v54  ;;  %v4169_v62 = vld [vmem:[#allocation6 + $0x68] ss:$16 sps:$4 sm:$0xff]   ;;  %v4170_v63 = vld [vmem:[#allocation6 + $0x84] ss:$16 sps:$4 sm:$0xff]   ;;  %v4174_v2 = vld [vmem:[#allocation6 + $0x80] ss:$16 sps:$4 sm:$0xff]  }
 0x5d9   : > { %1356 = vmatprep.subr.bf16.mxu0 %v4158_v55  ;;  %1438 = vmatprep.subr.bf16.mxu1 %v4160_v56  ;;  %v4175_v3 = vld [vmem:[#allocation6 + $0x88] ss:$16 sps:$4 sm:$0xff]   ;;  %v4176_v4 = vld [vmem:[#allocation6 + $0xa4] ss:$16 sps:$4 sm:$0xff]   ;;  %v4178_v5 = vld [vmem:[#allocation6 + $0xac] ss:$16 sps:$4 sm:$0xff]  }
 0x5da   : > { %1384 = vmatprep.mubr.bf16.mxu0 %v752_v47  ;;  %1466 = vmatprep.mubr.bf16.mxu1 %v752_v47  ;;  %v4180_v6 = vld [vmem:[#allocation6 + $0xa0] ss:$16 sps:$4 sm:$0xff]   ;;  %v4181_v7 = vld [vmem:[#allocation6 + $0xa8] ss:$16 sps:$4 sm:$0xff]   ;;  %v4182_v8 = vld [vmem:[#allocation6 + $0xc4] ss:$16 sps:$4 sm:$0xff]  }
 0x5db   : > { %v4184_v9 = vld [vmem:[#allocation6 + $0xcc] ss:$16 sps:$4 sm:$0xff]   ;;  %v4186_v10 = vld [vmem:[#allocation6 + $0xc0] ss:$16 sps:$4 sm:$0xff]   ;;  %v4187_v11 = vld [vmem:[#allocation6 + $0xc8] ss:$16 sps:$4 sm:$0xff]  }
 0x5dc   : > { %1357 = vmatpush1.bf16.msra.mxu0 %v4162_v57  ;;  %1439 = vmatpush1.bf16.msra.mxu1 %v4163_v58  ;;  %v4188_v12 = vld [vmem:[#allocation6 + $0xe4] ss:$16 sps:$4 sm:$0xff]   ;;  %v4190_v13 = vld [vmem:[#allocation6 + $0xec] ss:$16 sps:$4 sm:$0xff]   ;;  %v4192_v14 = vld [vmem:[#allocation6 + $0xe0] ss:$16 sps:$4 sm:$0xff]   ;;  %v751_v58 = vpack.c.bf16 %v4673_v43, %v4673_v43 }
 0x5dd   : > { %1358 = vmatprep.subr.bf16.mxu0 %v4164_v59  ;;  %1440 = vmatprep.subr.bf16.mxu1 %v4166_v60  ;;  %v4193_v15 = vld [vmem:[#allocation6 + $0xe8] ss:$16 sps:$4 sm:$0xff]   ;;  %v4194_v16 = vld [vmem:[#allocation6 + $0x104] ss:$16 sps:$4 sm:$0xff]   ;;  %v4196_v17 = vld [vmem:[#allocation6 + $0x10c] ss:$16 sps:$4 sm:$0xff]  }
 0x5de   : > { %v4198_v18 = vld [vmem:[#allocation6 + $0x100] ss:$16 sps:$4 sm:$0xff]   ;;  %v4199_v19 = vld [vmem:[#allocation6 + $0x108] ss:$16 sps:$4 sm:$0xff]   ;;  %v4200_v20 = vld [vmem:[#allocation6 + $0x124] ss:$16 sps:$4 sm:$0xff]  }
 0x5df   : > { %v4202_v21 = vld [vmem:[#allocation6 + $0x12c] ss:$16 sps:$4 sm:$0xff]   ;;  %v4204_v22 = vld [vmem:[#allocation6 + $0x120] ss:$16 sps:$4 sm:$0xff]   ;;  %v4205_v23 = vld [vmem:[#allocation6 + $0x128] ss:$16 sps:$4 sm:$0xff]  }
 0x5e0   : > { %1359 = vmatpush1.bf16.msra.mxu0 %v4168_v61  ;;  %1441 = vmatpush1.bf16.msra.mxu1 %v4169_v62  ;;  %v4206_v1 = vld [vmem:[#allocation6 + $0x144] ss:$16 sps:$4 sm:$0xff]   ;;  %v4208_v25 = vld [vmem:[#allocation6 + $0x14c] ss:$16 sps:$4 sm:$0xff]   ;;  %v4210_v26 = vld [vmem:[#allocation6 + $0x140] ss:$16 sps:$4 sm:$0xff]  }
 0x5e1   : > { %1360 = vmatprep.subr.bf16.mxu0 %v4170_v63  ;;  %1442 = vmatprep.subr.bf16.mxu1 %v4172_v0  ;;  %v4211_v27 = vld [vmem:[#allocation6 + $0x148] ss:$16 sps:$4 sm:$0xff]   ;;  %v4212_v28 = vld [vmem:[#allocation6 + $0x164] ss:$16 sps:$4 sm:$0xff]   ;;  %v4214_v29 = vld [vmem:[#allocation6 + $0x16c] ss:$16 sps:$4 sm:$0xff]  }
 0x5e2   : > { %v4216_v30 = vld [vmem:[#allocation6 + $0x160] ss:$16 sps:$4 sm:$0xff]   ;;  %v4217_v31 = vld [vmem:[#allocation6 + $0x168] ss:$16 sps:$4 sm:$0xff]   ;;  %v4218_v32 = vld [vmem:[#allocation6 + $0x184] ss:$16 sps:$4 sm:$0xff]  }
 0x5e3   : > { %v4220_v34 = vld [vmem:[#allocation6 + $0x18c] ss:$16 sps:$4 sm:$0xff]   ;;  %v4222_v35 = vld [vmem:[#allocation6 + $0x180] ss:$16 sps:$4 sm:$0xff]   ;;  %v4223_v36 = vld [vmem:[#allocation6 + $0x188] ss:$16 sps:$4 sm:$0xff]  }
 0x5e4   : > { %1361 = vmatpush1.bf16.msra.mxu0 %v4174_v2  ;;  %1443 = vmatpush1.bf16.msra.mxu1 %v4175_v3  ;;  %v4224_v38 = vld [vmem:[#allocation6 + $0x1a4] ss:$16 sps:$4 sm:$0xff]   ;;  %v4226_v39 = vld [vmem:[#allocation6 + $0x1ac] ss:$16 sps:$4 sm:$0xff]   ;;  %v4228_v42 = vld [vmem:[#allocation6 + $0x1a0] ss:$16 sps:$4 sm:$0xff]  }
 0x5e5   : > { %1362 = vmatprep.subr.bf16.mxu0 %v4176_v4  ;;  %1444 = vmatprep.subr.bf16.mxu1 %v4178_v5  ;;  %v4229_v46 = vld [vmem:[#allocation6 + $0x1a8] ss:$16 sps:$4 sm:$0xff]   ;;  %v4230_v47 = vld [vmem:[#allocation6 + $0x1c4] ss:$16 sps:$4 sm:$0xff]   ;;  %v4232_v48 = vld [vmem:[#allocation6 + $0x1cc] ss:$16 sps:$4 sm:$0xff]  }
 0x5e6   : > { %v4234_v49 = vld [vmem:[#allocation6 + $0x1c0] ss:$16 sps:$4 sm:$0xff]   ;;  %v4235_v50 = vld [vmem:[#allocation6 + $0x1c8] ss:$16 sps:$4 sm:$0xff]   ;;  %v4236_v51 = vld [vmem:[#allocation6 + $0x1e4] ss:$16 sps:$4 sm:$0xff]  }
 0x5e7   : > { %v4238_v52 = vld [vmem:[#allocation6 + $0x1ec] ss:$16 sps:$4 sm:$0xff]   ;;  %v4240_v53 = vld [vmem:[#allocation6 + $0x1e0] ss:$16 sps:$4 sm:$0xff]   ;;  %v4241_v54 = vld [vmem:[#allocation6 + $0x1e8] ss:$16 sps:$4 sm:$0xff]  }
 0x5e8   : > { %1363 = vmatpush1.bf16.msra.mxu0 %v4180_v6  ;;  %1445 = vmatpush1.bf16.msra.mxu1 %v4181_v7  ;;  %v4244_v55 = vld [vmem:[#allocation6 + $0x204] ss:$16 sps:$4 sm:$0xff]   ;;  %v4247_v56 = vld [vmem:[#allocation6 + $0x20c] ss:$16 sps:$4 sm:$0xff]   ;;  %v4242_v57 = vld [vmem:[#allocation6 + $0x200] ss:$16 sps:$4 sm:$0xff]  }
 0x5e9   : > { %1364 = vmatprep.subr.bf16.mxu0 %v4182_v8  ;;  %1446 = vmatprep.subr.bf16.mxu1 %v4184_v9  ;;  %v4245_v59 = vld [vmem:[#allocation6 + $0x208] ss:$16 sps:$4 sm:$0xff]   ;;  %v4250_v60 = vld [vmem:[#allocation6 + $0x224] ss:$16 sps:$4 sm:$0xff]   ;;  %v4253_v61 = vld [vmem:[#allocation6 + $0x22c] ss:$16 sps:$4 sm:$0xff]  }
 0x5ea   : > { %v4248_v62 = vld [vmem:[#allocation6 + $0x220] ss:$16 sps:$4 sm:$0xff]   ;;  %v4251_v63 = vld [vmem:[#allocation6 + $0x228] ss:$16 sps:$4 sm:$0xff]   ;;  %v4256_v0 = vld [vmem:[#allocation6 + $0x244] ss:$16 sps:$4 sm:$0xff]  }
 0x5eb   : > { %v4259_v2 = vld [vmem:[#allocation6 + $0x24c] ss:$16 sps:$4 sm:$0xff]   ;;  %v4254_v3 = vld [vmem:[#allocation6 + $0x240] ss:$16 sps:$4 sm:$0xff]   ;;  %v4257_v4 = vld [vmem:[#allocation6 + $0x248] ss:$16 sps:$4 sm:$0xff]  }
 0x5ec   : > { %1365 = vmatpush1.bf16.msra.mxu0 %v4186_v10  ;;  %1447 = vmatpush1.bf16.msra.mxu1 %v4187_v11  ;;  %v4686_v43 = vmov 0   ;;  %v4262_v5 = vld [vmem:[#allocation6 + $0x264] ss:$16 sps:$4 sm:$0xff]   ;;  %v4265_v6 = vld [vmem:[#allocation6 + $0x26c] ss:$16 sps:$4 sm:$0xff]   ;;  %s6176_s4 = sld [smem:[#allocation73_spill]] }
 0x5ed   : > { %1366 = vmatprep.subr.bf16.mxu0 %v4188_v12  ;;  %1448 = vmatprep.subr.bf16.mxu1 %v4190_v13  ;;  %v4260_v7 = vld [vmem:[#allocation6 + $0x260] ss:$16 sps:$4 sm:$0xff]   ;;  %v4263_v8 = vld [vmem:[#allocation6 + $0x268] ss:$16 sps:$4 sm:$0xff]   ;;  %v4268_v9 = vld [vmem:[#allocation6 + $0x284] ss:$16 sps:$4 sm:$0xff]  }
 0x5ee   : > { %v4271_v10 = vld [vmem:[#allocation6 + $0x28c] ss:$16 sps:$4 sm:$0xff]   ;;  %v4266_v11 = vld [vmem:[#allocation6 + $0x280] ss:$16 sps:$4 sm:$0xff]   ;;  %v4269_v12 = vld [vmem:[#allocation6 + $0x288] ss:$16 sps:$4 sm:$0xff]  }
 0x5ef   : > { %v4274_v13 = vld [vmem:[#allocation6 + $0x2a4] ss:$16 sps:$4 sm:$0xff]   ;;  %v5177_v40 = vld [vmem:[#allocation7 + $0x188] ss:$16 sps:$4 sm:$0xff]   ;;  %s5751_s22 = sshll.u32 %s4677_s5, 3  ;;  %s6265_s6 = sld [smem:[#allocation74_spill]] }
 0x5f0   : > { %1367 = vmatpush1.bf16.msra.mxu0 %v4192_v14  ;;  %1449 = vmatpush1.bf16.msra.mxu1 %v4193_v15  ;;  %v4277_v14 = vld [vmem:[#allocation6 + $0x2ac] ss:$16 sps:$4 sm:$0xff]   ;;  %v4272_v15 = vld [vmem:[#allocation6 + $0x2a0] ss:$16 sps:$4 sm:$0xff]   ;;  %6149 = vst [vmem:[#allocation45_spill] sm:$0xff] %v5177_v40  ;;  %s5754_s23 = sld [smem:[#allocation2 + %s5751_s22]] }
 0x5f1   : > { %1368 = vmatprep.subr.bf16.mxu0 %v4194_v16  ;;  %1450 = vmatprep.subr.bf16.mxu1 %v4196_v17  ;;  %v4275_v16 = vld [vmem:[#allocation6 + $0x2a8] ss:$16 sps:$4 sm:$0xff]   ;;  %v4280_v17 = vld [vmem:[#allocation6 + $0x2c4] ss:$16 sps:$4 sm:$0xff]   ;;  %s2177_s24 = sadd.s32 1, %s5751_s22  ;;  %s2525_s12 = sadd.s32 2, %s5751_s22 }
 0x5f2   : > { %v6184_v45 = vld [vmem:[#allocation17_spill] sm:$0xff]  ;;  %s5759_s26 = sld [smem:[#allocation2 + %s2177_s24]]  ;;  %s2533_s20 = sadd.s32 3, %s5751_s22 }
 0x5f3   : > { %s5796_s8 = sld [smem:[#allocation2 + %s2525_s12]]  ;;  %s3121_s2 = sadd.s32 6, %s5751_s22 }
 0x5f4   : > { %1369 = vmatpush1.bf16.msra.mxu0 %v4198_v18  ;;  %1451 = vmatpush1.bf16.msra.mxu1 %v4199_v19  ;;  %v4283_v18 = vld [vmem:[#allocation6 + $0x2cc] ss:$16 sps:$4 sm:$0xff]   ;;  %v4278_v19 = vld [vmem:[#allocation6 + $0x2c0] ss:$16 sps:$4 sm:$0xff]   ;;  %s5799_s21 = sld [smem:[#allocation2 + %s2533_s20]]  ;;  %s2823_s25 = sadd.s32 4, %s5751_s22 }
 0x5f5   : > { %1370 = vmatprep.subr.bf16.mxu0 %v4200_v20  ;;  %1452 = vmatprep.subr.bf16.mxu1 %v4202_v21  ;;  %v4281_v20 = vld [vmem:[#allocation6 + $0x2c8] ss:$16 sps:$4 sm:$0xff]   ;;  %v4286_v21 = vld [vmem:[#allocation6 + $0x2e4] ss:$16 sps:$4 sm:$0xff]   ;;  %s5811_s28 = sld [smem:[#allocation2 + %s3121_s2]]  ;;  %s3129_s29 = sadd.s32 7, %s5751_s22 }
 0x5f6   : > { %s5814_s30 = sld [smem:[#allocation2 + %s2823_s25]]  ;;  %s2831_s0 = sadd.s32 5, %s5751_s22 }
 0x5f7   : > { %s5822_s1 = sld [smem:[#allocation2 + %s3129_s29]]  ;;  %p2173_p7 = scmp.ne.s32.totalorder %s5754_s23, 0 }
 0x5f8   : > { %1371 = vmatpush1.bf16.msra.mxu0 %v4204_v22  ;;  %1453 = vmatpush1.bf16.msra.mxu1 %v4205_v23  ;;  %v4289_v22 = vld [vmem:[#allocation6 + $0x2ec] ss:$16 sps:$4 sm:$0xff]   ;;  %v4284_v23 = vld [vmem:[#allocation6 + $0x2e0] ss:$16 sps:$4 sm:$0xff]   ;;  %s5824_s17 = sld [smem:[#allocation2 + %s2831_s0]]  ;;  %p2182_p8 = scmp.ne.s32.totalorder %s5759_s26, 0 }
 0x5f9   : > { %1372 = vmatprep.subr.bf16.mxu0 %v4206_v1  ;;  %1454 = vmatprep.subr.bf16.mxu1 %v4208_v25  ;;  %v4287_v1 = vld [vmem:[#allocation6 + $0x2e8] ss:$16 sps:$4 sm:$0xff]   ;;  %v5005_v25 = vld [vmem:[#allocation7 + $0x4] ss:$16 sps:$4 sm:$0xff]   ;;  %s2174_s3 = scalar_select %p2173_p7, 1, 0 }
 0x5fa   : > { %6123 = vst [vmem:[#allocation19_spill] sm:$0xff] %v5005_v25  ;;  %s2183_s18 = scalar_select %p2182_p8, 1, 0 }
 0x5fb   : > { %s2175_s10 = scvt.s32.f32 %s2174_s3  ;;  %s4689_s22 = smov 1.0  }
 0x5fc   : > { %1373 = vmatpush1.bf16.msra.mxu0 %v4210_v26  ;;  %1455 = vmatpush1.bf16.msra.mxu1 %v4211_v27  ;;  %v5007_v26 = vld [vmem:[#allocation7] ss:$16 sps:$4 sm:$0xff]   ;;  %v753_v27 = vpack.c.bf16 %v4669_v24, %v4669_v24  ;;  %s2184_s27 = scvt.s32.f32 %s2183_s18  ;;  %p2529_p9 = scmp.ne.s32.totalorder %s5796_s8, 0 }
 0x5fd   : > { %1374 = vmatprep.subr.bf16.mxu0 %v4212_v28  ;;  %1456 = vmatprep.subr.bf16.mxu1 %v4214_v29  ;;  %v5013_v28 = vld [vmem:[#allocation7 + $0x24] ss:$16 sps:$4 sm:$0xff]   ;;  %v5015_v29 = vld [vmem:[#allocation7 + $0x20] ss:$16 sps:$4 sm:$0xff]   ;;  %p2537_p10 = scmp.ne.s32.totalorder %s5799_s21, 0  ;;  %p2827_p11 = scmp.ne.s32.totalorder %s5814_s30, 0 }
 0x5fe   : > { %s2185_s19 = sadd.f32 %s2184_s27, %s2175_s10  ;;  %p2835_p12 = scmp.ne.s32.totalorder %s5824_s17, 0 }
 0x5ff   : > { %s2530_s12 = scalar_select %p2529_p9, 1, 0 }
 0x600   : > { %1375 = vmatpush1.bf16.msra.mxu0 %v4216_v30  ;;  %1457 = vmatpush1.bf16.msra.mxu1 %v4217_v31  ;;  %v5018_v30 = vld [vmem:[#allocation7 + $0x44] ss:$16 sps:$4 sm:$0xff]   ;;  %v5021_v31 = vld [vmem:[#allocation7 + $0x40] ss:$16 sps:$4 sm:$0xff]   ;;  %s2538_s20 = scalar_select %p2537_p10, 1, 0 }
 0x601   : > { %1376 = vmatprep.subr.bf16.mxu0 %v4218_v32  ;;  %1458 = vmatprep.subr.bf16.mxu1 %v4220_v34  ;;  %v5024_v32 = vld [vmem:[#allocation7 + $0x64] ss:$16 sps:$4 sm:$0xff]   ;;  %v5028_v34 = vld [vmem:[#allocation7 + $0x60] ss:$16 sps:$4 sm:$0xff]   ;;  %s2531_s2 = scvt.s32.f32 %s2530_s12  ;;  %p3125_p13 = scmp.ne.s32.totalorder %s5811_s28, 0 }
 0x602   : > { %s2539_s25 = scvt.s32.f32 %s2538_s20  ;;  %p3133_p0 = scmp.ne.s32.totalorder %s5822_s1, 0 }
 0x603   : > { %s2828_s29 = scalar_select %p2827_p11, 1, 0 }
 0x604   : > { %1377 = vmatpush1.bf16.msra.mxu0 %v4222_v35  ;;  %1459 = vmatpush1.bf16.msra.mxu1 %v4223_v36  ;;  %v5031_v35 = vld [vmem:[#allocation7 + $0x84] ss:$16 sps:$4 sm:$0xff]   ;;  %v5033_v36 = vld [vmem:[#allocation7 + $0x80] ss:$16 sps:$4 sm:$0xff]   ;;  %s2836_s0 = scalar_select %p2835_p12, 1, 0 }
 0x605   : > { %1378 = vmatprep.subr.bf16.mxu0 %v4224_v38  ;;  %1460 = vmatprep.subr.bf16.mxu1 %v4226_v39  ;;  %v5037_v38 = vld [vmem:[#allocation7 + $0xa4] ss:$16 sps:$4 sm:$0xff]   ;;  %v5039_v39 = vld [vmem:[#allocation7 + $0xa0] ss:$16 sps:$4 sm:$0xff]   ;;  %s2540_s3 = sadd.f32 %s2539_s25, %s2531_s2  ;;  %s2829_s18 = scvt.s32.f32 %s2828_s29 }
 0x606   : > { %s2837_s10 = scvt.s32.f32 %s2836_s0  ;;  %s747_s5 = sadd.s32 1, %s4677_s5  }
 0x607   : > { %s2572_s27 = smax.f32 %s4689_s22, %s2540_s3  ;;  %p744_p4 = scmp.ge.s32.totalorder %s747_s5, 2  }
 0x608   : > { %1379 = vmatpush1.bf16.msra.mxu0 %v4228_v42  ;;  %1461 = vmatpush1.bf16.msra.mxu1 %v4229_v46  ;;  %v5042_v42 = vld [vmem:[#allocation7 + $0xc] ss:$16 sps:$4 sm:$0xff]   ;;  %v5045_v46 = vld [vmem:[#allocation7 + $0x8] ss:$16 sps:$4 sm:$0xff]  }
 0x609   : > { %1380 = vmatprep.subr.bf16.mxu0 %v4230_v47  ;;  %1462 = vmatprep.subr.bf16.mxu1 %v4232_v48  ;;  %v5048_v47 = vld [vmem:[#allocation7 + $0xc4] ss:$16 sps:$4 sm:$0xff]   ;;  %v5051_v48 = vld [vmem:[#allocation7 + $0xc0] ss:$16 sps:$4 sm:$0xff]  }
 0x60c   : > { %1381 = vmatpush1.bf16.msra.mxu0 %v4234_v49  ;;  %1463 = vmatpush1.bf16.msra.mxu1 %v4235_v50  ;;  %v5054_v49 = vld [vmem:[#allocation7 + $0x2c] ss:$16 sps:$4 sm:$0xff]   ;;  %v5057_v50 = vld [vmem:[#allocation7 + $0x28] ss:$16 sps:$4 sm:$0xff]  }
 0x60d   : > { %1382 = vmatprep.subr.bf16.mxu0 %v4236_v51  ;;  %1464 = vmatprep.subr.bf16.mxu1 %v4238_v52  ;;  %6124 = vst [vmem:[#allocation20_spill] sm:$0xff] %v5054_v49  ;;  %6125 = vst [vmem:[#allocation21_spill] sm:$0xff] %v5057_v50  ;;  %v5060_v51 = vld [vmem:[#allocation7 + $0xe4] ss:$16 sps:$4 sm:$0xff]   ;;  %v5063_v52 = vld [vmem:[#allocation7 + $0xe0] ss:$16 sps:$4 sm:$0xff]  }
 0x610   : > { %1383 = vmatpush1.bf16.msra.mxu0 %v4240_v53  ;;  %1465 = vmatpush1.bf16.msra.mxu1 %v4241_v54  ;;  %v5066_v53 = vld [vmem:[#allocation7 + $0x4c] ss:$16 sps:$4 sm:$0xff]   ;;  %v5069_v54 = vld [vmem:[#allocation7 + $0x48] ss:$16 sps:$4 sm:$0xff]  }
 0x611   : > { %1393 = vmatprep.subr.bf16.mxu0 %v4244_v55  ;;  %1475 = vmatprep.subr.bf16.mxu1 %v4247_v56  ;;  %6126 = vst [vmem:[#allocation22_spill] sm:$0xff] %v5066_v53  ;;  %6127 = vst [vmem:[#allocation23_spill] sm:$0xff] %v5069_v54  ;;  %v5072_v55 = vld [vmem:[#allocation7 + $0x104] ss:$16 sps:$4 sm:$0xff]   ;;  %v5075_v56 = vld [vmem:[#allocation7 + $0x100] ss:$16 sps:$4 sm:$0xff]  }
 0x613   : > { %1385 = vmatmul.mubr.bf16.vlgmr.msra.gmra.mrb[0].mxu0 %v751_v58  ;;  %1467 = vmatmul.mubr.bf16.vlgmr.msra.gmra.mrb[0].mxu1 %v751_v58  ;;  %v5081_v58 = vld [vmem:[#allocation7 + $0x68] ss:$16 sps:$4 sm:$0xff]  }
 0x614   : > { %1394 = vmatpush1.bf16.msra.mxu0 %v4242_v57  ;;  %1476 = vmatpush1.bf16.msra.mxu1 %v4245_v59  ;;  %v5078_v57 = vld [vmem:[#allocation7 + $0x6c] ss:$16 sps:$4 sm:$0xff]   ;;  %6129 = vst [vmem:[#allocation25_spill] sm:$0xff] %v5081_v58  ;;  %v5084_v59 = vld [vmem:[#allocation7 + $0x124] ss:$16 sps:$4 sm:$0xff]  }
 0x615   : > { %1395 = vmatprep.subr.bf16.mxu0 %v4250_v60  ;;  %1477 = vmatprep.subr.bf16.mxu1 %v4253_v61  ;;  %6128 = vst [vmem:[#allocation24_spill] sm:$0xff] %v5078_v57  ;;  %v5087_v60 = vld [vmem:[#allocation7 + $0x120] ss:$16 sps:$4 sm:$0xff]   ;;  %v5090_v61 = vld [vmem:[#allocation7 + $0x8c] ss:$16 sps:$4 sm:$0xff]  }
 0x616   : > { %1425 = vmatprep.mubr.bf16.mxu0 %v4686_v43  ;;  %1507 = vmatprep.mubr.bf16.mxu1 %v4686_v43  ;;  %6130 = vst [vmem:[#allocation26_spill] sm:$0xff] %v5090_v61  ;;  %v5111_v43 = vld [vmem:[#allocation7 + $0x160] ss:$16 sps:$4 sm:$0xff]  }
 0x618   : > { %1396 = vmatpush1.bf16.msra.mxu0 %v4248_v62  ;;  %1478 = vmatpush1.bf16.msra.mxu1 %v4251_v63  ;;  %v5093_v62 = vld [vmem:[#allocation7 + $0x88] ss:$16 sps:$4 sm:$0xff]   ;;  %v5096_v63 = vld [vmem:[#allocation7 + $0x144] ss:$16 sps:$4 sm:$0xff]  }
 0x619   : > { %1397 = vmatprep.subr.bf16.mxu0 %v4256_v0  ;;  %1479 = vmatprep.subr.bf16.mxu1 %v4259_v2  ;;  %6131 = vst [vmem:[#allocation27_spill] sm:$0xff] %v5093_v62  ;;  %v5099_v0 = vld [vmem:[#allocation7 + $0x140] ss:$16 sps:$4 sm:$0xff]   ;;  %v5102_v2 = vld [vmem:[#allocation7 + $0xac] ss:$16 sps:$4 sm:$0xff]  }
 0x61a   : > { %6132 = vst [vmem:[#allocation28_spill] sm:$0xff] %v5102_v2 }
 0x61c   : > { %1398 = vmatpush1.bf16.msra.mxu0 %v4254_v3  ;;  %1480 = vmatpush1.bf16.msra.mxu1 %v4257_v4  ;;  %v5105_v3 = vld [vmem:[#allocation7 + $0xa8] ss:$16 sps:$4 sm:$0xff]   ;;  %v5108_v4 = vld [vmem:[#allocation7 + $0x164] ss:$16 sps:$4 sm:$0xff]  }
 0x61d   : > { %1399 = vmatprep.subr.bf16.mxu0 %v4262_v5  ;;  %1481 = vmatprep.subr.bf16.mxu1 %v4265_v6  ;;  %6133 = vst [vmem:[#allocation29_spill] sm:$0xff] %v5105_v3  ;;  %v5114_v5 = vld [vmem:[#allocation7 + $0xcc] ss:$16 sps:$4 sm:$0xff]   ;;  %v5117_v6 = vld [vmem:[#allocation7 + $0xc8] ss:$16 sps:$4 sm:$0xff]  }
 0x61e   : > { %6134 = vst [vmem:[#allocation30_spill] sm:$0xff] %v5114_v5  ;;  %6135 = vst [vmem:[#allocation31_spill] sm:$0xff] %v5117_v6 }
 0x620   : > { %1400 = vmatpush1.bf16.msra.mxu0 %v4260_v7  ;;  %1482 = vmatpush1.bf16.msra.mxu1 %v4263_v8  ;;  %v5120_v7 = vld [vmem:[#allocation7 + $0x184] ss:$16 sps:$4 sm:$0xff]   ;;  %v5122_v8 = vld [vmem:[#allocation7 + $0x180] ss:$16 sps:$4 sm:$0xff]  }
 0x621   : > { %1401 = vmatprep.subr.bf16.mxu0 %v4268_v9  ;;  %1483 = vmatprep.subr.bf16.mxu1 %v4271_v10  ;;  %v5124_v9 = vld [vmem:[#allocation7 + $0xec] ss:$16 sps:$4 sm:$0xff]   ;;  %v5127_v10 = vld [vmem:[#allocation7 + $0xe8] ss:$16 sps:$4 sm:$0xff]  }
 0x622   : > { %6136 = vst [vmem:[#allocation32_spill] sm:$0xff] %v5124_v9  ;;  %6137 = vst [vmem:[#allocation33_spill] sm:$0xff] %v5127_v10 }
 0x624   : > { %1402 = vmatpush1.bf16.msra.mxu0 %v4266_v11  ;;  %1484 = vmatpush1.bf16.msra.mxu1 %v4269_v12  ;;  %v5129_v11 = vld [vmem:[#allocation7 + $0x1a4] ss:$16 sps:$4 sm:$0xff]   ;;  %v5133_v12 = vld [vmem:[#allocation7 + $0x10c] ss:$16 sps:$4 sm:$0xff]  }
 0x625   : > { %1403 = vmatprep.subr.bf16.mxu0 %v4274_v13  ;;  %1485 = vmatprep.subr.bf16.mxu1 %v4277_v14  ;;  %6138 = vst [vmem:[#allocation34_spill] sm:$0xff] %v5133_v12  ;;  %v5136_v13 = vld [vmem:[#allocation7 + $0x1a0] ss:$16 sps:$4 sm:$0xff]   ;;  %v5139_v14 = vld [vmem:[#allocation7 + $0x1c4] ss:$16 sps:$4 sm:$0xff]  }
 0x628   : > { %1404 = vmatpush1.bf16.msra.mxu0 %v4272_v15  ;;  %1486 = vmatpush1.bf16.msra.mxu1 %v4275_v16  ;;  %v5142_v15 = vld [vmem:[#allocation7 + $0x108] ss:$16 sps:$4 sm:$0xff]   ;;  %v5145_v16 = vld [vmem:[#allocation7 + $0x12c] ss:$16 sps:$4 sm:$0xff]  }
 0x629   : > { %1405 = vmatprep.subr.bf16.mxu0 %v4280_v17  ;;  %1487 = vmatprep.subr.bf16.mxu1 %v4283_v18  ;;  %6139 = vst [vmem:[#allocation35_spill] sm:$0xff] %v5142_v15  ;;  %6140 = vst [vmem:[#allocation36_spill] sm:$0xff] %v5145_v16  ;;  %v5148_v17 = vld [vmem:[#allocation7 + $0x1c0] ss:$16 sps:$4 sm:$0xff]   ;;  %v5151_v18 = vld [vmem:[#allocation7 + $0x1e4] ss:$16 sps:$4 sm:$0xff]  }
 0x62a   : > { %6141 = vst [vmem:[#allocation37_spill] sm:$0xff] %v5151_v18 }
 0x62c   : > { %1406 = vmatpush1.bf16.msra.mxu0 %v4278_v19  ;;  %1488 = vmatpush1.bf16.msra.mxu1 %v4281_v20  ;;  %v5154_v19 = vld [vmem:[#allocation7 + $0x128] ss:$16 sps:$4 sm:$0xff]   ;;  %v5157_v20 = vld [vmem:[#allocation7 + $0x14c] ss:$16 sps:$4 sm:$0xff]  }
 0x62d   : > { %1407 = vmatprep.subr.bf16.mxu0 %v4286_v21  ;;  %1489 = vmatprep.subr.bf16.mxu1 %v4289_v22  ;;  %6142 = vst [vmem:[#allocation38_spill] sm:$0xff] %v5154_v19  ;;  %6143 = vst [vmem:[#allocation39_spill] sm:$0xff] %v5157_v20  ;;  %v5160_v21 = vld [vmem:[#allocation7 + $0x1e0] ss:$16 sps:$4 sm:$0xff]   ;;  %v5166_v22 = vld [vmem:[#allocation7 + $0x148] ss:$16 sps:$4 sm:$0xff]  }
 0x62e   : > { %6144 = vst [vmem:[#allocation40_spill] sm:$0xff] %v5160_v21  ;;  %6145 = vst [vmem:[#allocation41_spill] sm:$0xff] %v5166_v22 }
 0x630   : > { %1408 = vmatpush1.bf16.msra.mxu0 %v4284_v23  ;;  %1490 = vmatpush1.bf16.msra.mxu1 %v4287_v1  ;;  %v5169_v23 = vld [vmem:[#allocation7 + $0x16c] ss:$16 sps:$4 sm:$0xff]   ;;  %v5171_v1 = vld [vmem:[#allocation7 + $0x168] ss:$16 sps:$4 sm:$0xff]  }
 0x631   : > { %1944 = vmatprep.subr.bf16.mxu0 %v5005_v25  ;;  %1985 = vmatprep.subr.bf16.mxu1 %v5042_v42  ;;  %6146 = vst [vmem:[#allocation42_spill] sm:$0xff] %v5169_v23  ;;  %6147 = vst [vmem:[#allocation43_spill] sm:$0xff] %v5171_v1 }
 0x633   : > { %1426 = vmatmul.mubr.bf16.vlgmr.msra.gmra.mrb[0].mxu0 %v753_v27  ;;  %1508 = vmatmul.mubr.bf16.vlgmr.msra.gmra.mrb[4].mxu1 %v753_v27  ;;  %v5173_v27 = vld [vmem:[#allocation7 + $0x18c] ss:$16 sps:$4 sm:$0xff]  }
 0x634   : > { %1945 = vmatpush1.bf16.msra.mxu0 %v5007_v26  ;;  %1986 = vmatpush1.bf16.msra.mxu1 %v5045_v46  ;;  %6148 = vst [vmem:[#allocation44_spill] sm:$0xff] %v5173_v27 }
 0x635   : > { %1946 = vmatprep.subr.bf16.mxu0 %v5013_v28  ;;  %1987 = vmatprep.subr.bf16.mxu1 %v5054_v49 }
 0x638   : > { %1947 = vmatpush1.bf16.msra.mxu0 %v5015_v29  ;;  %1988 = vmatpush1.bf16.msra.mxu1 %v5057_v50 }
 0x639   : > { %1948 = vmatprep.subr.bf16.mxu0 %v5018_v30  ;;  %1989 = vmatprep.subr.bf16.mxu1 %v5066_v53 }
 0x63c   : > { %1949 = vmatpush1.bf16.msra.mxu0 %v5021_v31  ;;  %1990 = vmatpush1.bf16.msra.mxu1 %v5069_v54 }
 0x63d   : > { %1950 = vmatprep.subr.bf16.mxu0 %v5024_v32  ;;  %1991 = vmatprep.subr.bf16.mxu1 %v5078_v57 }
 0x640   : > { %1951 = vmatpush1.bf16.msra.mxu0 %v5028_v34  ;;  %1992 = vmatpush1.bf16.msra.mxu1 %v5081_v58 }
 0x641   : > { %1952 = vmatprep.subr.bf16.mxu0 %v5031_v35  ;;  %1993 = vmatprep.subr.bf16.mxu1 %v5090_v61 }
 0x644   : > { %1953 = vmatpush1.bf16.msra.mxu0 %v5033_v36  ;;  %1994 = vmatpush1.bf16.msra.mxu1 %v5093_v62 }
 0x645   : > { %1954 = vmatprep.subr.bf16.mxu0 %v5037_v38  ;;  %1995 = vmatprep.subr.bf16.mxu1 %v5102_v2 }
 0x648   : > { %1955 = vmatpush1.bf16.msra.mxu0 %v5039_v39  ;;  %1996 = vmatpush1.bf16.msra.mxu1 %v5105_v3 }
 0x649   : > { %1956 = vmatprep.subr.bf16.mxu0 %v5048_v47  ;;  %1997 = vmatprep.subr.bf16.mxu1 %v5114_v5 }
 0x64c   : > { %1957 = vmatpush1.bf16.msra.mxu0 %v5051_v48  ;;  %1998 = vmatpush1.bf16.msra.mxu1 %v5117_v6 }
 0x64d   : > { %1958 = vmatprep.subr.bf16.mxu0 %v5060_v51  ;;  %1999 = vmatprep.subr.bf16.mxu1 %v5124_v9 }
 0x650   : > { %1959 = vmatpush1.bf16.msra.mxu0 %v5063_v52  ;;  %2000 = vmatpush1.bf16.msra.mxu1 %v5127_v10 }
 0x651   : > { %1960 = vmatprep.subr.bf16.mxu0 %v5072_v55  ;;  %2001 = vmatprep.subr.bf16.mxu1 %v5133_v12  ;;  %v6061_v12 = vsub.s32 0, %v6120_v33 }
 0x654   : > { %1961 = vmatpush1.bf16.msra.mxu0 %v5075_v56  ;;  %2002 = vmatpush1.bf16.msra.mxu1 %v5142_v15 }
 0x655   : > { %1962 = vmatprep.subr.bf16.mxu0 %v5084_v59  ;;  %2003 = vmatprep.subr.bf16.mxu1 %v5145_v16  ;;  %v5189_v16 = vld [vmem:[#allocation7 + $0x1c8] ss:$16 sps:$4 sm:$0xff]  }
 0x656   : > { %6153 = vst [vmem:[#allocation49_spill] sm:$0xff] %v5189_v16 }
 0x658   : > { %1963 = vmatpush1.bf16.msra.mxu0 %v5087_v60  ;;  %2004 = vmatpush1.bf16.msra.mxu1 %v5154_v19  ;;  %v5183_v19 = vld [vmem:[#allocation7 + $0x1a8] ss:$16 sps:$4 sm:$0xff]  }
 0x659   : > { %1964 = vmatprep.subr.bf16.mxu0 %v5096_v63  ;;  %2005 = vmatprep.subr.bf16.mxu1 %v5157_v20  ;;  %v5180_v20 = vld [vmem:[#allocation7 + $0x1ac] ss:$16 sps:$4 sm:$0xff]   ;;  %6151 = vst [vmem:[#allocation47_spill] sm:$0xff] %v5183_v19 }
 0x65a   : > { %6150 = vst [vmem:[#allocation46_spill] sm:$0xff] %v5180_v20 }
 0x65c   : > { %1965 = vmatpush1.bf16.msra.mxu0 %v5099_v0  ;;  %2006 = vmatpush1.bf16.msra.mxu1 %v5166_v22  ;;  %v5186_v22 = vld [vmem:[#allocation7 + $0x1cc] ss:$16 sps:$4 sm:$0xff]  }
 0x65d   : > { %1966 = vmatprep.subr.bf16.mxu0 %v5108_v4  ;;  %2007 = vmatprep.subr.bf16.mxu1 %v5169_v23  ;;  %6152 = vst [vmem:[#allocation48_spill] sm:$0xff] %v5186_v22 }
 0x660   : > { %1967 = vmatpush1.bf16.msra.mxu0 %v5111_v43  ;;  %2008 = vmatpush1.bf16.msra.mxu1 %v5171_v1  ;;  %v5192_v1 = vld [vmem:[#allocation7 + $0x1ec] ss:$16 sps:$4 sm:$0xff]  }
 0x661   : > { %1968 = vmatprep.subr.bf16.mxu0 %v5120_v7  ;;  %2009 = vmatprep.subr.bf16.mxu1 %v5173_v27  ;;  %6154 = vst [vmem:[#allocation50_spill] sm:$0xff] %v5192_v1  ;;  %v5195_v27 = vld [vmem:[#allocation7 + $0x1e8] ss:$16 sps:$4 sm:$0xff]  }
 0x662   : > { %6155 = vst [vmem:[#allocation51_spill] sm:$0xff] %v5195_v27 }
 0x664   : > { %1969 = vmatpush1.bf16.msra.mxu0 %v5122_v8  ;;  %2010 = vmatpush1.bf16.msra.mxu1 %v5177_v40 }
 0x665   : > { %1970 = vmatprep.subr.bf16.mxu0 %v5129_v11  ;;  %2011 = vmatprep.subr.bf16.mxu1 %v5180_v20 }
 0x668   : > { %1971 = vmatpush1.bf16.msra.mxu0 %v5136_v13  ;;  %2012 = vmatpush1.bf16.msra.mxu1 %v5183_v19  ;;  %v850_v19 = vld [vmem:[%s6156_s11] sm:$0xf] }
 0x669   : > { %1972 = vmatprep.subr.bf16.mxu0 %v5139_v14  ;;  %2013 = vmatprep.subr.bf16.mxu1 %v5186_v22  ;;  %v6054_v22 = vsub.s32 3, %v6120_v33 }
 0x66b   : > { %v867_v10 = vrot.slane %v850_v19, %v6054_v22 }
 0x66c   : > { %1973 = vmatpush1.bf16.msra.mxu0 %v5148_v17  ;;  %2014 = vmatpush1.bf16.msra.mxu1 %v5189_v16  ;;  %v863_v16 = vrot.slane %v850_v19, %v6121_v41 }
 0x66d   : > { %1974 = vmatprep.subr.bf16.mxu0 %v5151_v18  ;;  %2015 = vmatprep.subr.bf16.mxu1 %v5192_v1  ;;  %v858_v1 = vsub.s32 1, %v6120_v33 }
 0x66f   : > { %v859_v5 = vrot.slane %v850_v19, %v858_v1 }
 0x670   : > { %1975 = vmatpush1.bf16.msra.mxu0 %v5160_v21  ;;  %2016 = vmatpush1.bf16.msra.mxu1 %v5195_v27  ;;  %v855_v27 = vrot.slane %v850_v19, %v6061_v12 }
 0x6e6   : > { %v1468_v40 = vpop.f32.mrb[0].mxu1 }
 0x6e7   : > { %v1470_v20 = vpop.f32.mrb[1].mxu1 }
 0x6e8   : > { %v1472_v23 = vpop.f32.mrb[2].mxu1 }
 0x6e9   : > { %v1473_v15 = vpop.f32.mrb[3].mxu1  ;;  %v1469_v23 = vadd.f32 %v1468_v40, %v863_v16 }
 0x6ea   : > { %v1471_v15 = vadd.f32 %v1470_v20, %v867_v10 }
 0x706   : > { %v1427_v9 = vpop.f32.mrb[0].mxu0  ;;  %v1509_v6 = vpop.f32.mrb[4].mxu1 }
 0x707   : > { %v4025_v3 = vadd.f32 %v1427_v9, %v855_v27  ;;  %v1510_v2 = vadd.f32 %v1509_v6, %v1469_v23  ;;  %v1429_v62 = vpop.f32.mrb[1].mxu0  ;;  %v1511_v61 = vpop.f32.mrb[5].mxu1  ;;  %v5262_v27 = vld [vmem:[%s6159_s14 + $0x28] sm:$0xff]   ;;  %v5269_v23 = vld [vmem:[%s6159_s14 + $0x30] sm:$0xff]  }
 0x708   : > { %v1512_v58 = vadd.f32 %v1511_v61, %v1471_v15  ;;  %v1431_v57 = vpop.f32.mrb[2].mxu0  ;;  %v1513_v54 = vpop.f32.mrb[6].mxu1  ;;  %v4026_v49 = vadd.f32 %v1429_v62, %v859_v5  ;;  %v6062_v62 = vmov 0.0   ;;  %v5238_v5 = vld [vmem:[%s6159_s14 + $0x10] sm:$0xff]   ;;  %6164 = vst [vmem:[#allocation57_spill] sm:$0xff] %v5262_v27  ;;  %6165 = vst [vmem:[#allocation58_spill] sm:$0xff] %v5269_v23 }
 0x709   : > { %v3525_v22 = vmul.f32 -1.442695, %v4025_v3  ;;  %v1432_v53 = vpop.f32.mrb[3].mxu0  ;;  %v1514_v50 = vpop.f32.mrb[7].mxu1  ;;  %3845 = vmatprep.subr.bf16.mxu0 %v6062_v62  ;;  %3865 = vmatprep.subr.bf16.mxu1 %v6062_v62  ;;  %6161 = vst [vmem:[#allocation54_spill] sm:$0xff] %v5238_v5  ;;  %v5276_v15 = vld [vmem:[%s6159_s14 + $0x38] sm:$0xff]  }
 0x70a   : > { %v3526_v12 = vmul.f32 -1.442695, %v4026_v49  ;;  %v1536_v49 = vpack.c.bf16 %v6158_v44, %v6158_v44  ;;  %6166 = vst [vmem:[#allocation59_spill] sm:$0xff] %v5276_v15 }
 0x70b   : > { %4410 = vpow2.f32 %v3525_v22  ;;  %v5252_v22 = vld [vmem:[%s6159_s14 + $0x20] sm:$0xff]  }
 0x70c   : > { %4412 = vpow2.f32 %v3526_v12  ;;  %v5245_v12 = vld [vmem:[%s6159_s14 + $0x18] sm:$0xff]   ;;  %6163 = vst [vmem:[#allocation56_spill] sm:$0xff] %v5252_v22 }
 0x70d   : > { %6162 = vst [vmem:[#allocation55_spill] sm:$0xff] %v5245_v12 }
 0x715   : > { %v4411_v40 = vpop.eup %4410 }
 0x716   : > { %v1519_v10 = vadd.f32 1.0, %v4411_v40  ;;  %v4413_v16 = vpop.eup %4412  ;;  %v1602_v40 = vld [vmem:[%s6167_s13] sm:$0xf] }
 0x717   : > { %v1525_v20 = vadd.f32 1.0, %v4413_v16 }
 0x718   : > { %4414 = vrcp.f32 %v1519_v10  ;;  %v6168_v10 = vsub.s32 0, %v6120_v33 }
 0x719   : > { %4416 = vrcp.f32 %v1525_v20  ;;  %v5290_v20 = vrot.slane %v1602_v40, %v858_v1  ;;  %v6170_v1 = vsub.s32 3, %v6120_v33  ;;  %v5405_v33 = vld [vmem:[%s6176_s4 + $0x30] sm:$0xff]  }
 0x71a   : > { %v5286_v16 = vrot.slane %v1602_v40, %v6168_v10  ;;  %6182 = vst [vmem:[#allocation69_spill] sm:$0xff] %v5405_v33 }
 0x71c   : > { %6169 = vst [vmem:[#allocation60_spill] sm:$0xff] %v5286_v16 }
 0x722   : > { %v4415_v19 = vpop.eup %4414 }
 0x723   : > { %v1528_v6 = vmul.f32 %v4415_v19, %v1512_v58  ;;  %v4417_v61 = vpop.eup %4416  ;;  %v5222_v58 = vld [vmem:[%s6159_s14] sm:$0xff]  }
 0x724   : > { %v1531_v57 = vsub.f32 1.0, %v4417_v61  ;;  %v1533_v50 = vmul.f32 %v4669_v24, %v4417_v61 }
 0x725   : > { %v1529_v9 = vadd.f32 %v1528_v6, %v1510_v2  ;;  %v5231_v2 = vld [vmem:[%s6159_s14 + $0x8] sm:$0xff]  }
 0x726   : > { %6160 = vst [vmem:[#allocation53_spill] sm:$0xff] %v5231_v2 }
 0x727   : > { %4418 = vtanh.f32 %v1529_v9 }
 0x731   : > { %v4419_v54 = vpop.eup %4418 }
 0x732   : > { %v1532_v3 = vmul.f32 %v4419_v54, %v1531_v57 }
 0x734   : > { %v5213_v24 = vadd.f32 %v1533_v50, %v1532_v3  }
 0x736   : > { %6157 = vst [vmem:[#allocation52_spill] sm:$0xff] %v5213_v24  ;;  %v1537_v53 = vpack.c.bf16 %v5213_v24, %v5213_v24 }
 0x738   : > { %1976 = vmatprep.mubr.bf16.mxu0 %v1537_v53  ;;  %2017 = vmatprep.mubr.bf16.mxu1 %v1537_v53 }
 0x739   : > { %1977 = vmatmul.mubr.bf16.vlgmr.msra.gmra.mrb[4].mxu0 %v1536_v49  ;;  %2018 = vmatmul.mubr.bf16.vlgmr.msra.gmra.mrb[8].mxu1 %v1536_v49 }
 0x73a   : > { %3846 = vmatpush3.bf16.msra.mxu0 %v5222_v58  ;;  %3861 = vmatprep.mubr.msk.bf16.mxu0 %vm4688_vm9, %v6062_v62 }
 0x73b   : > { %3847 = vmatprep.subr.bf16.mxu0 %v6062_v62  ;;  %3881 = vmatprep.mubr.msk.bf16.mxu1 %vm4688_vm9, %v6062_v62 }
 0x73e   : > { %3848 = vmatpush3.bf16.msra.mxu0 %v5231_v2 }
 0x73f   : > { %3849 = vmatprep.subr.bf16.mxu0 %v6062_v62 }
 0x742   : > { %3850 = vmatpush3.bf16.msra.mxu0 %v5238_v5 }
 0x743   : > { %3851 = vmatprep.subr.bf16.mxu0 %v6062_v62 }
 0x746   : > { %3852 = vmatpush3.bf16.msra.mxu0 %v5245_v12 }
 0x747   : > { %3853 = vmatprep.subr.bf16.mxu0 %v6062_v62 }
 0x74a   : > { %3854 = vmatpush3.bf16.msra.mxu0 %v5252_v22 }
 0x74b   : > { %3855 = vmatprep.subr.bf16.mxu0 %v6062_v62 }
 0x74e   : > { %3856 = vmatpush3.bf16.msra.mxu0 %v5262_v27 }
 0x74f   : > { %3857 = vmatprep.subr.bf16.mxu0 %v6062_v62 }
 0x752   : > { %3858 = vmatpush3.bf16.msra.mxu0 %v5269_v23 }
 0x753   : > { %3859 = vmatprep.subr.bf16.mxu0 %v6062_v62 }
 0x756   : > { %3860 = vmatpush3.bf16.msra.mxu0 %v5276_v15  ;;  %v5296_v15 = vrot.slane %v1602_v40, %v6170_v1 }
 0x757   : > { %2371 = vmatprep.subr.bf16.mxu0 %v5005_v25 }
 0x80c   : > { %v1978_v19 = vpop.f32.mrb[4].mxu0  ;;  %v2019_v6 = vpop.f32.mrb[8].mxu1 }
 0x80d   : > { %v1979_v9 = vadd.f32 %v1978_v19, %v5286_v16  ;;  %v1980_v61 = vpop.f32.mrb[5].mxu0  ;;  %v2021_v57 = vpop.f32.mrb[9].mxu1 }
 0x80e   : > { %v1982_v54 = vpop.f32.mrb[6].mxu0  ;;  %v2023_v3 = vpop.f32.mrb[10].mxu1  ;;  %v1981_v62 = vadd.f32 %v1980_v61, %v5290_v20 }
 0x80f   : > { %v3592_v50 = vmul.f32 -1.442695, %v1979_v9  ;;  %v1983_v49 = vpop.f32.mrb[7].mxu0  ;;  %v2024_v53 = vpop.f32.mrb[11].mxu1  ;;  %v5299_v54 = vrot.slane %v1602_v40, %v6121_v41  ;;  %v2022_v9 = vadd.f32 %v2021_v57, %v5296_v15 }
 0x810   : > { %v3593_v10 = vmul.f32 -1.442695, %v1981_v62 }
 0x811   : > { %4420 = vpow2.f32 %v3592_v50  ;;  %v2020_v61 = vadd.f32 %v2019_v6, %v5299_v54  ;;  %v5347_v6 = vld [vmem:[%s6172_s15] ss:$0 sm:$0xff] }
 0x812   : > { %4422 = vpow2.f32 %v3593_v10  ;;  %6173 = vst [vmem:[#allocation61_spill] sm:$0xff] %v5347_v6 }
 0x81b   : > { %v4421_v44 = vpop.eup %4420 }
 0x81c   : > { %v2029_v25 = vadd.f32 1.0, %v4421_v44  ;;  %v4423_v19 = vpop.eup %4422 }
 0x81d   : > { %v2035_v16 = vadd.f32 1.0, %v4423_v19 }
 0x81e   : > { %4424 = vrcp.f32 %v2029_v25 }
 0x81f   : > { %4426 = vrcp.f32 %v2035_v16  ;;  %v6171_v16 = vmov 0.0  }
 0x828   : > { %v4425_v3 = vpop.eup %4424 }
 0x829   : > { %v2038_v62 = vmul.f32 %v4425_v3, %v2022_v9  ;;  %v4427_v44 = vpop.eup %4426 }
 0x82a   : > { %v2041_v25 = vsub.f32 1.0, %v4427_v44  ;;  %v2043_v10 = vmul.f32 %v4427_v44, %v5213_v24 }
 0x82b   : > { %v2039_v50 = vadd.f32 %v2038_v62, %v2020_v61 }
 0x82d   : > { %4428 = vtanh.f32 %v2039_v50 }
 0x837   : > { %v4429_v49 = vpop.eup %4428 }
 0x838   : > { %v2042_v53 = vmul.f32 %v4429_v49, %v2041_v25 }
 0x83a   : > { %v5304_v1 = vadd.f32 %v2043_v10, %v2042_v53  ;;  %v5363_v10 = vld [vmem:[%s6176_s4] sm:$0xff]  }
 0x83b   : > { %3866 = vmatpush3.bf16.msra.mxu1 %v5363_v10 }
 0x83c   : > { %v5308_v40 = vpack.c.bf16 %v5304_v1, %v5304_v1  ;;  %3867 = vmatprep.subr.bf16.mxu1 %v6171_v16 }
 0x83e   : > { %3862 = vmatmul.mubr.bf16.vlgmr.msra.gmra.mrb[8].mxu0 %v5308_v40 }
 0x83f   : > { %2403 = vmatprep.mubr.bf16.mxu0 %v5308_v40  ;;  %2372 = vmatpush1.bf16.msra.mxu0 %v5007_v26 }
 0x840   : > { %2373 = vmatprep.subr.bf16.mxu0 %v5013_v28 }
 0x843   : > { %2374 = vmatpush1.bf16.msra.mxu0 %v5015_v29 }
 0x844   : > { %2375 = vmatprep.subr.bf16.mxu0 %v5018_v30 }
 0x847   : > { %2376 = vmatpush1.bf16.msra.mxu0 %v5021_v31 }
 0x848   : > { %2377 = vmatprep.subr.bf16.mxu0 %v5024_v32 }
 0x84b   : > { %2378 = vmatpush1.bf16.msra.mxu0 %v5028_v34 }
 0x84c   : > { %2379 = vmatprep.subr.bf16.mxu0 %v5031_v35 }
 0x84f   : > { %2380 = vmatpush1.bf16.msra.mxu0 %v5033_v36 }
 0x850   : > { %2381 = vmatprep.subr.bf16.mxu0 %v5037_v38 }
 0x853   : > { %2382 = vmatpush1.bf16.msra.mxu0 %v5039_v39 }
 0x854   : > { %2383 = vmatprep.subr.bf16.mxu0 %v5048_v47 }
 0x857   : > { %2384 = vmatpush1.bf16.msra.mxu0 %v5051_v48 }
 0x858   : > { %2385 = vmatprep.subr.bf16.mxu0 %v5060_v51 }
 0x85b   : > { %2386 = vmatpush1.bf16.msra.mxu0 %v5063_v52 }
 0x85c   : > { %2387 = vmatprep.subr.bf16.mxu0 %v5072_v55 }
 0x85f   : > { %2388 = vmatpush1.bf16.msra.mxu0 %v5075_v56 }
 0x860   : > { %2389 = vmatprep.subr.bf16.mxu0 %v5084_v59 }
 0x863   : > { %2390 = vmatpush1.bf16.msra.mxu0 %v5087_v60 }
 0x864   : > { %2391 = vmatprep.subr.bf16.mxu0 %v5096_v63 }
 0x867   : > { %2392 = vmatpush1.bf16.msra.mxu0 %v5099_v0 }
 0x868   : > { %2393 = vmatprep.subr.bf16.mxu0 %v5108_v4 }
 0x86b   : > { %2394 = vmatpush1.bf16.msra.mxu0 %v5111_v43 }
 0x86c   : > { %2395 = vmatprep.subr.bf16.mxu0 %v5120_v7 }
 0x86f   : > { %2396 = vmatpush1.bf16.msra.mxu0 %v5122_v8 }
 0x870   : > { %2397 = vmatprep.subr.bf16.mxu0 %v5129_v11 }
 0x873   : > { %2398 = vmatpush1.bf16.msra.mxu0 %v5136_v13 }
 0x874   : > { %2399 = vmatprep.subr.bf16.mxu0 %v5139_v14 }
 0x877   : > { %2400 = vmatpush1.bf16.msra.mxu0 %v5148_v17 }
 0x878   : > { %2401 = vmatprep.subr.bf16.mxu0 %v5151_v18 }
 0x87b   : > { %2402 = vmatpush1.bf16.msra.mxu0 %v5160_v21 }
 0x87c   : > { %3885 = vmatprep.subr.bf16.mxu0 %v6171_v16 }
 0x911   : > { %v2151_v57 = vpop.f32.mrb[8].mxu0 }
 0x912   : > { %v5350_v19 = vadd.f32 %v5347_v6, %v2151_v57  ;;  %v3863_v9 = vpop.f32.mrb[9].mxu0  ;;  %v5369_v57 = vld [vmem:[%s6176_s4 + $0x8] sm:$0xff]  }
 0x913   : > { %v2154_v3 = vpop.f32.mrb[10].mxu0  ;;  %6177 = vst [vmem:[#allocation64_spill] sm:$0xff] %v5369_v57  ;;  %3868 = vmatpush3.bf16.msra.mxu1 %v5369_v57  ;;  %v5376_v9 = vld [vmem:[%s6176_s4 + $0x10] sm:$0xff]  }
 0x914   : > { %6174 = vst [vmem:[#allocation62_spill] sm:$0xff] %v5350_v19  ;;  %v3864_v61 = vpop.f32.mrb[11].mxu0  ;;  %v2157_v62 = vsel %vm121_vm2, %v5350_v19, -inf  ;;  %6178 = vst [vmem:[#allocation65_spill] sm:$0xff] %v5376_v9  ;;  %3869 = vmatprep.subr.bf16.mxu1 %v6171_v16  ;;  %v5383_v3 = vld [vmem:[%s6176_s4 + $0x18] sm:$0xff]  }
 0x915   : > { %2158 = vmax.xlane.f32.xlu0 %v2157_v62  ;;  %6179 = vst [vmem:[#allocation66_spill] sm:$0xff] %v5383_v3  ;;  %v5390_v61 = vld [vmem:[%s6176_s4 + $0x20] sm:$0xff]   ;;  %v5397_v62 = vld [vmem:[%s6176_s4 + $0x28] sm:$0xff]  }
 0x916   : > { %6180 = vst [vmem:[#allocation67_spill] sm:$0xff] %v5390_v61  ;;  %6181 = vst [vmem:[#allocation68_spill] sm:$0xff] %v5397_v62 }
 0x917   : > { %3870 = vmatpush3.bf16.msra.mxu1 %v5376_v9 }
 0x918   : > { %3871 = vmatprep.subr.bf16.mxu1 %v6171_v16 }
 0x91b   : > { %3872 = vmatpush3.bf16.msra.mxu1 %v5383_v3 }
 0x91c   : > { %3873 = vmatprep.subr.bf16.mxu1 %v6171_v16 }
 0x91f   : > { %3874 = vmatpush3.bf16.msra.mxu1 %v5390_v61 }
 0x920   : > { %3875 = vmatprep.subr.bf16.mxu1 %v6171_v16 }
 0x923   : > { %3876 = vmatpush3.bf16.msra.mxu1 %v5397_v62 }
 0x924   : > { %3877 = vmatprep.subr.bf16.mxu1 %v6171_v16 }
 0x927   : > { %3878 = vmatpush3.bf16.msra.mxu1 %v5405_v33 }
 0x928   : > { %3879 = vmatprep.subr.bf16.mxu1 %v6171_v16 }
 0x9a2   : > { %v5354_v50 = vpop.xlane.xlu0 %2158 }
 0x9a3   : > { %6175 = vst [vmem:[#allocation63_spill] sm:$0xff] %v5354_v50  ;;  %vm2224_vm10 = vcmp.ge.f32.partialorder %v5350_v19, %v5354_v50  ;;  %v5412_v19 = vld [vmem:[%s6176_s4 + $0x38] sm:$0xff]  }
 0x9a4   : > { %v2225_v44 = vsel %vm2224_vm10, %v4899_v37, 128  ;;  %6183 = vst [vmem:[#allocation70_spill] sm:$0xff] %v5412_v19  ;;  %3880 = vmatpush3.bf16.msra.mxu1 %v5412_v19 }
 0x9a5   : > { %v2226_v25 = vsel %vm121_vm2, %v2225_v44, 2147483647  ;;  %2412 = vmatprep.subr.bf16.mxu1 %v5042_v42 }
 0x9a6   : > { %v2228_v49 = vshra.s32 %v2226_v25, 16  ;;  %v2227_v44 = vand.u32 65535, %v2226_v25 }
 0x9a8   : > { %v2230_v53 = vcvt.s32.f32 %v2228_v49  ;;  %v2229_v41 = vcvt.s32.f32 %v2227_v44  ;;  %v2244_v44 = vmul.f32 0.0, %v6184_v45  ;;  %v6191_v45 = vld [vmem:[#allocation25_spill] sm:$0xff] }
 0x9aa   : > { %2231 = vmin.xlane.f32.xlu0 %v2230_v53 }
 0xa37   : > { %v2232_v49 = vpop.xlane.xlu0 %2231 }
 0xa38   : > { %vm2233_vm11 = vcmp.eq.f32.partialorder %v2230_v53, %v2232_v49 }
 0xa39   : > { %v2234_v24 = vsel %vm2233_vm11, %v2229_v41, inf  ;;  %v2238_v41 = vcvt.f32.s32 %v2232_v49  ;;  %v6186_v49 = vld [vmem:[#allocation20_spill] sm:$0xff] }
 0xa3a   : > { %2235 = vmin.xlane.f32.xlu1 %v2234_v24 }
 0xa3b   : > { %v2239_v25 = vshll.u32 %v2238_v41, 16  ;;  %v6187_v41 = vld [vmem:[#allocation21_spill] sm:$0xff] }
 0xac7   : > { %v2236_v24 = vpop.xlane.xlu1 %2235 }
 0xac8   : > { %v2237_v53 = vcvt.f32.s32 %v2236_v24  ;;  %v6188_v24 = vld [vmem:[#allocation22_spill] sm:$0xff] }
 0xaca   : > { %v5417_v50 = vadd.s32 %v2239_v25, %v2237_v53  ;;  %v6189_v25 = vld [vmem:[#allocation23_spill] sm:$0xff]  ;;  %v6190_v53 = vld [vmem:[#allocation24_spill] sm:$0xff] }
 0xacc   : > { %6185 = vst [vmem:[#allocation71_spill] sm:$0xff] %v5417_v50  ;;  %vm2241_vm12 = vcmp.eq.s32.totalorder %v4899_v37, %v5417_v50  ;;  %v6192_v50 = vld [vmem:[#allocation26_spill] sm:$0xff] }
 0xacd   : > { %v3605_v6 = vsel %vm2241_vm12, 1.0, %v6171_v16  ;;  %vm2206_vm12 = vcmask 1024  }
 0xace   : > { %v2245_v21 = vadd.f32 %v3605_v6, %v2244_v44  ;;  %v6196_v6 = vld [vmem:[#allocation30_spill] sm:$0xff]  ;;  %v6197_v44 = vld [vmem:[#allocation31_spill] sm:$0xff] }
 0xad0   : > { %v2246_v18 = vpack.c.bf16 %v2245_v21, %v2245_v21  ;;  %v6193_v21 = vld [vmem:[#allocation27_spill] sm:$0xff] }
 0xad2   : > { %3882 = vmatmul.mubr.bf16.vlgmr.msra.gmra.mrb[12].mxu1 %v2246_v18  ;;  %v6194_v18 = vld [vmem:[#allocation28_spill] sm:$0xff] }
 0xad3   : > { %2444 = vmatprep.mubr.bf16.mxu1 %v5308_v40  ;;  %2413 = vmatpush1.bf16.msra.mxu1 %v5045_v46  ;;  %v6195_v40 = vld [vmem:[#allocation29_spill] sm:$0xff] }
 0xad4   : > { %2414 = vmatprep.subr.bf16.mxu1 %v6186_v49 }
 0xad7   : > { %2415 = vmatpush1.bf16.msra.mxu1 %v6187_v41  ;;  %v6198_v41 = vld [vmem:[#allocation32_spill] sm:$0xff] }
 0xad8   : > { %2416 = vmatprep.subr.bf16.mxu1 %v6188_v24  ;;  %v6199_v24 = vld [vmem:[#allocation33_spill] sm:$0xff] }
 0xadb   : > { %2417 = vmatpush1.bf16.msra.mxu1 %v6189_v25  ;;  %v6200_v25 = vld [vmem:[#allocation34_spill] sm:$0xff] }
 0xadc   : > { %2418 = vmatprep.subr.bf16.mxu1 %v6190_v53  ;;  %v6201_v53 = vld [vmem:[#allocation35_spill] sm:$0xff] }
 0xadf   : > { %2419 = vmatpush1.bf16.msra.mxu1 %v6191_v45  ;;  %v6202_v45 = vld [vmem:[#allocation36_spill] sm:$0xff] }
 0xae0   : > { %2420 = vmatprep.subr.bf16.mxu1 %v6192_v50  ;;  %v6203_v50 = vld [vmem:[#allocation38_spill] sm:$0xff] }
 0xae3   : > { %2421 = vmatpush1.bf16.msra.mxu1 %v6193_v21  ;;  %v6204_v21 = vld [vmem:[#allocation39_spill] sm:$0xff] }
 0xae4   : > { %2422 = vmatprep.subr.bf16.mxu1 %v6194_v18  ;;  %v6205_v18 = vld [vmem:[#allocation41_spill] sm:$0xff] }
 0xae7   : > { %2423 = vmatpush1.bf16.msra.mxu1 %v6195_v40  ;;  %v6206_v40 = vld [vmem:[#allocation42_spill] sm:$0xff] }
 0xae8   : > { %2424 = vmatprep.subr.bf16.mxu1 %v6196_v6  ;;  %v6207_v6 = vld [vmem:[#allocation43_spill] sm:$0xff] }
 0xaeb   : > { %2425 = vmatpush1.bf16.msra.mxu1 %v6197_v44  ;;  %v6208_v44 = vld [vmem:[#allocation44_spill] sm:$0xff] }
 0xaec   : > { %2426 = vmatprep.subr.bf16.mxu1 %v6198_v41  ;;  %v6209_v41 = vld [vmem:[#allocation45_spill] sm:$0xff] }
 0xaef   : > { %2427 = vmatpush1.bf16.msra.mxu1 %v6199_v24  ;;  %v6210_v24 = vld [vmem:[#allocation46_spill] sm:$0xff] }
 0xaf0   : > { %2428 = vmatprep.subr.bf16.mxu1 %v6200_v25  ;;  %v6211_v25 = vld [vmem:[#allocation47_spill] sm:$0xff] }
 0xaf3   : > { %2429 = vmatpush1.bf16.msra.mxu1 %v6201_v53  ;;  %v6212_v53 = vld [vmem:[#allocation48_spill] sm:$0xff] }
 0xaf4   : > { %2430 = vmatprep.subr.bf16.mxu1 %v6202_v45  ;;  %v6213_v45 = vld [vmem:[#allocation49_spill] sm:$0xff] }
 0xaf7   : > { %2431 = vmatpush1.bf16.msra.mxu1 %v6203_v50  ;;  %v6214_v50 = vld [vmem:[#allocation50_spill] sm:$0xff] }
 0xaf8   : > { %2432 = vmatprep.subr.bf16.mxu1 %v6204_v21  ;;  %v6215_v21 = vld [vmem:[#allocation51_spill] sm:$0xff] }
 0xafb   : > { %2433 = vmatpush1.bf16.msra.mxu1 %v6205_v18 }
 0xafc   : > { %2434 = vmatprep.subr.bf16.mxu1 %v6206_v40 }
 0xaff   : > { %2435 = vmatpush1.bf16.msra.mxu1 %v6207_v6 }
 0xb00   : > { %2436 = vmatprep.subr.bf16.mxu1 %v6208_v44 }
 0xb03   : > { %2437 = vmatpush1.bf16.msra.mxu1 %v6209_v41 }
 0xb04   : > { %2438 = vmatprep.subr.bf16.mxu1 %v6210_v24 }
 0xb07   : > { %2439 = vmatpush1.bf16.msra.mxu1 %v6211_v25 }
 0xb08   : > { %2440 = vmatprep.subr.bf16.mxu1 %v6212_v53 }
 0xb0b   : > { %2441 = vmatpush1.bf16.msra.mxu1 %v6213_v45 }
 0xb0c   : > { %2442 = vmatprep.subr.bf16.mxu1 %v6214_v50 }
 0xb0f   : > { %2443 = vmatpush1.bf16.msra.mxu1 %v6215_v21 }
 0xb10   : > { %3905 = vmatprep.subr.bf16.mxu1 %v6171_v16 }
 0xba5   : > { %v5455_v40 = vpop.f32.mrb[12].mxu1 }
 0xba6   : > { %v2370_v44 = vpack.c.bf16 %v5455_v40, %v5455_v40  ;;  %v3883_v41 = vpop.f32.mrb[13].mxu1 }
 0xba7   : > { %v2348_v6 = vpop.f32.mrb[14].mxu1  ;;  %v6216_v41 = vld [vmem:[#allocation59_spill] sm:$0xff] }
 0xba8   : > { %v3884_v24 = vpop.f32.mrb[15].mxu1  ;;  %2404 = vmatmul.mubr.bf16.vlgmr.msra.gmra.mrb[12].mxu0 %v2370_v44  ;;  %2445 = vmatmul.mubr.bf16.vlgmr.msra.gmra.mrb[16].mxu1 %v2370_v44 }
 0xba9   : > { %3886 = vmatpush3.bf16.msra.mxu0 %v5222_v58  ;;  %3901 = vmatprep.mubr.msk.bf16.mxu0 %vm4688_vm9, %v6171_v16  ;;  %v6217_v24 = vld [vmem:[#allocation19_spill] sm:$0xff] }
 0xbaa   : > { %3887 = vmatprep.subr.bf16.mxu0 %v6171_v16  ;;  %3906 = vmatpush3.bf16.msra.mxu1 %v5363_v10 }
 0xbab   : > { %3907 = vmatprep.subr.bf16.mxu1 %v6171_v16  ;;  %3921 = vmatprep.mubr.msk.bf16.mxu1 %vm4688_vm9, %v6171_v16 }
 0xbad   : > { %3888 = vmatpush3.bf16.msra.mxu0 %v5231_v2 }
 0xbae   : > { %3889 = vmatprep.subr.bf16.mxu0 %v6171_v16  ;;  %3908 = vmatpush3.bf16.msra.mxu1 %v5369_v57 }
 0xbaf   : > { %3909 = vmatprep.subr.bf16.mxu1 %v6171_v16 }
 0xbb1   : > { %3890 = vmatpush3.bf16.msra.mxu0 %v5238_v5 }
 0xbb2   : > { %3891 = vmatprep.subr.bf16.mxu0 %v6171_v16  ;;  %3910 = vmatpush3.bf16.msra.mxu1 %v5376_v9 }
 0xbb3   : > { %3911 = vmatprep.subr.bf16.mxu1 %v6171_v16 }
 0xbb5   : > { %3892 = vmatpush3.bf16.msra.mxu0 %v5245_v12 }
 0xbb6   : > { %3893 = vmatprep.subr.bf16.mxu0 %v6171_v16  ;;  %3912 = vmatpush3.bf16.msra.mxu1 %v5383_v3 }
 0xbb7   : > { %3913 = vmatprep.subr.bf16.mxu1 %v6171_v16 }
 0xbb9   : > { %3894 = vmatpush3.bf16.msra.mxu0 %v5252_v22 }
 0xbba   : > { %3895 = vmatprep.subr.bf16.mxu0 %v6171_v16  ;;  %3914 = vmatpush3.bf16.msra.mxu1 %v5390_v61 }
 0xbbb   : > { %3915 = vmatprep.subr.bf16.mxu1 %v6171_v16 }
 0xbbd   : > { %3896 = vmatpush3.bf16.msra.mxu0 %v5262_v27 }
 0xbbe   : > { %3897 = vmatprep.subr.bf16.mxu0 %v6171_v16  ;;  %3916 = vmatpush3.bf16.msra.mxu1 %v5397_v62  ;;  %v6218_v62 = vld [vmem:[#allocation60_spill] sm:$0xff] }
 0xbbf   : > { %3917 = vmatprep.subr.bf16.mxu1 %v6171_v16 }
 0xbc1   : > { %3898 = vmatpush3.bf16.msra.mxu0 %v5269_v23 }
 0xbc2   : > { %3899 = vmatprep.subr.bf16.mxu0 %v6171_v16  ;;  %3918 = vmatpush3.bf16.msra.mxu1 %v5405_v33 }
 0xbc3   : > { %3919 = vmatprep.subr.bf16.mxu1 %v6171_v16 }
 0xbc5   : > { %3900 = vmatpush3.bf16.msra.mxu0 %v6216_v41 }
 0xbc6   : > { %3920 = vmatpush3.bf16.msra.mxu1 %v5412_v19  ;;  %2669 = vmatprep.subr.bf16.mxu0 %v6217_v24 }
 0xbc7   : > { %2710 = vmatprep.subr.bf16.mxu1 %v5042_v42 }
 0xc7b   : > { %v2405_v6 = vpop.f32.mrb[12].mxu0  ;;  %v2446_v44 = vpop.f32.mrb[16].mxu1 }
 0xc7c   : > { %v2406_v27 = vadd.f32 %v2405_v6, %v6218_v62  ;;  %v2407_v61 = vpop.f32.mrb[13].mxu0  ;;  %v2448_v23 = vpop.f32.mrb[17].mxu1  ;;  %v2447_v62 = vadd.f32 %v2446_v44, %v5299_v54  ;;  %v6226_v44 = vld [vmem:[#allocation23_spill] sm:$0xff] }
 0xc7d   : > { %v2409_v22 = vpop.f32.mrb[14].mxu0  ;;  %v2450_v3 = vpop.f32.mrb[18].mxu1  ;;  %v2408_v5 = vadd.f32 %v2407_v61, %v5290_v20  ;;  %v2449_v2 = vadd.f32 %v2448_v23, %v5296_v15 }
 0xc7e   : > { %v3615_v12 = vmul.f32 -1.442695, %v2406_v27  ;;  %v2410_v33 = vpop.f32.mrb[15].mxu0  ;;  %v2451_v9 = vpop.f32.mrb[19].mxu1 }
 0xc7f   : > { %v3616_v41 = vmul.f32 -1.442695, %v2408_v5 }
 0xc80   : > { %4430 = vpow2.f32 %v3615_v12 }
 0xc81   : > { %4432 = vpow2.f32 %v3616_v41  ;;  %v6225_v41 = vld [vmem:[#allocation22_spill] sm:$0xff] }
 0xc8a   : > { %v4431_v19 = vpop.eup %4430 }
 0xc8b   : > { %v2456_v24 = vadd.f32 1.0, %v4431_v19  ;;  %v4433_v42 = vpop.eup %4432 }
 0xc8c   : > { %v2462_v57 = vadd.f32 1.0, %v4433_v42  ;;  %v6228_v42 = vld [vmem:[#allocation25_spill] sm:$0xff] }
 0xc8d   : > { %4434 = vrcp.f32 %v2456_v24  ;;  %v6227_v24 = vld [vmem:[#allocation24_spill] sm:$0xff] }
 0xc8e   : > { %4436 = vrcp.f32 %v2462_v57 }
 0xc97   : > { %v4435_v6 = vpop.eup %4434 }
 0xc98   : > { %v2465_v22 = vmul.f32 %v4435_v6, %v2449_v2  ;;  %v4437_v33 = vpop.eup %4436  ;;  %v6223_v2 = vld [vmem:[#allocation17_spill] sm:$0xff]  ;;  %v6229_v6 = vld [vmem:[#allocation26_spill] sm:$0xff] }
 0xc99   : > { %v2468_v9 = vsub.f32 1.0, %v4437_v33  ;;  %v2470_v5 = vmul.f32 %v4437_v33, %v5304_v1  ;;  %v6232_v33 = vld [vmem:[#allocation29_spill] sm:$0xff] }
 0xc9a   : > { %v2466_v27 = vadd.f32 %v2465_v22, %v2447_v62  ;;  %v6224_v62 = vld [vmem:[#allocation21_spill] sm:$0xff]  ;;  %v6230_v22 = vld [vmem:[#allocation27_spill] sm:$0xff] }
 0xc9c   : > { %4438 = vtanh.f32 %v2466_v27  ;;  %v6231_v27 = vld [vmem:[#allocation28_spill] sm:$0xff] }
 0xca6   : > { %v4439_v3 = vpop.eup %4438 }
 0xca7   : > { %v2469_v12 = vmul.f32 %v4439_v3, %v2468_v9  ;;  %v6235_v9 = vld [vmem:[#allocation32_spill] sm:$0xff]  ;;  %v6236_v3 = vld [vmem:[#allocation33_spill] sm:$0xff] }
 0xca9   : > { %v5500_v61 = vadd.f32 %v2470_v5, %v2469_v12  ;;  %v6237_v12 = vld [vmem:[#allocation34_spill] sm:$0xff]  ;;  %v6238_v5 = vld [vmem:[#allocation35_spill] sm:$0xff] }
 0xcab   : > { %v5504_v19 = vpack.c.bf16 %v5500_v61, %v5500_v61 }
 0xcad   : > { %3902 = vmatmul.mubr.bf16.vlgmr.msra.gmra.mrb[16].mxu0 %v5504_v19 }
 0xcae   : > { %2701 = vmatprep.mubr.bf16.mxu0 %v5504_v19  ;;  %2670 = vmatpush1.bf16.msra.mxu0 %v5007_v26  ;;  %v6219_v26 = vld [vmem:[#allocation37_spill] sm:$0xff] }
 0xcaf   : > { %2671 = vmatprep.subr.bf16.mxu0 %v5013_v28  ;;  %v6220_v28 = vld [vmem:[#allocation40_spill] sm:$0xff] }
 0xcb2   : > { %2672 = vmatpush1.bf16.msra.mxu0 %v5015_v29 }
 0xcb3   : > { %2673 = vmatprep.subr.bf16.mxu0 %v5018_v30  ;;  %v6221_v30 = vld [vmem:[#allocation61_spill] sm:$0xff] }
 0xcb6   : > { %2674 = vmatpush1.bf16.msra.mxu0 %v5021_v31 }
 0xcb7   : > { %2675 = vmatprep.subr.bf16.mxu0 %v5024_v32 }
 0xcba   : > { %2676 = vmatpush1.bf16.msra.mxu0 %v5028_v34 }
 0xcbb   : > { %2677 = vmatprep.subr.bf16.mxu0 %v5031_v35 }
 0xcbe   : > { %2678 = vmatpush1.bf16.msra.mxu0 %v5033_v36 }
 0xcbf   : > { %2679 = vmatprep.subr.bf16.mxu0 %v5037_v38 }
 0xcc2   : > { %2680 = vmatpush1.bf16.msra.mxu0 %v5039_v39 }
 0xcc3   : > { %2681 = vmatprep.subr.bf16.mxu0 %v5048_v47 }
 0xcc6   : > { %2682 = vmatpush1.bf16.msra.mxu0 %v5051_v48 }
 0xcc7   : > { %2683 = vmatprep.subr.bf16.mxu0 %v5060_v51 }
 0xcca   : > { %2684 = vmatpush1.bf16.msra.mxu0 %v5063_v52 }
 0xccb   : > { %2685 = vmatprep.subr.bf16.mxu0 %v5072_v55 }
 0xcce   : > { %2686 = vmatpush1.bf16.msra.mxu0 %v5075_v56 }
 0xccf   : > { %2687 = vmatprep.subr.bf16.mxu0 %v5084_v59 }
 0xcd2   : > { %2688 = vmatpush1.bf16.msra.mxu0 %v5087_v60  ;;  %v6222_v60 = vld [vmem:[#allocation71_spill] sm:$0xff] }
 0xcd3   : > { %2689 = vmatprep.subr.bf16.mxu0 %v5096_v63  ;;  %vm2352_vm15 = vcmp.eq.s32.totalorder %v6222_v60, 3  ;;  %v6256_v60 = vld [vmem:[#allocation68_spill] sm:$0xff] }
 0xcd4   : > { %v5553_v63 = vsel %vm2352_vm15, 1.0, %v6171_v16 }
 0xcd6   : > { %2690 = vmatpush1.bf16.msra.mxu0 %v5099_v0 }
 0xcd7   : > { %2691 = vmatprep.subr.bf16.mxu0 %v5108_v4  ;;  %v5556_v4 = vsub.f32 1.0, %v5553_v63 }
 0xcda   : > { %2692 = vmatpush1.bf16.msra.mxu0 %v5111_v43 }
 0xcdb   : > { %2693 = vmatprep.subr.bf16.mxu0 %v5120_v7 }
 0xcde   : > { %2694 = vmatpush1.bf16.msra.mxu0 %v5122_v8 }
 0xcdf   : > { %2695 = vmatprep.subr.bf16.mxu0 %v5129_v11 }
 0xce2   : > { %2696 = vmatpush1.bf16.msra.mxu0 %v5136_v13  ;;  %v2600_v13 = vsub.f32 1.0, %v5556_v4 }
 0xce3   : > { %2697 = vmatprep.subr.bf16.mxu0 %v5139_v14 }
 0xce4   : > { %v2601_v23 = vmul.f32 %v6223_v2, %v2600_v13  ;;  %v4488_v13 = vld [vmem:[#allocation7 + $0x4] ss:$16 sps:$4 sm:$0xff]  }
 0xce6   : > { %2698 = vmatpush1.bf16.msra.mxu0 %v5148_v17 }
 0xce7   : > { %2699 = vmatprep.subr.bf16.mxu0 %v6219_v26  ;;  %v6240_v26 = vld [vmem:[#allocation38_spill] sm:$0xff] }
 0xcea   : > { %2700 = vmatpush1.bf16.msra.mxu0 %v6220_v28  ;;  %v6241_v28 = vld [vmem:[#allocation39_spill] sm:$0xff] }
 0xceb   : > { %3925 = vmatprep.subr.bf16.mxu0 %v6171_v16 }
 0xd80   : > { %v2507_v29 = vpop.f32.mrb[16].mxu0 }
 0xd81   : > { %v5541_v31 = vadd.f32 %v6221_v30, %v2507_v29  ;;  %v3903_v32 = vpop.f32.mrb[17].mxu0  ;;  %v6242_v29 = vld [vmem:[#allocation42_spill] sm:$0xff] }
 0xd82   : > { %v2510_v34 = vpop.f32.mrb[18].mxu0  ;;  %v6243_v32 = vld [vmem:[#allocation43_spill] sm:$0xff] }
 0xd83   : > { %v3904_v35 = vpop.f32.mrb[19].mxu0  ;;  %v2513_v36 = vsel %vm121_vm2, %v5541_v31, -inf  ;;  %v6244_v34 = vld [vmem:[#allocation44_spill] sm:$0xff] }
 0xd84   : > { %2514 = vmax.xlane.f32.xlu1 %v2513_v36  ;;  %v6245_v35 = vld [vmem:[#allocation45_spill] sm:$0xff]  ;;  %v6246_v36 = vld [vmem:[#allocation46_spill] sm:$0xff] }
 0xe11   : > { %v5545_v38 = vpop.xlane.xlu1 %2514 }
 0xe12   : > { %vm2579_vm13 = vcmp.ge.f32.partialorder %v5541_v31, %v5545_v38 }
 0xe13   : > { %v2580_v39 = vsel %vm2579_vm13, %v4899_v37, 128 }
 0xe14   : > { %v2581_v47 = vsel %vm121_vm2, %v2580_v39, 2147483647 }
 0xe15   : > { %v2583_v48 = vshra.s32 %v2581_v47, 16  ;;  %v2582_v52 = vand.u32 65535, %v2581_v47 }
 0xe17   : > { %v2585_v51 = vcvt.s32.f32 %v2583_v48  ;;  %v2584_v56 = vcvt.s32.f32 %v2582_v52 }
 0xe19   : > { %2586 = vmin.xlane.f32.xlu0 %v2585_v51 }
 0xea6   : > { %v2587_v55 = vpop.xlane.xlu0 %2586 }
 0xea7   : > { %vm2588_vm14 = vcmp.eq.f32.partialorder %v2585_v51, %v2587_v55  ;;  %v2593_v0 = vcvt.f32.s32 %v2587_v55  ;;  %v6253_v55 = vld [vmem:[#allocation56_spill] sm:$0xff] }
 0xea8   : > { %v2589_v59 = vsel %vm2588_vm14, %v2584_v56, inf  ;;  %v6254_v56 = vld [vmem:[#allocation67_spill] sm:$0xff] }
 0xea9   : > { %2590 = vmin.xlane.f32.xlu1 %v2589_v59  ;;  %v2594_v7 = vshll.u32 %v2593_v0, 16  ;;  %v6255_v59 = vld [vmem:[#allocation57_spill] sm:$0xff]  ;;  %v6257_v0 = vld [vmem:[#allocation58_spill] sm:$0xff] }
 0xf36   : > { %v2591_v43 = vpop.xlane.xlu1 %2590 }
 0xf37   : > { %v2592_v8 = vcvt.f32.s32 %v2591_v43  ;;  %v6258_v43 = vld [vmem:[#allocation69_spill] sm:$0xff] }
 0xf39   : > { %v5558_v11 = vadd.s32 %v2594_v7, %v2592_v8  ;;  %v6259_v7 = vld [vmem:[#allocation59_spill] sm:$0xff]  ;;  %v6260_v8 = vld [vmem:[#allocation70_spill] sm:$0xff] }
 0xf3b   : > { %vm2596_vm0 = vcmp.eq.s32.totalorder %v4899_v37, %v5558_v11  ;;  %vm2647_vm4 = vcmp.eq.s32.totalorder %v5558_v11, 3 }
 0xf3c   : > { %v3619_v14 = vsel %vm2596_vm0, 1.0, %v6171_v16 }
 0xf3d   : > { %v2599_v17 = vmul.f32 %v3619_v14, %v5556_v4  ;;  %v4489_v14 = vld [vmem:[#allocation7 + $0xc] ss:$16 sps:$4 sm:$0xff]  }
 0xf3f   : > { %v2602_v1 = vadd.f32 %v2601_v23, %v2599_v17 }
 0xf41   : > { %v2603_v57 = vpack.c.bf16 %v2602_v1, %v2602_v1  ;;  %v6261_v1 = vld [vmem:[#allocation60_spill] sm:$0xff] }
 0xf43   : > { %3922 = vmatmul.mubr.bf16.vlgmr.msra.gmra.mrb[20].mxu1 %v2603_v57 }
 0xf44   : > { %2742 = vmatprep.mubr.bf16.mxu1 %v5504_v19  ;;  %2711 = vmatpush1.bf16.msra.mxu1 %v5045_v46  ;;  %v6233_v46 = vld [vmem:[#allocation30_spill] sm:$0xff]  ;;  %v6239_v19 = vld [vmem:[#allocation36_spill] sm:$0xff] }
 0xf45   : > { %2712 = vmatprep.subr.bf16.mxu1 %v6186_v49  ;;  %v6234_v49 = vld [vmem:[#allocation31_spill] sm:$0xff] }
 0xf48   : > { %2713 = vmatpush1.bf16.msra.mxu1 %v6224_v62 }
 0xf49   : > { %2714 = vmatprep.subr.bf16.mxu1 %v6225_v41 }
 0xf4c   : > { %2715 = vmatpush1.bf16.msra.mxu1 %v6226_v44 }
 0xf4d   : > { %2716 = vmatprep.subr.bf16.mxu1 %v6227_v24 }
 0xf50   : > { %2717 = vmatpush1.bf16.msra.mxu1 %v6228_v42 }
 0xf51   : > { %2718 = vmatprep.subr.bf16.mxu1 %v6229_v6 }
 0xf54   : > { %2719 = vmatpush1.bf16.msra.mxu1 %v6230_v22 }
 0xf55   : > { %2720 = vmatprep.subr.bf16.mxu1 %v6231_v27 }
 0xf58   : > { %2721 = vmatpush1.bf16.msra.mxu1 %v6232_v33 }
 0xf59   : > { %2722 = vmatprep.subr.bf16.mxu1 %v6233_v46 }
 0xf5c   : > { %2723 = vmatpush1.bf16.msra.mxu1 %v6234_v49 }
 0xf5d   : > { %2724 = vmatprep.subr.bf16.mxu1 %v6235_v9 }
 0xf60   : > { %2725 = vmatpush1.bf16.msra.mxu1 %v6236_v3 }
 0xf61   : > { %2726 = vmatprep.subr.bf16.mxu1 %v6237_v12 }
 0xf64   : > { %2727 = vmatpush1.bf16.msra.mxu1 %v6238_v5 }
 0xf65   : > { %2728 = vmatprep.subr.bf16.mxu1 %v6239_v19 }
 0xf68   : > { %2729 = vmatpush1.bf16.msra.mxu1 %v6240_v26 }
 0xf69   : > { %2730 = vmatprep.subr.bf16.mxu1 %v6241_v28 }
 0xf6c   : > { %2731 = vmatpush1.bf16.msra.mxu1 %v6205_v18 }
 0xf6d   : > { %2732 = vmatprep.subr.bf16.mxu1 %v6242_v29 }
 0xf70   : > { %2733 = vmatpush1.bf16.msra.mxu1 %v6243_v32 }
 0xf71   : > { %2734 = vmatprep.subr.bf16.mxu1 %v6244_v34 }
 0xf74   : > { %2735 = vmatpush1.bf16.msra.mxu1 %v6245_v35 }
 0xf75   : > { %2736 = vmatprep.subr.bf16.mxu1 %v6246_v36 }
 0xf78   : > { %2737 = vmatpush1.bf16.msra.mxu1 %v6211_v25 }
 0xf79   : > { %2738 = vmatprep.subr.bf16.mxu1 %v6212_v53  ;;  %v6250_v53 = vld [vmem:[#allocation65_spill] sm:$0xff] }
 0xf7c   : > { %2739 = vmatpush1.bf16.msra.mxu1 %v6213_v45  ;;  %v6247_v45 = vld [vmem:[#allocation53_spill] sm:$0xff] }
 0xf7d   : > { %2740 = vmatprep.subr.bf16.mxu1 %v6214_v50  ;;  %v6248_v50 = vld [vmem:[#allocation64_spill] sm:$0xff] }
 0xf80   : > { %2741 = vmatpush1.bf16.msra.mxu1 %v6215_v21  ;;  %v6251_v21 = vld [vmem:[#allocation55_spill] sm:$0xff] }
 0xf81   : > { %3945 = vmatprep.subr.bf16.mxu1 %v6171_v16 }
0x1016   : > { %v2638_v18 = vpop.f32.mrb[20].mxu1 }
0x1017   : > { %v2644_v39 = vmul.f32 %v2638_v18, %v5556_v4  ;;  %v2668_v47 = vpack.c.bf16 %v2638_v18, %v2638_v18  ;;  %v3923_v48 = vpop.f32.mrb[21].mxu1 }
0x1018   : > { %v2641_v51 = vpop.f32.mrb[22].mxu1  ;;  %v4491_v48 = vld [vmem:[#allocation7 + $0x24] ss:$16 sps:$4 sm:$0xff]  }
0x1019   : > { %v5601_v52 = vadd.f32 %v2644_v39, %v5455_v40  ;;  %v3924_v25 = vpop.f32.mrb[23].mxu1  ;;  %2702 = vmatmul.mubr.bf16.vlgmr.msra.gmra.mrb[20].mxu0 %v2668_v47  ;;  %2743 = vmatmul.mubr.bf16.vlgmr.msra.gmra.mrb[24].mxu1 %v2668_v47  ;;  %v6252_v40 = vld [vmem:[#allocation66_spill] sm:$0xff] }
0x101a   : > { %3926 = vmatpush3.bf16.msra.mxu0 %v5222_v58  ;;  %3941 = vmatprep.mubr.msk.bf16.mxu0 %vm4688_vm9, %v6171_v16  ;;  %v6249_v58 = vld [vmem:[#allocation54_spill] sm:$0xff] }
0x101b   : > { %3927 = vmatprep.subr.bf16.mxu0 %v6171_v16  ;;  %3946 = vmatpush3.bf16.msra.mxu1 %v5363_v10  ;;  %v4490_v47 = vld [vmem:[#allocation7] ss:$16 sps:$4 sm:$0xff]   ;;  %v4493_v25 = vld [vmem:[#allocation7 + $0x44] ss:$16 sps:$4 sm:$0xff]  }
0x101c   : > { %3947 = vmatprep.subr.bf16.mxu1 %v6171_v16  ;;  %3961 = vmatprep.mubr.msk.bf16.mxu1 %vm4688_vm9, %v6171_v16  ;;  %v4492_v51 = vld [vmem:[#allocation7 + $0x20] ss:$16 sps:$4 sm:$0xff]  }
0x101e   : > { %3928 = vmatpush3.bf16.msra.mxu0 %v6247_v45  ;;  %v4494_v45 = vld [vmem:[#allocation7 + $0x40] ss:$16 sps:$4 sm:$0xff]  }
0x101f   : > { %3929 = vmatprep.subr.bf16.mxu0 %v6171_v16  ;;  %3948 = vmatpush3.bf16.msra.mxu1 %v6248_v50 }
0x1020   : > { %3949 = vmatprep.subr.bf16.mxu1 %v6171_v16 }
0x1022   : > { %3930 = vmatpush3.bf16.msra.mxu0 %v6249_v58  ;;  %v4496_v58 = vld [vmem:[#allocation7 + $0x60] ss:$16 sps:$4 sm:$0xff]  }
0x1023   : > { %3931 = vmatprep.subr.bf16.mxu0 %v6171_v16  ;;  %3950 = vmatpush3.bf16.msra.mxu1 %v6250_v53 }
0x1024   : > { %3951 = vmatprep.subr.bf16.mxu1 %v6171_v16 }
0x1026   : > { %3932 = vmatpush3.bf16.msra.mxu0 %v6251_v21  ;;  %v4497_v21 = vld [vmem:[#allocation7 + $0x84] ss:$16 sps:$4 sm:$0xff]  }
0x1027   : > { %3933 = vmatprep.subr.bf16.mxu0 %v6171_v16  ;;  %3952 = vmatpush3.bf16.msra.mxu1 %v6252_v40 }
0x1028   : > { %3953 = vmatprep.subr.bf16.mxu1 %v6171_v16 }
0x102a   : > { %3934 = vmatpush3.bf16.msra.mxu0 %v6253_v55  ;;  %v4498_v55 = vld [vmem:[#allocation7 + $0x80] ss:$16 sps:$4 sm:$0xff]  }
0x102b   : > { %3935 = vmatprep.subr.bf16.mxu0 %v6171_v16  ;;  %3954 = vmatpush3.bf16.msra.mxu1 %v6254_v56 }
0x102c   : > { %3955 = vmatprep.subr.bf16.mxu1 %v6171_v16 }
0x102e   : > { %3936 = vmatpush3.bf16.msra.mxu0 %v6255_v59  ;;  %v4499_v59 = vld [vmem:[#allocation7 + $0xa4] ss:$16 sps:$4 sm:$0xff]  }
0x102f   : > { %3937 = vmatprep.subr.bf16.mxu0 %v6171_v16  ;;  %3956 = vmatpush3.bf16.msra.mxu1 %v6256_v60 }
0x1030   : > { %3957 = vmatprep.subr.bf16.mxu1 %v6171_v16 }
0x1032   : > { %3938 = vmatpush3.bf16.msra.mxu0 %v6257_v0  ;;  %v4500_v0 = vld [vmem:[#allocation7 + $0xa0] ss:$16 sps:$4 sm:$0xff]  }
0x1033   : > { %3939 = vmatprep.subr.bf16.mxu0 %v6171_v16  ;;  %3958 = vmatpush3.bf16.msra.mxu1 %v6258_v43 }
0x1034   : > { %3959 = vmatprep.subr.bf16.mxu1 %v6171_v16 }
0x1036   : > { %3940 = vmatpush3.bf16.msra.mxu0 %v6259_v7  ;;  %v4501_v7 = vld [vmem:[#allocation7 + $0xc4] ss:$16 sps:$4 sm:$0xff]  }
0x1037   : > { %3960 = vmatpush3.bf16.msra.mxu1 %v6260_v8  ;;  %2967 = vmatprep.subr.bf16.mxu0 %v4488_v13  ;;  %v4502_v13 = vld [vmem:[#allocation7 + $0xc0] ss:$16 sps:$4 sm:$0xff]  }
0x1038   : > { %3008 = vmatprep.subr.bf16.mxu1 %v4489_v14  ;;  %v4503_v14 = vld [vmem:[#allocation7 + $0xe4] ss:$16 sps:$4 sm:$0xff]  }
0x10ec   : > { %v2703_v17 = vpop.f32.mrb[20].mxu0  ;;  %v2744_v23 = vpop.f32.mrb[24].mxu1 }
0x10ed   : > { %v2704_v57 = vadd.f32 %v2703_v17, %v6261_v1  ;;  %v2705_v62 = vpop.f32.mrb[21].mxu0  ;;  %v2746_v41 = vpop.f32.mrb[25].mxu1  ;;  %v2745_v19 = vadd.f32 %v2744_v23, %v5299_v54  ;;  %v4504_v17 = vld [vmem:[#allocation7 + $0xe0] ss:$16 sps:$4 sm:$0xff]   ;;  %v4505_v23 = vld [vmem:[#allocation7 + $0x104] ss:$16 sps:$4 sm:$0xff]  }
0x10ee   : > { %v2707_v44 = vpop.f32.mrb[22].mxu0  ;;  %v2748_v24 = vpop.f32.mrb[26].mxu1  ;;  %v2706_v27 = vadd.f32 %v2705_v62, %v5290_v20  ;;  %v2747_v12 = vadd.f32 %v2746_v41, %v5296_v15  ;;  %v4507_v62 = vld [vmem:[#allocation7 + $0x124] ss:$16 sps:$4 sm:$0xff]   ;;  %v4508_v41 = vld [vmem:[#allocation7 + $0x120] ss:$16 sps:$4 sm:$0xff]  }
0x10ef   : > { %v3621_v42 = vmul.f32 -1.442695, %v2704_v57  ;;  %v2708_v6 = vpop.f32.mrb[23].mxu0  ;;  %v2749_v22 = vpop.f32.mrb[27].mxu1  ;;  %v4506_v57 = vld [vmem:[#allocation7 + $0x100] ss:$16 sps:$4 sm:$0xff]  }
0x10f0   : > { %v3622_v33 = vmul.f32 -1.442695, %v2706_v27  ;;  %v4509_v44 = vld [vmem:[#allocation7 + $0x144] ss:$16 sps:$4 sm:$0xff]   ;;  %v4510_v24 = vld [vmem:[#allocation7 + $0x140] ss:$16 sps:$4 sm:$0xff]  }
0x10f1   : > { %4440 = vpow2.f32 %v3621_v42  ;;  %v4511_v42 = vld [vmem:[#allocation7 + $0x164] ss:$16 sps:$4 sm:$0xff]   ;;  %v4512_v6 = vld [vmem:[#allocation7 + $0x160] ss:$16 sps:$4 sm:$0xff]  }
0x10f2   : > { %4442 = vpow2.f32 %v3622_v33  ;;  %v4513_v22 = vld [vmem:[#allocation7 + $0x184] ss:$16 sps:$4 sm:$0xff]   ;;  %v4514_v27 = vld [vmem:[#allocation7 + $0x180] ss:$16 sps:$4 sm:$0xff]  }
0x10f3   : > { %v4515_v33 = vld [vmem:[#allocation7 + $0x1a4] ss:$16 sps:$4 sm:$0xff]  }
0x10fb   : > { %v4441_v46 = vpop.eup %4440 }
0x10fc   : > { %v2754_v49 = vadd.f32 1.0, %v4441_v46  ;;  %v4443_v9 = vpop.eup %4442  ;;  %v4516_v46 = vld [vmem:[#allocation7 + $0x1a0] ss:$16 sps:$4 sm:$0xff]  }
0x10fd   : > { %v2760_v3 = vadd.f32 1.0, %v4443_v9  ;;  %v4518_v9 = vld [vmem:[#allocation7 + $0x1c0] ss:$16 sps:$4 sm:$0xff]  }
0x10fe   : > { %4444 = vrcp.f32 %v2754_v49  ;;  %v4517_v49 = vld [vmem:[#allocation7 + $0x1c4] ss:$16 sps:$4 sm:$0xff]  }
0x10ff   : > { %4446 = vrcp.f32 %v2760_v3  ;;  %v4519_v3 = vld [vmem:[#allocation7 + $0x1e4] ss:$16 sps:$4 sm:$0xff]  }
0x1108   : > { %v4445_v5 = vpop.eup %4444 }
0x1109   : > { %v2763_v26 = vmul.f32 %v4445_v5, %v2747_v12  ;;  %v4447_v29 = vpop.eup %4446  ;;  %v4520_v12 = vld [vmem:[#allocation7 + $0x1e0] ss:$16 sps:$4 sm:$0xff]  }
0x110a   : > { %v2766_v32 = vsub.f32 1.0, %v4447_v29  ;;  %v2768_v36 = vmul.f32 %v4447_v29, %v5500_v61  ;;  %v4495_v61 = vld [vmem:[#allocation7 + $0x64] ss:$16 sps:$4 sm:$0xff]  }
0x110b   : > { %v2764_v28 = vadd.f32 %v2763_v26, %v2745_v19 }
0x110d   : > { %4448 = vtanh.f32 %v2764_v28 }
0x1117   : > { %v4449_v34 = vpop.eup %4448 }
0x1118   : > { %v2767_v35 = vmul.f32 %v4449_v34, %v2766_v32 }
0x111a   : > { %v5642_v18 = vadd.f32 %v2768_v36, %v2767_v35 }
0x111c   : > { %v5646_v39 = vpack.c.bf16 %v5642_v18, %v5642_v18 }
0x111e   : > { %3942 = vmatmul.mubr.bf16.vlgmr.msra.gmra.mrb[24].mxu0 %v5646_v39 }
0x111f   : > { %2999 = vmatprep.mubr.bf16.mxu0 %v5646_v39  ;;  %2968 = vmatpush1.bf16.msra.mxu0 %v4490_v47 }
0x1120   : > { %2969 = vmatprep.subr.bf16.mxu0 %v4491_v48 }
0x1123   : > { %2970 = vmatpush1.bf16.msra.mxu0 %v4492_v51 }
0x1124   : > { %2971 = vmatprep.subr.bf16.mxu0 %v4493_v25 }
0x1127   : > { %2972 = vmatpush1.bf16.msra.mxu0 %v4494_v45 }
0x1128   : > { %2973 = vmatprep.subr.bf16.mxu0 %v4495_v61  ;;  %v3620_v61 = vsel %vm2647_vm4, 1.0, %v6171_v16 }
0x112b   : > { %2974 = vmatpush1.bf16.msra.mxu0 %v4496_v58  ;;  %v5665_v58 = vmul.f32 %v3620_v61, %v5556_v4  ;;  %v4547_v61 = vld [vmem:[#allocation7 + $0x1a8] ss:$16 sps:$4 sm:$0xff]  }
0x112c   : > { %2975 = vmatprep.subr.bf16.mxu0 %v4497_v21 }
0x112d   : > { %v2666_v21 = vsub.f32 1.0, %v5665_v58 }
0x112f   : > { %2976 = vmatpush1.bf16.msra.mxu0 %v4498_v55 }
0x1130   : > { %2977 = vmatprep.subr.bf16.mxu0 %v4499_v59  ;;  %v5669_v59 = vmul.f32 %v2666_v21, %v5556_v4  ;;  %v4548_v21 = vld [vmem:[#allocation7 + $0x1cc] ss:$16 sps:$4 sm:$0xff]  }
0x1133   : > { %2978 = vmatpush1.bf16.msra.mxu0 %v4500_v0 }
0x1134   : > { %2979 = vmatprep.subr.bf16.mxu0 %v4501_v7 }
0x1137   : > { %2980 = vmatpush1.bf16.msra.mxu0 %v4502_v13 }
0x1138   : > { %2981 = vmatprep.subr.bf16.mxu0 %v4503_v14 }
0x113b   : > { %2982 = vmatpush1.bf16.msra.mxu0 %v4504_v17  ;;  %v2898_v17 = vsub.f32 1.0, %v5669_v59 }
0x113c   : > { %2983 = vmatprep.subr.bf16.mxu0 %v4505_v23 }
0x113f   : > { %2984 = vmatpush1.bf16.msra.mxu0 %v4506_v57  ;;  %v2899_v57 = vmul.f32 %v6223_v2, %v2898_v17 }
0x1140   : > { %2985 = vmatprep.subr.bf16.mxu0 %v4507_v62 }
0x1143   : > { %2986 = vmatpush1.bf16.msra.mxu0 %v4508_v41 }
0x1144   : > { %2987 = vmatprep.subr.bf16.mxu0 %v4509_v44  ;;  %v4521_v44 = vld [vmem:[#allocation7 + $0x8] ss:$16 sps:$4 sm:$0xff]  }
0x1147   : > { %2988 = vmatpush1.bf16.msra.mxu0 %v4510_v24  ;;  %v4522_v24 = vld [vmem:[#allocation7 + $0x2c] ss:$16 sps:$4 sm:$0xff]  }
0x1148   : > { %2989 = vmatprep.subr.bf16.mxu0 %v4511_v42  ;;  %v4523_v42 = vld [vmem:[#allocation7 + $0x28] ss:$16 sps:$4 sm:$0xff]  }
0x114b   : > { %2990 = vmatpush1.bf16.msra.mxu0 %v4512_v6  ;;  %v4524_v6 = vld [vmem:[#allocation7 + $0x4c] ss:$16 sps:$4 sm:$0xff]  }
0x114c   : > { %2991 = vmatprep.subr.bf16.mxu0 %v4513_v22  ;;  %v4525_v22 = vld [vmem:[#allocation7 + $0x48] ss:$16 sps:$4 sm:$0xff]  }
0x114f   : > { %2992 = vmatpush1.bf16.msra.mxu0 %v4514_v27  ;;  %v4526_v27 = vld [vmem:[#allocation7 + $0x6c] ss:$16 sps:$4 sm:$0xff]  }
0x1150   : > { %2993 = vmatprep.subr.bf16.mxu0 %v4515_v33  ;;  %v4527_v33 = vld [vmem:[#allocation7 + $0x68] ss:$16 sps:$4 sm:$0xff]  }
0x1153   : > { %2994 = vmatpush1.bf16.msra.mxu0 %v4516_v46  ;;  %v4528_v46 = vld [vmem:[#allocation7 + $0x8c] ss:$16 sps:$4 sm:$0xff]  }
0x1154   : > { %2995 = vmatprep.subr.bf16.mxu0 %v4517_v49  ;;  %v4529_v49 = vld [vmem:[#allocation7 + $0x88] ss:$16 sps:$4 sm:$0xff]  }
0x1157   : > { %2996 = vmatpush1.bf16.msra.mxu0 %v4518_v9  ;;  %v4530_v9 = vld [vmem:[#allocation7 + $0xac] ss:$16 sps:$4 sm:$0xff]  }
0x1158   : > { %2997 = vmatprep.subr.bf16.mxu0 %v4519_v3  ;;  %v4532_v3 = vld [vmem:[#allocation7 + $0xcc] ss:$16 sps:$4 sm:$0xff]  }
0x115b   : > { %2998 = vmatpush1.bf16.msra.mxu0 %v4520_v12  ;;  %v4533_v12 = vld [vmem:[#allocation7 + $0xc8] ss:$16 sps:$4 sm:$0xff]  }
0x115c   : > { %3965 = vmatprep.subr.bf16.mxu0 %v6171_v16 }
0x11f1   : > { %v2805_v5 = vpop.f32.mrb[24].mxu0 }
0x11f2   : > { %v5652_v19 = vadd.f32 %v6221_v30, %v2805_v5  ;;  %v3943_v26 = vpop.f32.mrb[25].mxu0  ;;  %v4534_v5 = vld [vmem:[#allocation7 + $0xec] ss:$16 sps:$4 sm:$0xff]  }
0x11f3   : > { %v2808_v28 = vpop.f32.mrb[26].mxu0  ;;  %v4535_v26 = vld [vmem:[#allocation7 + $0xe8] ss:$16 sps:$4 sm:$0xff]  }
0x11f4   : > { %v3944_v29 = vpop.f32.mrb[27].mxu0  ;;  %v2811_v32 = vsel %vm121_vm2, %v5652_v19, -inf  ;;  %v4536_v28 = vld [vmem:[#allocation7 + $0x10c] ss:$16 sps:$4 sm:$0xff]  }
0x11f5   : > { %2812 = vmax.xlane.f32.xlu0 %v2811_v32  ;;  %v4537_v29 = vld [vmem:[#allocation7 + $0x108] ss:$16 sps:$4 sm:$0xff]   ;;  %v4538_v32 = vld [vmem:[#allocation7 + $0x12c] ss:$16 sps:$4 sm:$0xff]  }
0x1282   : > { %v5656_v34 = vpop.xlane.xlu0 %2812 }
0x1283   : > { %vm2877_vm1 = vcmp.ge.f32.partialorder %v5652_v19, %v5656_v34 }
0x1284   : > { %v2878_v35 = vsel %vm2877_vm1, %v4899_v37, 128 }
0x1285   : > { %v2879_v36 = vsel %vm121_vm2, %v2878_v35, 2147483647  ;;  %v4539_v35 = vld [vmem:[#allocation7 + $0x128] ss:$16 sps:$4 sm:$0xff]  }
0x1286   : > { %v2881_v47 = vshra.s32 %v2879_v36, 16  ;;  %v2880_v30 = vand.u32 65535, %v2879_v36  ;;  %v4540_v36 = vld [vmem:[#allocation7 + $0x14c] ss:$16 sps:$4 sm:$0xff]  }
0x1288   : > { %v2883_v48 = vcvt.s32.f32 %v2881_v47  ;;  %v2882_v25 = vcvt.s32.f32 %v2880_v30  ;;  %v4541_v47 = vld [vmem:[#allocation7 + $0x148] ss:$16 sps:$4 sm:$0xff]  }
0x1289   : > { %v4543_v30 = vld [vmem:[#allocation7 + $0x168] ss:$16 sps:$4 sm:$0xff]  }
0x128a   : > { %2884 = vmin.xlane.f32.xlu1 %v2883_v48 }
0x1317   : > { %v2885_v51 = vpop.xlane.xlu1 %2884 }
0x1318   : > { %vm2886_vm3 = vcmp.eq.f32.partialorder %v2883_v48, %v2885_v51  ;;  %v2891_v55 = vcvt.f32.s32 %v2885_v51  ;;  %v4542_v48 = vld [vmem:[#allocation7 + $0x16c] ss:$16 sps:$4 sm:$0xff]  }
0x1319   : > { %v2887_v45 = vsel %vm2886_vm3, %v2882_v25, inf  ;;  %v4544_v51 = vld [vmem:[#allocation7 + $0x18c] ss:$16 sps:$4 sm:$0xff]   ;;  %v4545_v25 = vld [vmem:[#allocation7 + $0x188] ss:$16 sps:$4 sm:$0xff]  }
0x131a   : > { %2888 = vmin.xlane.f32.xlu0 %v2887_v45  ;;  %v2892_v7 = vshll.u32 %v2891_v55, 16  ;;  %v4546_v45 = vld [vmem:[#allocation7 + $0x1ac] ss:$16 sps:$4 sm:$0xff]   ;;  %v4549_v55 = vld [vmem:[#allocation7 + $0x1c8] ss:$16 sps:$4 sm:$0xff]  }
0x13a7   : > { %v2889_v0 = vpop.xlane.xlu0 %2888 }
0x13a8   : > { %v2890_v13 = vcvt.f32.s32 %v2889_v0  ;;  %v4550_v0 = vld [vmem:[#allocation7 + $0x1ec] ss:$16 sps:$4 sm:$0xff]  }
0x13aa   : > { %v5671_v14 = vadd.s32 %v2892_v7, %v2890_v13  ;;  %v4551_v7 = vld [vmem:[#allocation7 + $0x1e8] ss:$16 sps:$4 sm:$0xff]  }
0x13ac   : > { %vm2894_vm5 = vcmp.eq.s32.totalorder %v4899_v37, %v5671_v14 }
0x13ad   : > { %v3625_v11 = vsel %vm2894_vm5, 1.0, %v6171_v16 }
0x13ae   : > { %v2897_v23 = vmul.f32 %v3625_v11, %v5669_v59 }
0x13b0   : > { %v2900_v62 = vadd.f32 %v2899_v57, %v2897_v23 }
0x13b2   : > { %v2901_v41 = vpack.c.bf16 %v2900_v62, %v2900_v62 }
0x13b4   : > { %3962 = vmatmul.mubr.bf16.vlgmr.msra.gmra.mrb[28].mxu1 %v2901_v41 }
0x13b5   : > { %3040 = vmatprep.mubr.bf16.mxu1 %v5646_v39  ;;  %3009 = vmatpush1.bf16.msra.mxu1 %v4521_v44  ;;  %v4531_v39 = vld [vmem:[#allocation7 + $0xa8] ss:$16 sps:$4 sm:$0xff]   ;;  %v4552_v44 = vld [vmem:[%s6159_s14] sm:$0xff]  }
0x13b6   : > { %3010 = vmatprep.subr.bf16.mxu1 %v4522_v24  ;;  %v4555_v24 = vld [vmem:[%s6159_s14 + $0x18] sm:$0xff]  }
0x13b9   : > { %3011 = vmatpush1.bf16.msra.mxu1 %v4523_v42 }
0x13ba   : > { %3012 = vmatprep.subr.bf16.mxu1 %v4524_v6 }
0x13bd   : > { %3013 = vmatpush1.bf16.msra.mxu1 %v4525_v22 }
0x13be   : > { %3014 = vmatprep.subr.bf16.mxu1 %v4526_v27 }
0x13c1   : > { %3015 = vmatpush1.bf16.msra.mxu1 %v4527_v33 }
0x13c2   : > { %3016 = vmatprep.subr.bf16.mxu1 %v4528_v46 }
0x13c5   : > { %3017 = vmatpush1.bf16.msra.mxu1 %v4529_v49 }
0x13c6   : > { %3018 = vmatprep.subr.bf16.mxu1 %v4530_v9 }
0x13c9   : > { %3019 = vmatpush1.bf16.msra.mxu1 %v4531_v39 }
0x13ca   : > { %3020 = vmatprep.subr.bf16.mxu1 %v4532_v3 }
0x13cd   : > { %3021 = vmatpush1.bf16.msra.mxu1 %v4533_v12 }
0x13ce   : > { %3022 = vmatprep.subr.bf16.mxu1 %v4534_v5 }
0x13d1   : > { %3023 = vmatpush1.bf16.msra.mxu1 %v4535_v26 }
0x13d2   : > { %3024 = vmatprep.subr.bf16.mxu1 %v4536_v28 }
0x13d5   : > { %3025 = vmatpush1.bf16.msra.mxu1 %v4537_v29 }
0x13d6   : > { %3026 = vmatprep.subr.bf16.mxu1 %v4538_v32 }
0x13d9   : > { %3027 = vmatpush1.bf16.msra.mxu1 %v4539_v35 }
0x13da   : > { %3028 = vmatprep.subr.bf16.mxu1 %v4540_v36 }
0x13dd   : > { %3029 = vmatpush1.bf16.msra.mxu1 %v4541_v47 }
0x13de   : > { %3030 = vmatprep.subr.bf16.mxu1 %v4542_v48 }
0x13e1   : > { %3031 = vmatpush1.bf16.msra.mxu1 %v4543_v30 }
0x13e2   : > { %3032 = vmatprep.subr.bf16.mxu1 %v4544_v51 }
0x13e5   : > { %3033 = vmatpush1.bf16.msra.mxu1 %v4545_v25 }
0x13e6   : > { %3034 = vmatprep.subr.bf16.mxu1 %v4546_v45 }
0x13e9   : > { %3035 = vmatpush1.bf16.msra.mxu1 %v4547_v61 }
0x13ea   : > { %3036 = vmatprep.subr.bf16.mxu1 %v4548_v21 }
0x13ed   : > { %3037 = vmatpush1.bf16.msra.mxu1 %v4549_v55 }
0x13ee   : > { %3038 = vmatprep.subr.bf16.mxu1 %v4550_v0 }
0x13f1   : > { %3039 = vmatpush1.bf16.msra.mxu1 %v4551_v7  ;;  %v6263_v7 = vld [vmem:[#allocation62_spill] sm:$0xff] }
0x13f2   : > { %3985 = vmatprep.subr.bf16.mxu1 %v6171_v16 }
0x1487   : > { %v2936_v13 = vpop.f32.mrb[28].mxu1 }
0x1488   : > { %v2942_v17 = vmul.f32 %v2936_v13, %v5669_v59  ;;  %v2966_v11 = vpack.c.bf16 %v2936_v13, %v2936_v13  ;;  %v3963_v23 = vpop.f32.mrb[29].mxu1 }
0x1489   : > { %v2939_v57 = vpop.f32.mrb[30].mxu1  ;;  %v6264_v23 = vld [vmem:[#allocation14_spill] sm:$0xff] }
0x148a   : > { %v5683_v62 = vadd.f32 %v2942_v17, %v5601_v52  ;;  %v3964_v41 = vpop.f32.mrb[31].mxu1  ;;  %3000 = vmatmul.mubr.bf16.vlgmr.msra.gmra.mrb[28].mxu0 %v2966_v11  ;;  %3041 = vmatmul.mubr.bf16.vlgmr.msra.gmra.mrb[32].mxu1 %v2966_v11  ;;  %v4553_v52 = vld [vmem:[%s6159_s14 + $0x8] sm:$0xff]   ;;  %v2814_v17 = vsub.f32 %v5652_v19, %v5656_v34  ;;  %vm2170_vm6 = vcmp.eq.s32.totalorder %v6264_v23, 0  ;;  %v2171_v57 = vstv %s5754_s23  ;;  %s2218_s23 = smax.f32 %s4689_s22, %s2185_s19 }
0x148b   : > { %3966 = vmatpush3.bf16.msra.mxu0 %v4552_v44  ;;  %3981 = vmatprep.mubr.msk.bf16.mxu0 %vm4688_vm9, %v6171_v16  ;;  %vm2179_vm7 = vcmp.eq.s32.totalorder %v6264_v23, 1  ;;  %v2651_v23 = vsel %vm2206_vm12, %v5665_v58, 0.0 }
0x148c   : > { %3967 = vmatprep.subr.bf16.mxu0 %v6171_v16  ;;  %3986 = vmatpush3.bf16.msra.mxu1 %v5363_v10  ;;  %v4554_v10 = vld [vmem:[%s6159_s14 + $0x10] sm:$0xff]   ;;  %v2815_v41 = vmul.f32 1.442695, %v2814_v17 }
0x148d   : > { %3987 = vmatprep.subr.bf16.mxu1 %v6171_v16  ;;  %4001 = vmatprep.mubr.msk.bf16.mxu1 %vm4688_vm9, %v6171_v16 }
0x148f   : > { %3968 = vmatpush3.bf16.msra.mxu0 %v4553_v52  ;;  %v2172_v52 = vsel %vm2170_vm6, %v2171_v57, 0 }
0x1490   : > { %3969 = vmatprep.subr.bf16.mxu0 %v6171_v16  ;;  %3988 = vmatpush3.bf16.msra.mxu1 %v6248_v50  ;;  %v4556_v50 = vld [vmem:[%s6159_s14 + $0x20] sm:$0xff]  }
0x1491   : > { %3989 = vmatprep.subr.bf16.mxu1 %v6171_v16 }
0x1493   : > { %3970 = vmatpush3.bf16.msra.mxu0 %v4554_v10  ;;  %v2180_v10 = vstv %s5759_s26 }
0x1494   : > { %3971 = vmatprep.subr.bf16.mxu0 %v6171_v16  ;;  %3990 = vmatpush3.bf16.msra.mxu1 %v6250_v53  ;;  %v4557_v53 = vld [vmem:[%s6159_s14 + $0x28] sm:$0xff]  }
0x1495   : > { %3991 = vmatprep.subr.bf16.mxu1 %v6171_v16 }
0x1497   : > { %3972 = vmatpush3.bf16.msra.mxu0 %v4555_v24 }
0x1498   : > { %3973 = vmatprep.subr.bf16.mxu0 %v6171_v16  ;;  %3992 = vmatpush3.bf16.msra.mxu1 %v6252_v40  ;;  %v4558_v40 = vld [vmem:[%s6159_s14 + $0x30] sm:$0xff]  }
0x1499   : > { %3993 = vmatprep.subr.bf16.mxu1 %v6171_v16 }
0x149b   : > { %3974 = vmatpush3.bf16.msra.mxu0 %v4556_v50 }
0x149c   : > { %3975 = vmatprep.subr.bf16.mxu0 %v6171_v16  ;;  %3994 = vmatpush3.bf16.msra.mxu1 %v6254_v56  ;;  %v4559_v56 = vld [vmem:[%s6159_s14 + $0x38] sm:$0xff]  }
0x149d   : > { %3995 = vmatprep.subr.bf16.mxu1 %v6171_v16 }
0x149f   : > { %3976 = vmatpush3.bf16.msra.mxu0 %v4557_v53  ;;  %v5777_v53 = vsel %vm2179_vm7, %v2180_v10, %v2172_v52 }
0x14a0   : > { %3977 = vmatprep.subr.bf16.mxu0 %v6171_v16  ;;  %3996 = vmatpush3.bf16.msra.mxu1 %v6256_v60  ;;  %vm2189_vm10 = vcmp.eq.s32.totalorder %v4899_v37, %v5777_v53 }
0x14a1   : > { %3997 = vmatprep.subr.bf16.mxu1 %v6171_v16 }
0x14a3   : > { %3978 = vmatpush3.bf16.msra.mxu0 %v4558_v40 }
0x14a4   : > { %3979 = vmatprep.subr.bf16.mxu0 %v6171_v16  ;;  %3998 = vmatpush3.bf16.msra.mxu1 %v6258_v43 }
0x14a5   : > { %3999 = vmatprep.subr.bf16.mxu1 %v6171_v16 }
0x14a7   : > { %3980 = vmatpush3.bf16.msra.mxu0 %v4559_v56 }
0x14a8   : > { %4000 = vmatpush3.bf16.msra.mxu1 %v6260_v8  ;;  %4005 = vmatprep.subr.bf16.mxu0 %v6171_v16 }
0x155d   : > { %v3001_v60 = vpop.f32.mrb[28].mxu0  ;;  %v3042_v42 = vpop.f32.mrb[32].mxu1 }
0x155e   : > { %v3002_v6 = vadd.f32 %v3001_v60, %v6261_v1  ;;  %v3003_v22 = vpop.f32.mrb[29].mxu0  ;;  %v3044_v27 = vpop.f32.mrb[33].mxu1  ;;  %v3043_v29 = vadd.f32 %v3042_v42, %v5299_v54  ;;  %v4560_v54 = vld [vmem:[%s6172_s15] ss:$0 sm:$0xff] }
0x155f   : > { %v3005_v33 = vpop.f32.mrb[30].mxu0  ;;  %v3046_v46 = vpop.f32.mrb[34].mxu1  ;;  %v3004_v39 = vadd.f32 %v3003_v22, %v5290_v20  ;;  %v3045_v28 = vadd.f32 %v3044_v27, %v5296_v15 }
0x1560   : > { %v3627_v43 = vmul.f32 -1.442695, %v3002_v6  ;;  %v3006_v49 = vpop.f32.mrb[31].mxu0  ;;  %v3047_v9 = vpop.f32.mrb[35].mxu1 }
0x1561   : > { %v3628_v3 = vmul.f32 -1.442695, %v3004_v39  ;;  %v2516_v49 = vsub.f32 %v5541_v31, %v5545_v38 }
0x1562   : > { %4450 = vpow2.f32 %v3627_v43  ;;  %v2355_v43 = vsel %vm2206_vm12, %v5553_v63, 0.0 }
0x1563   : > { %4452 = vpow2.f32 %v3628_v3  ;;  %v2517_v39 = vmul.f32 1.442695, %v2516_v49 }
0x156c   : > { %v4451_v12 = vpop.eup %4450 }
0x156d   : > { %v3052_v8 = vadd.f32 1.0, %v4451_v12  ;;  %v4453_v5 = vpop.eup %4452 }
0x156e   : > { %v3058_v26 = vadd.f32 1.0, %v4453_v5 }
0x156f   : > { %4454 = vrcp.f32 %v3052_v8 }
0x1570   : > { %4456 = vrcp.f32 %v3058_v26 }
0x1579   : > { %v4455_v1 = vpop.eup %4454 }
0x157a   : > { %v3061_v32 = vmul.f32 %v4455_v1, %v3045_v28  ;;  %v4457_v36 = vpop.eup %4456  ;;  %v2527_v1 = vstv %s5796_s8  ;;  %s3126_s8 = scalar_select %p3125_p13, 1, 0 }
0x157b   : > { %v3064_v47 = vsub.f32 1.0, %v4457_v36  ;;  %v3066_v30 = vmul.f32 %v4457_v36, %v5642_v18  ;;  %v6262_v18 = vld [vmem:[#allocation63_spill] sm:$0xff]  ;;  %v2535_v36 = vstv %s5799_s21  ;;  %s3134_s21 = scalar_select %p3133_p0, 1, 0 }
0x157c   : > { %v3062_v35 = vadd.f32 %v3061_v32, %v3043_v29  ;;  %v2160_v13 = vsub.f32 %v6263_v7, %v6262_v18 }
0x157d   : > { %s3135_s19 = scvt.s32.f32 %s3134_s21 }
0x157e   : > { %4458 = vtanh.f32 %v3062_v35  ;;  %v2161_v11 = vmul.f32 1.442695, %v2160_v13  ;;  %v2528_v35 = vsel %vm2170_vm6, %v2527_v1, 0 }
0x1580   : > { %4460 = vpow2.f32 %v2161_v11 }
0x1581   : > { %4462 = vpow2.f32 %v2815_v41  ;;  %v3131_v41 = vstv %s5822_s1 }
0x1582   : > { %4464 = vpow2.f32 %v2517_v39 }
0x1588   : > { %v4459_v20 = vpop.eup %4458 }
0x1589   : > { %v3065_v48 = vmul.f32 %v4459_v20, %v3064_v47 }
0x158a   : > { %v4461_v60 = vpop.eup %4460 }
0x158b   : > { %v3067_v51 = vadd.f32 %v3066_v30, %v3065_v48  ;;  %v2163_v42 = vsel %vm121_vm2, %v4461_v60, 0.0  ;;  %v4463_v6 = vpop.eup %4462  ;;  %v5820_v48 = vsel %vm2179_vm7, %v2535_v36, %v2528_v35 }
0x158c   : > { %v2817_v27 = vsel %vm121_vm2, %v4463_v6, 0.0  ;;  %v4465_v26 = vpop.eup %4464  ;;  %vm2541_vm14 = vcmp.ne.s32.totalorder %v5820_v48, 0  ;;  %vm2544_vm15 = vcmp.eq.s32.totalorder %v4899_v37, %v5820_v48 }
0x158d   : > { %v3068_v25 = vpack.c.bf16 %v3067_v51, %v3067_v51  ;;  %v2519_v29 = vsel %vm121_vm2, %v4465_v26, 0.0  ;;  %vm2546_vm0 = vmand %vm2544_vm15, %vm2541_vm14 }
0x158e   : > { %v3618_v11 = vsel %vm2546_vm0, 1.0, %v6171_v16 }
0x158f   : > { %3982 = vmatmul.mubr.bf16.vlgmr.msra.gmra.mrb[32].mxu0 %v3068_v25 }
0x1590   : > { %4021 = vmatprep.mubr.msk.bf16.mxu0 %vm4688_vm9, %v6171_v16  ;;  %vm2186_vm9 = vcmp.ne.s32.totalorder %v5777_v53, 0 }
0x1591   : > { %vm2191_vm11 = vmand %vm2189_vm10, %vm2186_vm9 }
0x1592   : > { %v3604_v22 = vsel %vm2191_vm11, 1.0, %v6171_v16 }
0x1593   : > { %v2194_v33 = vmul.f32 %v3604_v22, %v6263_v7 }
0x1595   : > { %v2195_v46 = vsel %vm121_vm2, %v2194_v33, 0.0 }
0x1662   : > { %v3103_v15 = vpop.f32.mrb[32].mxu0 }
0x1663   : > { %v5746_v45 = vadd.f32 %v4560_v54, %v3103_v15  ;;  %v3983_v61 = vpop.f32.mrb[33].mxu0 }
0x1664   : > { %v3106_v21 = vpop.f32.mrb[34].mxu0  ;;  %v3123_v61 = vstv %s5811_s28 }
0x1665   : > { %v3984_v55 = vpop.f32.mrb[35].mxu0  ;;  %v3109_v0 = vsel %vm121_vm2, %v5746_v45, -inf  ;;  %v3124_v57 = vsel %vm2170_vm6, %v3123_v61, 0 }
0x1666   : > { %3110 = vmax.xlane.f32.xlu1 %v3109_v0  ;;  %v3603_v55 = vsel %vm2186_vm9, 1.0, %v6171_v16  ;;  %v2825_v0 = vstv %s5814_s30  ;;  %s2838_s30 = sadd.f32 %s2837_s10, %s2829_s18 }
0x1667   : > { %v2826_v10 = vsel %vm2170_vm6, %v2825_v0, 0  ;;  %vm2945_vm6 = vcmp.eq.s32.totalorder %v5671_v14, 3 }
0x1668   : > { %v3626_v49 = vsel %vm2945_vm6, 1.0, %v6171_v16  ;;  %s2870_s28 = smax.f32 %s4689_s22, %s2838_s30 }
0x16f3   : > { %v5765_v44 = vpop.xlane.xlu1 %3110 }
0x16f4   : > { %vm3175_vm8 = vcmp.ge.f32.partialorder %v5746_v45, %v5765_v44  ;;  %v3112_v9 = vsub.f32 %v5746_v45, %v5765_v44 }
0x16f5   : > { %v3176_v24 = vsel %vm3175_vm8, %v4899_v37, 128 }
0x16f6   : > { %v3177_v50 = vsel %vm121_vm2, %v3176_v24, 2147483647  ;;  %v3113_v3 = vmul.f32 1.442695, %v3112_v9  ;;  %v2833_v24 = vstv %s5824_s17  ;;  %v5870_v9 = vmul.f32 %v3626_v49, %v5669_v59  ;;  %v4405_v49 = vld [vmem:[%s6265_s6 + $0x18] sm:$0xff]   ;;  %s3127_s17 = scvt.s32.f32 %s3126_s8 }
0x16f7   : > { %v3179_v40 = vshra.s32 %v3177_v50, 16  ;;  %v3178_v12 = vand.u32 65535, %v3177_v50 }
0x16f8   : > { %4466 = vpow2.f32 %v3113_v3  ;;  %v2964_v58 = vsub.f32 1.0, %v5870_v9  ;;  %s3136_s1 = sadd.f32 %s3135_s19, %s3127_s17 }
0x16f9   : > { %v3181_v56 = vcvt.s32.f32 %v3179_v40  ;;  %v3180_v8 = vcvt.s32.f32 %v3178_v12 }
0x16fa   : > { %v5876_v3 = vmul.f32 %v2964_v58, %v5669_v59  ;;  %v4407_v58 = vld [vmem:[%s6265_s6 + $0x28] sm:$0xff]  }
0x16fb   : > { %3182 = vmin.xlane.f32.xlu0 %v3181_v56 }
0x16fc   : > { %v3196_v14 = vsub.f32 1.0, %v5876_v3 }
0x16ff   : > { %2164 = vadd.xlane.f32.xlu0 %v2163_v42  ;;  %v2834_v42 = vsel %vm2179_vm7, %v2833_v24, %v2826_v10 }
0x1700   : > { %vm2839_vm4 = vcmp.ne.s32.totalorder %v2834_v42, 0  ;;  %vm2842_vm8 = vcmp.eq.s32.totalorder %v4899_v37, %v2834_v42  ;;  %v2949_v42 = vsel %vm2206_vm12, %v5870_v9, 0.0  ;;  %v4406_v9 = vld [vmem:[%s6265_s6 + $0x20] sm:$0xff]  }
0x1701   : > { %vm2844_vm9 = vmand %vm2842_vm8, %vm2839_vm4 }
0x1702   : > { %v4467_v32 = vpop.eup %4466  ;;  %v3624_v61 = vsel %vm2844_vm9, 1.0, %v6171_v16 }
0x1703   : > { %2818 = vadd.xlane.f32.xlu0 %v2817_v27  ;;  %v3115_v20 = vsel %vm121_vm2, %v4467_v32, 0.0 }
0x1707   : > { %2196 = vadd.xlane.f32.xlu0 %v2195_v46 }
0x170b   : > { %2356 = vadd.xlane.f32.xlu0 %v2355_v43 }
0x1788   : > { %v5801_v63 = vpop.xlane.xlu0 %3182 }
0x1789   : > { %vm3184_vm13 = vcmp.eq.f32.partialorder %v3181_v56, %v5801_v63  ;;  %v2549_v56 = vmul.f32 %v3618_v11, %v5541_v31  ;;  %v3623_v31 = vsel %vm2839_vm4, 1.0, %v6171_v16  ;;  %v3189_v39 = vcvt.f32.s32 %v5801_v63 }
0x178a   : > { %v3185_v5 = vsel %vm3184_vm13, %v3180_v8, inf  ;;  %v3197_v63 = vmul.f32 %v6223_v2, %v3196_v14  ;;  %v2847_v11 = vmul.f32 %v3624_v61, %v5652_v19 }
0x178b   : > { %3186 = vmin.xlane.f32.xlu1 %v3185_v5  ;;  %v2550_v6 = vsel %vm121_vm2, %v2549_v56, 0.0  ;;  %v3190_v12 = vshll.u32 %v3189_v39, 16  ;;  %v4408_v39 = vld [vmem:[%s6265_s6 + $0x30] sm:$0xff]  }
0x178c   : > { %v2165_v28 = vpop.xlane.xlu0 %2164  ;;  %v2848_v10 = vsel %vm121_vm2, %v2847_v11, 0.0 }
0x178d   : > { %4468 = vlog2.f32 %v2165_v28 }
0x178f   : > { %2520 = vadd.xlane.f32.xlu1 %v2519_v29 }
0x1790   : > { %v2819_v47 = vpop.xlane.xlu0 %2818 }
0x1791   : > { %4470 = vlog2.f32 %v2819_v47 }
0x1793   : > { %3116 = vadd.xlane.f32.xlu1 %v3115_v20 }
0x1794   : > { %v2197_v30 = vpop.xlane.xlu0 %2196 }
0x1795   : > { %v2198_v51 = vrot.slane %v2197_v30, 4 }
0x1797   : > { %v4469_v25 = vpop.eup %4468  ;;  %v2199_v15 = vadd.f32 %v2198_v51, %v2197_v30  ;;  %v3617_v51 = vsel %vm2541_vm14, 1.0, %v6171_v16 }
0x1798   : > { %v2167_v54 = vmul.f32 0.6931472, %v4469_v25  ;;  %v2357_v35 = vpop.xlane.xlu0 %2356 }
0x1799   : > { %v2200_v21 = vrot.slane %v2199_v15, 2  ;;  %v2358_v47 = vrot.slane %v2357_v35, 4 }
0x179a   : > { %v2168_v7 = vadd.f32 %v2167_v54, %v6262_v18  ;;  %v5848_v18 = vsel %vm2179_vm7, %v3131_v41, %v3124_v57 }
0x179b   : > { %v4471_v13 = vpop.eup %4470  ;;  %v2201_v17 = vadd.f32 %v2200_v21, %v2199_v15  ;;  %vm3137_vm1 = vcmp.ne.s32.totalorder %v5848_v18, 0  ;;  %vm3140_vm3 = vcmp.eq.s32.totalorder %v4899_v37, %v5848_v18  ;;  %v2359_v2 = vadd.f32 %v2358_v47, %v2357_v35 }
0x179c   : > { %v2205_v52 = vmul.f32 %v3603_v55, %v2168_v7  ;;  %v2821_v40 = vmul.f32 0.6931472, %v4471_v13  ;;  %vm3142_vm5 = vmand %vm3140_vm3, %vm3137_vm1  ;;  %v2219_v15 = vstv %s2218_s23  ;;  %v2871_v47 = vstv %s2870_s28  ;;  %s3168_s23 = smax.f32 %s4689_s22, %s3136_s1 }
0x179d   : > { %v2202_v50 = vrot.slane %v2201_v17, 1  ;;  %v3630_v33 = vsel %vm3142_vm5, 1.0, %v6171_v16  ;;  %v2360_v0 = vrot.slane %v2359_v2, 2 }
0x179e   : > { %v2207_v53 = vsel %vm2206_vm12, %v2205_v52, 0.0  ;;  %v2822_v22 = vadd.f32 %v2821_v40, %v5656_v34  ;;  %v3145_v34 = vmul.f32 %v3630_v33, %v5746_v45 }
0x179f   : > { %2208 = vadd.xlane.f32.xlu1 %v2207_v53  ;;  %v2203_v60 = vadd.f32 %v2202_v50, %v2201_v17  ;;  %v3629_v53 = vsel %vm3137_vm1, 1.0, %v6171_v16 }
0x17a0   : > { %v2858_v27 = vmul.f32 %v3623_v31, %v2822_v22  ;;  %v3146_v43 = vsel %vm121_vm2, %v3145_v34, 0.0  ;;  %v4403_v34 = vld [vmem:[%s6265_s6 + $0x8] sm:$0xff]  }
0x17a1   : > { %4031 = vpush %v2203_v60 }
0x17a2   : > { %v2859_v46 = vsel %vm2206_vm12, %v2858_v27, 0.0 }
0x17a3   : > { %2551 = vadd.xlane.f32.xlu1 %v2550_v6 }
0x17a7   : > { %2652 = vadd.xlane.f32.xlu1 %v2651_v23 }
0x17ab   : > { %2860 = vadd.xlane.f32.xlu1 %v2859_v46  ;;  %v4402_v46 = vld [vmem:[%s6265_s6] sm:$0xff]  }
0x17ac   : > { %4006 = vmatpush3.bf16.msra.mxu0 %v4402_v46 }
0x17ad   : > { %4007 = vmatprep.subr.bf16.mxu0 %v6171_v16 }
0x17af   : > { %3147 = vadd.xlane.f32.xlu1 %v3146_v43  ;;  %v4404_v43 = vld [vmem:[%s6265_s6 + $0x10] sm:$0xff]  }
0x17b0   : > { %4008 = vmatpush3.bf16.msra.mxu0 %v4403_v34 }
0x17b1   : > { %4009 = vmatprep.subr.bf16.mxu0 %v6171_v16 }
0x17b4   : > { %4010 = vmatpush3.bf16.msra.mxu0 %v4404_v43 }
0x17b5   : > { %4011 = vmatprep.subr.bf16.mxu0 %v6171_v16 }
0x17b8   : > { %4012 = vmatpush3.bf16.msra.mxu0 %v4405_v49 }
0x17b9   : > { %4013 = vmatprep.subr.bf16.mxu0 %v6171_v16 }
0x17bc   : > { %4014 = vmatpush3.bf16.msra.mxu0 %v4406_v9  ;;  %v2646_v9 = vadd.f32 1.0, %v5556_v4 }
0x17bd   : > { %4015 = vmatprep.subr.bf16.mxu0 %v6171_v16 }
0x17c0   : > { %4016 = vmatpush3.bf16.msra.mxu0 %v4407_v58  ;;  %v2944_v58 = vadd.f32 %v5669_v59, %v2646_v9 }
0x17c1   : > { %4017 = vmatprep.subr.bf16.mxu0 %v6171_v16 }
0x17c4   : > { %4018 = vmatpush3.bf16.msra.mxu0 %v4408_v39  ;;  %v3242_v39 = vadd.f32 %v5876_v3, %v2944_v58 }
0x17c5   : > { %4019 = vmatprep.subr.bf16.mxu0 %v6171_v16 }
0x17d2   : > { %s5945_s22 = spop %4031 }
0x1818   : > { %v3187_v45 = vpop.xlane.xlu1 %3186 }
0x1819   : > { %v3188_v8 = vcvt.f32.s32 %v3187_v45  ;;  %v4409_v45 = vld [vmem:[%s6265_s6 + $0x38] sm:$0xff]  }
0x181a   : > { %4020 = vmatpush3.bf16.msra.mxu0 %v4409_v45  ;;  %v3243_v45 = vmax.f32 %v3242_v39, 1.0 }
0x181b   : > { %v3191_v5 = vadd.s32 %v3190_v12, %v3188_v8 }
0x181c   : > { %v2521_v26 = vpop.xlane.xlu1 %2520 }
0x181d   : > { %vm3192_vm7 = vcmp.eq.s32.totalorder %v4899_v37, %v3191_v5  ;;  %4472 = vlog2.f32 %v2521_v26 }
0x181e   : > { %v3631_v28 = vsel %vm3192_vm7, 1.0, %v6171_v16 }
0x181f   : > { %v3195_v1 = vmul.f32 %v3631_v28, %v5876_v3  ;;  %v2573_v28 = vstv %s2572_s27 }
0x1820   : > { %v3117_v29 = vpop.xlane.xlu1 %3116 }
0x1821   : > { %v3198_v32 = vadd.f32 %v3197_v63, %v3195_v1  ;;  %4474 = vlog2.f32 %v3117_v29 }
0x1822   : > { %4476 = vrcp.f32 %v2219_v15 }
0x1823   : > { %v3199_v36 = vpack.c.bf16 %v3198_v32, %v3198_v32  ;;  %4478 = vrcp.f32 %v2573_v28 }
0x1824   : > { %4480 = vrcp.f32 %v2871_v47 }
0x1825   : > { %4002 = vmatmul.mubr.bf16.vlgmr.msra.gmra.mrb[36].mxu1 %v3199_v36 }
0x1827   : > { %v4473_v20 = vpop.eup %4472 }
0x1828   : > { %v2523_v30 = vmul.f32 0.6931472, %v4473_v20 }
0x182a   : > { %v2524_v25 = vadd.f32 %v2523_v30, %v5545_v38  ;;  %v2361_v38 = vadd.f32 %v2360_v0, %v2359_v2 }
0x182b   : > { %v4475_v54 = vpop.eup %4474 }
0x182c   : > { %v2209_v21 = vpop.xlane.xlu1 %2208  ;;  %v2560_v55 = vmul.f32 %v3617_v51, %v2524_v25  ;;  %v3119_v13 = vmul.f32 0.6931472, %v4475_v54  ;;  %v2362_v19 = vrot.slane %v2361_v38, 1  ;;  %v4477_v22 = vpop.eup %4476 }
0x182d   : > { %v2210_v7 = vrot.slane %v2209_v21, 4 }
0x182e   : > { %v2561_v17 = vsel %vm2206_vm12, %v2560_v55, 0.0  ;;  %v3120_v24 = vadd.f32 %v3119_v13, %v5765_v44  ;;  %v2363_v44 = vadd.f32 %v2362_v19, %v2361_v38 }
0x182f   : > { %v2211_v57 = vadd.f32 %v2210_v7, %v2209_v21  ;;  %2562 = vadd.xlane.f32.xlu0 %v2561_v17 }
0x1830   : > { %v2552_v48 = vpop.xlane.xlu1 %2551  ;;  %v3156_v6 = vmul.f32 %v3629_v53, %v3120_v24 }
0x1831   : > { %v2212_v41 = vrot.slane %v2211_v57, 2  ;;  %v2553_v52 = vrot.slane %v2552_v48, 4 }
0x1832   : > { %v3157_v33 = vsel %vm2206_vm12, %v3156_v6, 0.0 }
0x1833   : > { %v2554_v50 = vadd.f32 %v2553_v52, %v2552_v48  ;;  %2849 = vadd.xlane.f32.xlu0 %v2848_v10  ;;  %v2213_v40 = vadd.f32 %v2212_v41, %v2211_v57  ;;  %v3169_v57 = vstv %s3168_s23  ;;  %v4479_v48 = vpop.eup %4478 }
0x1834   : > { %v2653_v12 = vpop.xlane.xlu1 %2652  ;;  %4482 = vrcp.f32 %v3169_v57 }
0x1835   : > { %v2555_v56 = vrot.slane %v2554_v50, 2  ;;  %v2214_v60 = vrot.slane %v2213_v40, 1  ;;  %v2654_v8 = vrot.slane %v2653_v12, 4  ;;  %4484 = vrcp.f32 %v3243_v45 }
0x1837   : > { %2950 = vadd.xlane.f32.xlu0 %v2949_v42  ;;  %v2215_v31 = vadd.f32 %v2214_v60, %v2213_v40  ;;  %v2556_v23 = vadd.f32 %v2555_v56, %v2554_v50  ;;  %v2655_v14 = vadd.f32 %v2654_v8, %v2653_v12 }
0x1838   : > { %v2861_v16 = vpop.xlane.xlu1 %2860 }
0x1839   : > { %4033 = vpush %v2215_v31  ;;  %v2557_v27 = vrot.slane %v2556_v23, 1  ;;  %v2862_v5 = vrot.slane %v2861_v16, 4  ;;  %v2656_v63 = vrot.slane %v2655_v14, 2 }
0x183a   : > { %4035 = vpush %v4477_v22  ;;  %v4481_v22 = vpop.eup %4480 }
0x183b   : > { %4037 = vpush %v2363_v44  ;;  %3158 = vadd.xlane.f32.xlu0 %v3157_v33  ;;  %v2558_v18 = vadd.f32 %v2557_v27, %v2556_v23  ;;  %v2863_v1 = vadd.f32 %v2862_v5, %v2861_v16  ;;  %v2657_v51 = vadd.f32 %v2656_v63, %v2655_v14 }
0x183c   : > { %v3148_v26 = vpop.xlane.xlu1 %3147 }
0x183d   : > { %4039 = vpush %v2558_v18  ;;  %v3149_v29 = vrot.slane %v3148_v26, 4  ;;  %v2864_v20 = vrot.slane %v2863_v1, 2  ;;  %v2658_v0 = vrot.slane %v2657_v51, 1 }
0x183e   : > { %v4483_v43 = vpop.eup %4482 }
0x183f   : > { %v3150_v30 = vadd.f32 %v3149_v29, %v3148_v26  ;;  %v2865_v7 = vadd.f32 %v2864_v20, %v2863_v1  ;;  %v2659_v50 = vadd.f32 %v2658_v0, %v2657_v51  ;;  %v4485_v5 = vpop.eup %4484 }
0x1841   : > { %v3151_v21 = vrot.slane %v3150_v30, 2  ;;  %v2866_v40 = vrot.slane %v2865_v7, 1 }
0x1843   : > { %v3152_v10 = vadd.f32 %v3151_v21, %v3150_v30  ;;  %v2867_v31 = vadd.f32 %v2866_v40, %v2865_v7 }
0x1845   : > { %v3153_v23 = vrot.slane %v3152_v10, 1 }
0x1847   : > { %v3154_v46 = vadd.f32 %v3153_v23, %v3152_v10 }
0x186a   : > { %s5947_s24 = spop %4033 }
0x186b   : > { %s5949_s26 = spop %4035  ;;  %s2217_s10 = ssub.f32 %s5947_s24, %s5945_s22 }
0x186c   : > { %s4038_s12 = spop %4037 }
0x186d   : > { %p2365_p1 = scmp.ge.f32.partialorder %s4038_s12, 1.5  ;;  %s2222_s6 = smul.f32 %s5949_s26, %s2217_s10 }
0x186e   : > { %s4040_s20 = spop %4039 }
0x186f   : > { %s2366_s2 = scalar_select %p2365_p1, 1, 0 }
0x1871   : > { %s2367_s18 = scvt.s32.f32 %s2366_s2 }
0x1873   : > { %s2368_s17 = ssub.f32 1.0, %s2367_s18 }
0x18bc   : > { %v2563_v32 = vpop.xlane.xlu0 %2562 }
0x18bd   : > { %v2564_v35 = vrot.slane %v2563_v32, 4 }
0x18bf   : > { %v2565_v36 = vadd.f32 %v2564_v35, %v2563_v32 }
0x18c0   : > { %v2850_v2 = vpop.xlane.xlu0 %2849 }
0x18c1   : > { %v2566_v25 = vrot.slane %v2565_v36, 2  ;;  %v2851_v15 = vrot.slane %v2850_v2, 4 }
0x18c3   : > { %v2852_v54 = vadd.f32 %v2851_v15, %v2850_v2  ;;  %v2567_v61 = vadd.f32 %v2566_v25, %v2565_v36 }
0x18c4   : > { %v2951_v55 = vpop.xlane.xlu0 %2950 }
0x18c5   : > { %v2853_v13 = vrot.slane %v2852_v54, 2  ;;  %v2952_v17 = vrot.slane %v2951_v55, 4  ;;  %v2568_v11 = vrot.slane %v2567_v61, 1 }
0x18c7   : > { %v2953_v41 = vadd.f32 %v2952_v17, %v2951_v55  ;;  %v2569_v52 = vadd.f32 %v2568_v11, %v2567_v61  ;;  %v2854_v38 = vadd.f32 %v2853_v13, %v2852_v54 }
0x18c8   : > { %v3159_v24 = vpop.xlane.xlu0 %3158 }
0x18c9   : > { %v2954_v53 = vrot.slane %v2953_v41, 2  ;;  %v3160_v56 = vrot.slane %v3159_v24, 4  ;;  %4041 = vpush %v2569_v52  ;;  %v2855_v60 = vrot.slane %v2854_v38, 1 }
0x18ca   : > { %4043 = vpush %v4479_v48 }
0x18cb   : > { %v3161_v19 = vadd.f32 %v3160_v56, %v3159_v24  ;;  %4045 = vpush %v2659_v50  ;;  %v2856_v42 = vadd.f32 %v2855_v60, %v2854_v38  ;;  %v2955_v6 = vadd.f32 %v2954_v53, %v2953_v41  ;;  %v6267_v24 = vld [vmem:[#allocation52_spill] sm:$0xff] }
0x18cd   : > { %v3162_v44 = vrot.slane %v3161_v19, 2  ;;  %4047 = vpush %v2856_v42  ;;  %v2956_v27 = vrot.slane %v2955_v6, 1 }
0x18ce   : > { %4049 = vpush %v2867_v31 }
0x18cf   : > { %v3163_v33 = vadd.f32 %v3162_v44, %v3161_v19  ;;  %4051 = vpush %v4481_v22  ;;  %v2957_v18 = vadd.f32 %v2956_v27, %v2955_v6 }
0x18d1   : > { %4053 = vpush %v2957_v18  ;;  %v3164_v34 = vrot.slane %v3163_v33, 1 }
0x18d2   : > { %4055 = vpush %v3154_v46 }
0x18d3   : > { %v3165_v49 = vadd.f32 %v3164_v34, %v3163_v33 }
0x18d5   : > { %4057 = vpush %v3165_v49 }
0x18d6   : > { %4059 = vpush %v4483_v43 }
0x18f8   : > { %v3234_v12 = vpop.f32.mrb[36].mxu1 }
0x18f9   : > { %v3240_v4 = vmul.f32 %v3234_v12, %v5876_v3  ;;  %v4003_v59 = vpop.f32.mrb[37].mxu1 }
0x18fa   : > { %s4042_s25 = spop %4041  ;;  %v3237_v16 = vpop.f32.mrb[38].mxu1 }
0x18fb   : > { %v3241_v8 = vadd.f32 %v3240_v4, %v5683_v62  ;;  %s2571_s29 = ssub.f32 %s4042_s25, %s4040_s20  ;;  %s4044_s0 = spop %4043  ;;  %v4004_v14 = vpop.f32.mrb[39].mxu1  ;;  %v3632_v62 = vld [vmem:[%s5989_s7] ss:$0 sm:$0xff] }
0x18fc   : > { %s4046_s3 = spop %4045 }
0x18fd   : > { %v3245_v26 = vmul.f32 %v4485_v5, %v3241_v8  ;;  %p2661_p2 = scmp.ge.f32.partialorder %s4046_s3, 1.5  ;;  %s2576_s8 = smul.f32 %s4044_s0, %s2571_s29 }
0x18fe   : > { %s4048_s27 = spop %4047 }
0x18ff   : > { %v3246_v28 = vpack.c.bf16 %v3245_v26, %v3245_v26  ;;  %s4050_s21 = spop %4049  ;;  %s2577_s12 = smul.f32 %s2576_s8, %s2368_s17 }
0x1900   : > { %s2662_s30 = scalar_select %p2661_p2, 1, 0 }
0x1901   : > { %4022 = vmatmul.mubr.bf16.vlgmr.msra.gmra.mrb[36].mxu0 %v3246_v28  ;;  %s4052_s28 = spop %4051  ;;  %s2869_s1 = ssub.f32 %s4050_s21, %s4048_s27 }
0x1902   : > { %s2663_s19 = scvt.s32.f32 %s2662_s30  ;;  %s4054_s23 = spop %4053 }
0x1903   : > { %p2959_p3 = scmp.ge.f32.partialorder %s4054_s23, 1.5  ;;  %s4056_s25 = spop %4055 }
0x1904   : > { %s2664_s20 = ssub.f32 1.0, %s2663_s19  ;;  %s2874_s24 = smul.f32 %s4052_s28, %s2869_s1 }
0x1905   : > { %s2960_s22 = scalar_select %p2959_p3, 1, 0 }
0x1906   : > { %s2665_s2 = smul.f32 %s2664_s20, %s2368_s17  ;;  %s4058_s3 = spop %4057 }
0x1907   : > { %s3167_s4 = ssub.f32 %s4058_s3, %s4056_s25  ;;  %s2961_s29 = scvt.s32.f32 %s2960_s22 }
0x1908   : > { %s4060_s0 = spop %4059  ;;  %s2875_s18 = smul.f32 %s2874_s24, %s2665_s2 }
0x1909   : > { %s2962_s11 = ssub.f32 1.0, %s2961_s29  ;;  %s3172_s13 = smul.f32 %s4060_s0, %s3167_s4 }
0x190a   : > { %s2578_s30 = sadd.f32 %s2577_s12, %s2222_s6  ;;  %s4690_s4 = smov (%p744_p4), [#allocation9]  }
0x190b   : > { %s2963_s14 = smul.f32 %s2962_s11, %s2665_s2  ;;  %s3369_s6 = sshll.u32 (%p744_p4), %s4690_s4, 4  ;;  %s3370_s6 = int_to_ptr.vmem [resolvable:$true] %s3369_s6 }
0x190c   : > { %s2876_s27 = sadd.f32 %s2875_s18, %s2578_s30  ;;  %s4617_s11 = scalar_lea.vmem (%p744_p4), %s3370_s6, 16 }
0x190d   : > { %s3173_s21 = smul.f32 %s3172_s13, %s2963_s14  ;;  %p4618_p5 = scmp.ne.s32.totalorder (%p744_p4), %s3370_s6, %s4617_s11 }
0x190e   :  { %s4621_s13 = scalar_lea.vmem (%p744_p4), %s3370_s6, 32  ;;  %p4622_p6 = scmp.lt.s32.totalorder (%p744_p4), %s3370_s6, %s3370_s6 }
0x190f   : > { %s3174_s8 = sadd.f32 %s3173_s21, %s2876_s27  ;;  %p4623_p7 = scmp.lt.s32.totalorder (%p744_p4), %s4621_s13, %s4617_s11 }
0x1911   : > { %s3359_s19 = sadd.f32 %s4665_s9, %s3174_s8   ;;  %p4624_p8 = por (%p744_p4), %p4623_p7, %p4622_p6 }
0x1913   : > { %s6266_s9 = smov %s3359_s19  ;;  %v3360_v35 = vstv (%p744_p4), %s3359_s19  ;;  %p4625_p9 = pnand (%p744_p4), %p4624_p8, %p4618_p5 }
0x1914   :  { %3362 = vst [vmem:[#allocation9] sm:$0x1] (%p744_p4), %v3360_v35 }
0x19d4   : > { %v3352_v3 = vpop.f32.mrb[36].mxu0 }
0x19d5   : > { %v3353_v63 = vadd.f32 %v3632_v62, %v3352_v3  ;;  %v4023_v1 = vpop.f32.mrb[37].mxu0 }
0x19d6   : > { %v3355_v29 = vpop.f32.mrb[38].mxu0 }
0x19d7   : > { %4486 = vtanh.f32 %v3353_v63  ;;  %v4024_v32 = vpop.f32.mrb[39].mxu0 }
0x19db   :  { %746 = sbr.rel (!%p744_p4) target bundleno = 1489 (0x5d1), region = 103 }
0x19e1   : > { %v4487_v43 = vpop.eup %4486  }
0x19e2   :  { %4628 = shalt.err (!%p4625_p9)
}
0x19e3   :  { %s4629_s26 = scalar_lea.hbm %s5998_s16, 16 }
0x19e4   :  { %p4630_p10 = scmp.ne.s32.totalorder %s5998_s16, %s4629_s26  ;;  %p4633_p11 = scmp.lt.u32.totalorder %s4629_s26, %s5998_s16 }
0x19e6   :  { %p4635_p12 = pnand %p4633_p11, %p4630_p10 }
0x19e8   :  { %4638 = shalt.err (!%p4635_p12)
}
0x19e9   :  { %3372 = dma.vmem_to_hbm [thread:$0]  %s3370_s6, 16, %s5998_s16, [#allocation4]  }
0x19ea   :  { %4661 = dma.done.wait [#allocation4], 16  }
0x19eb   :  { %4662 = vsyncadd [#allocation4], 4294967280 }
0x19ec   :  { %3376 = vsyncpa [#allocation3], 1 }
0x19ed   :  { %3377 = vsyncpa [#allocation8], 1 }
0x19ee   :  { %3378 = vsyncpa [#allocation4], 1 }
0x19ef   :  { %3379 = vsyncpa [#allocation5], 1 }

</bundles_post_ra>
